<compile_context>
chip_gen: v7x
topology: tpu7x:2x2x1
jax: 0.10.0
libtpu: 0.0.40
codegen_flags: <defaults>
</compile_context>

<pallas_src>
import jax
import jax.numpy as jnp
from jax import lax
from jax.experimental import pallas as pl
from jax.experimental.pallas import tpu as pltpu

_FULL_UNROLL_MAX = 64            # fully unroll the time loop up to this length
_VMEM_LIMIT = 32 * 1024 * 1024   # scoped VMEM limit for each kernel


# ----------------------------------------------------------------------------
# Kernel A: 2-layer LSTM recurrence -> (N, H) layer-2 hidden-state sequence.
# ----------------------------------------------------------------------------
def _lstm_kernel(x_ref, wih0_ref, whh0_ref, b0_ref, wih1_ref, whh1_ref, b1_ref,
                 seq_ref, gates0_s):
    N = x_ref.shape[0]
    H = whh0_ref.shape[0]
    bf16 = jnp.bfloat16

    # (1) Hoisted layer-0 input projection: one dense bf16 matmul + bias, done
    #     once before the serial recurrence (instead of N matvecs with M=1).
    gates0_s[...] = (jnp.dot(x_ref[...], wih0_ref[...],
                             preferred_element_type=jnp.float32)
                     + b0_ref[...])

    # Loop-invariant bias load hoisted above the recurrence.
    b1 = b1_ref[...]

    def act(gates):
        # PyTorch gate layout along the 4H axis: [i, f, g, o].
        i = jax.nn.sigmoid(gates[:, 0:H])
        f = jax.nn.sigmoid(gates[:, H:2 * H])
        g = jnp.tanh(gates[:, 2 * H:3 * H])
        o = jax.nn.sigmoid(gates[:, 3 * H:4 * H])
        return i, f, g, o

    def step(t, carry):
        # (2) h/c states live in the loop carry (vregs), not VMEM scratch.
        h0, c0, h1, c1 = carry

        g0 = (gates0_s[pl.ds(t, 1), :]
              + jnp.dot(h0.astype(bf16), whh0_ref[...],
                        preferred_element_type=jnp.float32))
        i0, f0, gg0, o0 = act(g0)
        c0 = f0 * c0 + i0 * gg0
        h0 = o0 * jnp.tanh(c0)

        g1 = (jnp.dot(h0.astype(bf16), wih1_ref[...],
                      preferred_element_type=jnp.float32)
              + jnp.dot(h1.astype(bf16), whh1_ref[...],
                        preferred_element_type=jnp.float32)
              + b1)
        i1, f1, gg1, o1 = act(g1)
        c1 = f1 * c1 + i1 * gg1
        h1 = o1 * jnp.tanh(c1)

        seq_ref[pl.ds(t, 1), :] = h1
        return (h0, c0, h1, c1)

    z = jnp.zeros((1, H), jnp.float32)   # PyTorch default zero initial state
    carry = (z, z, z, z)
    if N <= _FULL_UNROLL_MAX:
        # (3) Full unroll for short static sequences: gives the scheduler
        #     cross-step visibility to overlap MXU/EUP/VPU work.
        for t in range(N):
            carry = step(t, carry)
    else:
        # Partial unroll keeps compile time bounded for long sequences.
        lax.fori_loop(0, N, step, carry, unroll=4)


# ----------------------------------------------------------------------------
# Kernel B: FC matmul over one O tile + per-tile logsumexp stats.
# ----------------------------------------------------------------------------
def _fc_kernel(seq_ref, wfc_ref, bfc_ref, logits_ref, tlse_ref):
    seq_bf = seq_ref[...].astype(jnp.bfloat16)
    logits = (jnp.dot(seq_bf, wfc_ref[...], preferred_element_type=jnp.float32)
              + bfc_ref[...])                                   # (N, TO) f32
    logits_ref[...] = logits
    m = jnp.max(logits, axis=-1, keepdims=True)                 # (N, 1)
    s = jnp.sum(jnp.exp(logits - m), axis=-1, keepdims=True)    # (N, 1)
    tlse_ref[0] = m + jnp.log(s)                                # per-tile lse


# ----------------------------------------------------------------------------
# Kernel C: combine per-tile stats -> global logsumexp, normalize one O tile.
# ----------------------------------------------------------------------------
def _logsoftmax_kernel(tlse_ref, logits_ref, out_ref):
    T = tlse_ref.shape[0]
    m = tlse_ref[0]                                   # (N, 1)
    for k in range(1, T):
        m = jnp.maximum(m, tlse_ref[k])
    s = jnp.zeros_like(m)
    for k in range(T):
        s = s + jnp.exp(tlse_ref[k] - m)
    lse = m + jnp.log(s)                              # (N, 1) global logsumexp
    out_ref[...] = logits_ref[...] - lse


# ----------------------------------------------------------------------------
# Wrapper
# ----------------------------------------------------------------------------
def custom_tokenizer_forward(x, params, *, tile_o=128):
    """x: (N, input_size) float32. Returns (N, output_size) float32 log-probs."""
    (wih0, whh0, b0, wih1, whh1, b1, wfc, bfc) = params
    N, D = x.shape
    H = whh0.shape[0]
    O = wfc.shape[1]

    assert tile_o % 128 == 0, "output tile must be lane-aligned (multiple of 128)"
    num_o_tiles = (O + tile_o - 1) // tile_o
    O_pad = num_o_tiles * tile_o

    bf16 = jnp.bfloat16
    # bf16 weights (MXU-native), f32 accumulation / states / biases.
    x_bf = x.astype(bf16)
    wih0_b = wih0.astype(bf16)
    whh0_b = whh0.astype(bf16)
    wih1_b = wih1.astype(bf16)
    whh1_b = whh1.astype(bf16)
    # Pad FC weight/bias to a lane-dense multiple of tile_o: padded columns get
    # zero weights and -1e30 bias so exp() of them is exactly 0.
    wfc_b = jnp.zeros((H, O_pad), bf16).at[:, :O].set(wfc.astype(bf16))
    bfc_p = jnp.full((1, O_pad), -1e30, jnp.float32).at[:, :O].set(
        bfc.astype(jnp.float32))

    full = lambda shp: pl.BlockSpec(shp, lambda i: (0,) * len(shp))

    # ---- Kernel A: LSTM recurrence.
    seq = pl.pallas_call(
        _lstm_kernel,
        out_shape=jax.ShapeDtypeStruct((N, H), jnp.float32),
        grid_spec=pltpu.PrefetchScalarGridSpec(
            num_scalar_prefetch=0,
            grid=(1,),
            in_specs=[
                full((N, D)),
                full((D, 4 * H)), full((H, 4 * H)), full((1, 4 * H)),
                full((H, 4 * H)), full((H, 4 * H)), full((1, 4 * H)),
            ],
            out_specs=full((N, H)),
            scratch_shapes=[pltpu.VMEM((N, 4 * H), jnp.float32)],  # hoisted gates
        ),
        compiler_params=pltpu.CompilerParams(
            dimension_semantics=("arbitrary",),
            vmem_limit_bytes=_VMEM_LIMIT),
    )(x_bf, wih0_b, whh0_b, b0, wih1_b, whh1_b, b1)

    # ---- Kernel B: FC, tiled over the (padded) output dim, parallel grid.
    logits, tile_lse = pl.pallas_call(
        _fc_kernel,
        out_shape=(jax.ShapeDtypeStruct((N, O_pad), jnp.float32),
                   jax.ShapeDtypeStruct((num_o_tiles, N, 1), jnp.float32)),
        grid_spec=pltpu.PrefetchScalarGridSpec(
            num_scalar_prefetch=0,
            grid=(num_o_tiles,),
            in_specs=[
                pl.BlockSpec((N, H), lambda j: (0, 0)),
                pl.BlockSpec((H, tile_o), lambda j: (0, j)),
                pl.BlockSpec((1, tile_o), lambda j: (0, j)),
            ],
            out_specs=(pl.BlockSpec((N, tile_o), lambda j: (0, j)),
                       pl.BlockSpec((1, N, 1), lambda j: (j, 0, 0))),
        ),
        compiler_params=pltpu.CompilerParams(
            dimension_semantics=("parallel",),
            vmem_limit_bytes=_VMEM_LIMIT),
    )(seq, wfc_b, bfc_p)

    # ---- Kernel C: log-softmax normalization, tiled over the output dim.
    out_pad = pl.pallas_call(
        _logsoftmax_kernel,
        out_shape=jax.ShapeDtypeStruct((N, O_pad), jnp.float32),
        grid_spec=pltpu.PrefetchScalarGridSpec(
            num_scalar_prefetch=0,
            grid=(num_o_tiles,),
            in_specs=[
                pl.BlockSpec((num_o_tiles, N, 1), lambda j: (0, 0, 0)),
                pl.BlockSpec((N, tile_o), lambda j: (0, j)),
            ],
            out_specs=pl.BlockSpec((N, tile_o), lambda j: (0, j)),
        ),
        compiler_params=pltpu.CompilerParams(
            dimension_semantics=("parallel",),
            vmem_limit_bytes=_VMEM_LIMIT),
    )(tile_lse, logits)

    return out_pad[:, :O]


# ----------------------------------------------------------------------------
# Pure-JAX reference (same math: bf16 matmuls, f32 accumulation/states).
# ----------------------------------------------------------------------------
def _reference_forward(x, params):
    (wih0, whh0, b0, wih1, whh1, b1, wfc, bfc) = params
    H = whh0.shape[0]
    bf = jnp.bfloat16

    def cell(xt_b, h, c, wih, whh, b):
        g = (jnp.dot(xt_b, wih.astype(bf), preferred_element_type=jnp.float32)
             + jnp.dot(h.astype(bf), whh.astype(bf),
                       preferred_element_type=jnp.float32)
             + b)
        i = jax.nn.sigmoid(g[:, 0:H])
        f = jax.nn.sigmoid(g[:, H:2 * H])
        gg = jnp.tanh(g[:, 2 * H:3 * H])
        o = jax.nn.sigmoid(g[:, 3 * H:4 * H])
        c_new = f * c + i * gg
        return o * jnp.tanh(c_new), c_new

    def step(carry, xt_b):
        h0, c0, h1, c1 = carry
        xt_b = xt_b[None, :]
        h0, c0 = cell(xt_b, h0, c0, wih0, whh0, b0)
        h1, c1 = cell(h0.astype(bf), h1, c1, wih1, whh1, b1)
        return (h0, c0, h1, c1), h1[0]

    z = jnp.zeros((1, H), jnp.float32)
    _, outs = lax.scan(step, (z, z, z, z), x.astype(bf))
    logits = (jnp.dot(outs.astype(bf), wfc.astype(bf),
                      preferred_element_type=jnp.float32) + bfc)
    return jax.nn.log_softmax(logits, axis=-1)


def make_params(key, input_size, hidden_size, output_size):
    """Deterministic synthetic parameters (PyTorch-style uniform init, f32)."""
    H = hidden_size
    k = 1.0 / jnp.sqrt(jnp.float32(H))
    keys = jax.random.split(key, 8)
    u = lambda kk, shp: jax.random.uniform(kk, shp, jnp.float32, -k, k)
    # Weights stored pre-transposed: (in_features, 4H) so the kernel does x @ W.
    wih0 = u(keys[0], (input_size, 4 * H))
    whh0 = u(keys[1], (H, 4 * H))
    b0 = u(keys[2], (1, 4 * H))            # b_ih + b_hh folded together
    wih1 = u(keys[3], (H, 4 * H))
    whh1 = u(keys[4], (H, 4 * H))
    b1 = u(keys[5], (1, 4 * H))
    wfc = u(keys[6], (H, output_size))
    bfc = u(keys[7], (1, output_size))
    return (wih0, whh0, b0, wih1, whh1, b1, wfc, bfc)


if __name__ == "__main__":
    # Small, TPU-friendly shapes consistent with the module's forward.
    N = 8              # sequence length (the "N" in get_token)
    INPUT_SIZE = 64    # stands in for 768
    HIDDEN_SIZE = 128  # stands in for 1024
    OUTPUT_SIZE = 250  # stands in for 10000 (non-multiple of 128 -> tests padding)

    key = jax.random.PRNGKey(0)
    kx, kp = jax.random.split(key)
    x = jax.random.normal(kx, (N, INPUT_SIZE), jnp.float32)
    params = make_params(kp, INPUT_SIZE, HIDDEN_SIZE, OUTPUT_SIZE)

    out = custom_tokenizer_forward(x, params, tile_o=128)
    out = jax.block_until_ready(out)

    ref = _reference_forward(x, params)
    assert out.shape == (N, OUTPUT_SIZE)
    assert jnp.allclose(out, ref, atol=2e-3, rtol=2e-3), "mismatch vs reference"

    # equivalent of get_token: argmax over dim=1 (done in plain JAX glue)
    tokens = jnp.argmax(out, axis=1)
    jax.block_until_ready(tokens)

    print("KERNEL_OK")
</pallas_src>

<mosaic_0001>
module attributes {stable_mosaic.version = 11 : i64} {
  func.func @_lstm_kernel(%arg0: i32, %arg1: memref<8x64xbf16, #tpu.memory_space<vmem>>, %arg2: memref<64x512xbf16, #tpu.memory_space<vmem>>, %arg3: memref<128x512xbf16, #tpu.memory_space<vmem>>, %arg4: memref<1x512xf32, #tpu.memory_space<vmem>>, %arg5: memref<128x512xbf16, #tpu.memory_space<vmem>>, %arg6: memref<128x512xbf16, #tpu.memory_space<vmem>>, %arg7: memref<1x512xf32, #tpu.memory_space<vmem>>, %arg8: memref<8x128xf32, #tpu.memory_space<vmem>>, %arg9: memref<8x512xf32, #tpu.memory_space<vmem>>) attributes {dimension_semantics = [#tpu.dimension_semantics<arbitrary>], iteration_bounds = array<i64: 1>, scalar_prefetch = 0 : i64, scratch_operands = 1 : i64, tpu.core_type = #tpu.core_type<tc>, window_params = [{pipeline_mode = #tpu.pipeline_mode<synchronous>, transform_indices = @transform_0, window_bounds = array<i64: 8, 64>}, {pipeline_mode = #tpu.pipeline_mode<synchronous>, transform_indices = @transform_1, window_bounds = array<i64: 64, 512>}, {pipeline_mode = #tpu.pipeline_mode<synchronous>, transform_indices = @transform_2, window_bounds = array<i64: 128, 512>}, {pipeline_mode = #tpu.pipeline_mode<synchronous>, transform_indices = @transform_3, window_bounds = array<i64: 1, 512>}, {pipeline_mode = #tpu.pipeline_mode<synchronous>, transform_indices = @transform_4, window_bounds = array<i64: 128, 512>}, {pipeline_mode = #tpu.pipeline_mode<synchronous>, transform_indices = @transform_5, window_bounds = array<i64: 128, 512>}, {pipeline_mode = #tpu.pipeline_mode<synchronous>, transform_indices = @transform_6, window_bounds = array<i64: 1, 512>}, {pipeline_mode = #tpu.pipeline_mode<synchronous>, transform_indices = @transform_7, window_bounds = array<i64: 8, 128>}]} {
    %c0 = arith.constant 0 : index
    %c0_0 = arith.constant 0 : index
    %0 = vector.load %arg1[%c0, %c0_0] : memref<8x64xbf16, #tpu.memory_space<vmem>>, vector<8x64xbf16>
    %c0_1 = arith.constant 0 : index
    %c0_2 = arith.constant 0 : index
    %1 = vector.load %arg2[%c0_1, %c0_2] : memref<64x512xbf16, #tpu.memory_space<vmem>>, vector<64x512xbf16>
    %cst = arith.constant dense<0.000000e+00> : vector<8x512xf32>
    %2 = tpu.matmul %0, %1, %cst {dimension_numbers = #tpu.dot_dimension_numbers<[1], [0], [0], [1], [0, 0, 1, 1], [], []>} : vector<8x64xbf16>, vector<64x512xbf16>, vector<8x512xf32> -> vector<8x512xf32>
    %c0_3 = arith.constant 0 : index
    %c0_4 = arith.constant 0 : index
    %3 = vector.load %arg4[%c0_3, %c0_4] : memref<1x512xf32, #tpu.memory_space<vmem>>, vector<1x512xf32>
    %4 = vector.broadcast %3 : vector<1x512xf32> to vector<8x512xf32>
    %5 = arith.addf %2, %4 : vector<8x512xf32>
    %c0_5 = arith.constant 0 : index
    %c0_6 = arith.constant 0 : index
    %6 = vector.load %arg9[%c0_5, %c0_6] : memref<8x512xf32, #tpu.memory_space<vmem>>, vector<8x512xf32>
    tpu.vector_store %arg9[%c0_5, %c0_6], %5 {strides = array<i32>} : memref<8x512xf32, #tpu.memory_space<vmem>>, vector<8x512xf32>,
    %c0_7 = arith.constant 0 : index
    %c0_8 = arith.constant 0 : index
    %7 = vector.load %arg7[%c0_7, %c0_8] : memref<1x512xf32, #tpu.memory_space<vmem>>, vector<1x512xf32>
    %cst_9 = arith.constant 0.000000e+00 : f32
    %8 = vector.broadcast %cst_9 : f32 to vector<1x128xf32>
    %c0_10 = arith.constant 0 : index
    %c0_11 = arith.constant 0 : index
    %9 = vector.load %arg9[%c0_10, %c0_11] : memref<8x512xf32, #tpu.memory_space<vmem>>, vector<1x512xf32>
    %10 = arith.truncf %8 : vector<1x128xf32> to vector<1x128xbf16>
    %c0_12 = arith.constant 0 : index
    %c0_13 = arith.constant 0 : index
    %11 = vector.load %arg3[%c0_12, %c0_13] : memref<128x512xbf16, #tpu.memory_space<vmem>>, vector<128x512xbf16>
    %cst_14 = arith.constant dense<0.000000e+00> : vector<1x512xf32>
    %12 = tpu.matmul %10, %11, %cst_14 {dimension_numbers = #tpu.dot_dimension_numbers<[1], [0], [0], [1], [0, 0, 1, 1], [], []>} : vector<1x128xbf16>, vector<128x512xbf16>, vector<1x512xf32> -> vector<1x512xf32>
    %13 = arith.addf %9, %12 : vector<1x512xf32>
    %14 = vector.extract_strided_slice %13 {offsets = [0, 0], sizes = [1, 128], strides = [1, 1]} : vector<1x512xf32> to vector<1x128xf32>
    %15 = arith.negf %14 : vector<1x128xf32>
    %16 = math.exp %15 : vector<1x128xf32>
    %cst_15 = arith.constant 1.000000e+00 : f32
    %17 = vector.broadcast %cst_15 : f32 to vector<1x128xf32>
    %18 = arith.addf %17, %16 : vector<1x128xf32>
    %19 = arith.divf %17, %18 : vector<1x128xf32>
    %20 = vector.extract_strided_slice %13 {offsets = [0, 128], sizes = [1, 128], strides = [1, 1]} : vector<1x512xf32> to vector<1x128xf32>
    %21 = arith.negf %20 : vector<1x128xf32>
    %22 = math.exp %21 : vector<1x128xf32>
    %cst_16 = arith.constant 1.000000e+00 : f32
    %23 = vector.broadcast %cst_16 : f32 to vector<1x128xf32>
    %24 = arith.addf %23, %22 : vector<1x128xf32>
    %25 = arith.divf %23, %24 : vector<1x128xf32>
    %26 = vector.extract_strided_slice %13 {offsets = [0, 256], sizes = [1, 128], strides = [1, 1]} : vector<1x512xf32> to vector<1x128xf32>
    %27 = math.tanh %26 : vector<1x128xf32>
    %28 = vector.extract_strided_slice %13 {offsets = [0, 384], sizes = [1, 128], strides = [1, 1]} : vector<1x512xf32> to vector<1x128xf32>
    %29 = arith.negf %28 : vector<1x128xf32>
    %30 = math.exp %29 : vector<1x128xf32>
    %cst_17 = arith.constant 1.000000e+00 : f32
    %31 = vector.broadcast %cst_17 : f32 to vector<1x128xf32>
    %32 = arith.addf %31, %30 : vector<1x128xf32>
    %33 = arith.divf %31, %32 : vector<1x128xf32>
    %34 = arith.mulf %25, %8 : vector<1x128xf32>
    %35 = arith.mulf %19, %27 : vector<1x128xf32>
    %36 = arith.addf %34, %35 : vector<1x128xf32>
    %37 = math.tanh %36 : vector<1x128xf32>
    %38 = arith.mulf %33, %37 : vector<1x128xf32>
    %39 = arith.truncf %38 : vector<1x128xf32> to vector<1x128xbf16>
    %c0_18 = arith.constant 0 : index
    %c0_19 = arith.constant 0 : index
    %40 = vector.load %arg5[%c0_18, %c0_19] : memref<128x512xbf16, #tpu.memory_space<vmem>>, vector<128x512xbf16>
    %cst_20 = arith.constant dense<0.000000e+00> : vector<1x512xf32>
    %41 = tpu.matmul %39, %40, %cst_20 {dimension_numbers = #tpu.dot_dimension_numbers<[1], [0], [0], [1], [0, 0, 1, 1], [], []>} : vector<1x128xbf16>, vector<128x512xbf16>, vector<1x512xf32> -> vector<1x512xf32>
    %42 = arith.truncf %8 : vector<1x128xf32> to vector<1x128xbf16>
    %c0_21 = arith.constant 0 : index
    %c0_22 = arith.constant 0 : index
    %43 = vector.load %arg6[%c0_21, %c0_22] : memref<128x512xbf16, #tpu.memory_space<vmem>>, vector<128x512xbf16>
    %cst_23 = arith.constant dense<0.000000e+00> : vector<1x512xf32>
    %44 = tpu.matmul %42, %43, %cst_23 {dimension_numbers = #tpu.dot_dimension_numbers<[1], [0], [0], [1], [0, 0, 1, 1], [], []>} : vector<1x128xbf16>, vector<128x512xbf16>, vector<1x512xf32> -> vector<1x512xf32>
    %45 = arith.addf %41, %44 : vector<1x512xf32>
    %46 = arith.addf %45, %7 : vector<1x512xf32>
    %47 = vector.extract_strided_slice %46 {offsets = [0, 0], sizes = [1, 128], strides = [1, 1]} : vector<1x512xf32> to vector<1x128xf32>
    %48 = arith.negf %47 : vector<1x128xf32>
    %49 = math.exp %48 : vector<1x128xf32>
    %cst_24 = arith.constant 1.000000e+00 : f32
    %50 = vector.broadcast %cst_24 : f32 to vector<1x128xf32>
    %51 = arith.addf %50, %49 : vector<1x128xf32>
    %52 = arith.divf %50, %51 : vector<1x128xf32>
    %53 = vector.extract_strided_slice %46 {offsets = [0, 128], sizes = [1, 128], strides = [1, 1]} : vector<1x512xf32> to vector<1x128xf32>
    %54 = arith.negf %53 : vector<1x128xf32>
    %55 = math.exp %54 : vector<1x128xf32>
    %cst_25 = arith.constant 1.000000e+00 : f32
    %56 = vector.broadcast %cst_25 : f32 to vector<1x128xf32>
    %57 = arith.addf %56, %55 : vector<1x128xf32>
    %58 = arith.divf %56, %57 : vector<1x128xf32>
    %59 = vector.extract_strided_slice %46 {offsets = [0, 256], sizes = [1, 128], strides = [1, 1]} : vector<1x512xf32> to vector<1x128xf32>
    %60 = math.tanh %59 : vector<1x128xf32>
    %61 = vector.extract_strided_slice %46 {offsets = [0, 384], sizes = [1, 128], strides = [1, 1]} : vector<1x512xf32> to vector<1x128xf32>
    %62 = arith.negf %61 : vector<1x128xf32>
    %63 = math.exp %62 : vector<1x128xf32>
    %cst_26 = arith.constant 1.000000e+00 : f32
    %64 = vector.broadcast %cst_26 : f32 to vector<1x128xf32>
    %65 = arith.addf %64, %63 : vector<1x128xf32>
    %66 = arith.divf %64, %65 : vector<1x128xf32>
    %67 = arith.mulf %58, %8 : vector<1x128xf32>
    %68 = arith.mulf %52, %60 : vector<1x128xf32>
    %69 = arith.addf %67, %68 : vector<1x128xf32>
    %70 = math.tanh %69 : vector<1x128xf32>
    %71 = arith.mulf %66, %70 : vector<1x128xf32>
    %c0_27 = arith.constant 0 : index
    %c0_28 = arith.constant 0 : index
    %72 = vector.load %arg8[%c0_27, %c0_28] : memref<8x128xf32, #tpu.memory_space<vmem>>, vector<1x128xf32>
    tpu.vector_store %arg8[%c0_27, %c0_28], %71 {strides = array<i32>} : memref<8x128xf32, #tpu.memory_space<vmem>>, vector<1x128xf32>,
    %c1 = arith.constant 1 : index
    %c0_29 = arith.constant 0 : index
    %73 = vector.load %arg9[%c1, %c0_29] : memref<8x512xf32, #tpu.memory_space<vmem>>, vector<1x512xf32>
    %74 = arith.truncf %38 : vector<1x128xf32> to vector<1x128xbf16>
    %c0_30 = arith.constant 0 : index
    %c0_31 = arith.constant 0 : index
    %75 = vector.load %arg3[%c0_30, %c0_31] : memref<128x512xbf16, #tpu.memory_space<vmem>>, vector<128x512xbf16>
    %cst_32 = arith.constant dense<0.000000e+00> : vector<1x512xf32>
    %76 = tpu.matmul %74, %75, %cst_32 {dimension_numbers = #tpu.dot_dimension_numbers<[1], [0], [0], [1], [0, 0, 1, 1], [], []>} : vector<1x128xbf16>, vector<128x512xbf16>, vector<1x512xf32> -> vector<1x512xf32>
    %77 = arith.addf %73, %76 : vector<1x512xf32>
    %78 = vector.extract_strided_slice %77 {offsets = [0, 0], sizes = [1, 128], strides = [1, 1]} : vector<1x512xf32> to vector<1x128xf32>
    %79 = arith.negf %78 : vector<1x128xf32>
    %80 = math.exp %79 : vector<1x128xf32>
    %cst_33 = arith.constant 1.000000e+00 : f32
    %81 = vector.broadcast %cst_33 : f32 to vector<1x128xf32>
    %82 = arith.addf %81, %80 : vector<1x128xf32>
    %83 = arith.divf %81, %82 : vector<1x128xf32>
    %84 = vector.extract_strided_slice %77 {offsets = [0, 128], sizes = [1, 128], strides = [1, 1]} : vector<1x512xf32> to vector<1x128xf32>
    %85 = arith.negf %84 : vector<1x128xf32>
    %86 = math.exp %85 : vector<1x128xf32>
    %cst_34 = arith.constant 1.000000e+00 : f32
    %87 = vector.broadcast %cst_34 : f32 to vector<1x128xf32>
    %88 = arith.addf %87, %86 : vector<1x128xf32>
    %89 = arith.divf %87, %88 : vector<1x128xf32>
    %90 = vector.extract_strided_slice %77 {offsets = [0, 256], sizes = [1, 128], strides = [1, 1]} : vector<1x512xf32> to vector<1x128xf32>
    %91 = math.tanh %90 : vector<1x128xf32>
    %92 = vector.extract_strided_slice %77 {offsets = [0, 384], sizes = [1, 128], strides = [1, 1]} : vector<1x512xf32> to vector<1x128xf32>
    %93 = arith.negf %92 : vector<1x128xf32>
    %94 = math.exp %93 : vector<1x128xf32>
    %cst_35 = arith.constant 1.000000e+00 : f32
    %95 = vector.broadcast %cst_35 : f32 to vector<1x128xf32>
    %96 = arith.addf %95, %94 : vector<1x128xf32>
    %97 = arith.divf %95, %96 : vector<1x128xf32>
    %98 = arith.mulf %89, %36 : vector<1x128xf32>
    %99 = arith.mulf %83, %91 : vector<1x128xf32>
    %100 = arith.addf %98, %99 : vector<1x128xf32>
    %101 = math.tanh %100 : vector<1x128xf32>
    %102 = arith.mulf %97, %101 : vector<1x128xf32>
    %103 = arith.truncf %102 : vector<1x128xf32> to vector<1x128xbf16>
    %c0_36 = arith.constant 0 : index
    %c0_37 = arith.constant 0 : index
    %104 = vector.load %arg5[%c0_36, %c0_37] : memref<128x512xbf16, #tpu.memory_space<vmem>>, vector<128x512xbf16>
    %cst_38 = arith.constant dense<0.000000e+00> : vector<1x512xf32>
    %105 = tpu.matmul %103, %104, %cst_38 {dimension_numbers = #tpu.dot_dimension_numbers<[1], [0], [0], [1], [0, 0, 1, 1], [], []>} : vector<1x128xbf16>, vector<128x512xbf16>, vector<1x512xf32> -> vector<1x512xf32>
    %106 = arith.truncf %71 : vector<1x128xf32> to vector<1x128xbf16>
    %c0_39 = arith.constant 0 : index
    %c0_40 = arith.constant 0 : index
    %107 = vector.load %arg6[%c0_39, %c0_40] : memref<128x512xbf16, #tpu.memory_space<vmem>>, vector<128x512xbf16>
    %cst_41 = arith.constant dense<0.000000e+00> : vector<1x512xf32>
    %108 = tpu.matmul %106, %107, %cst_41 {dimension_numbers = #tpu.dot_dimension_numbers<[1], [0], [0], [1], [0, 0, 1, 1], [], []>} : vector<1x128xbf16>, vector<128x512xbf16>, vector<1x512xf32> -> vector<1x512xf32>
    %109 = arith.addf %105, %108 : vector<1x512xf32>
    %110 = arith.addf %109, %7 : vector<1x512xf32>
    %111 = vector.extract_strided_slice %110 {offsets = [0, 0], sizes = [1, 128], strides = [1, 1]} : vector<1x512xf32> to vector<1x128xf32>
    %112 = arith.negf %111 : vector<1x128xf32>
    %113 = math.exp %112 : vector<1x128xf32>
    %cst_42 = arith.constant 1.000000e+00 : f32
    %114 = vector.broadcast %cst_42 : f32 to vector<1x128xf32>
    %115 = arith.addf %114, %113 : vector<1x128xf32>
    %116 = arith.divf %114, %115 : vector<1x128xf32>
    %117 = vector.extract_strided_slice %110 {offsets = [0, 128], sizes = [1, 128], strides = [1, 1]} : vector<1x512xf32> to vector<1x128xf32>
    %118 = arith.negf %117 : vector<1x128xf32>
    %119 = math.exp %118 : vector<1x128xf32>
    %cst_43 = arith.constant 1.000000e+00 : f32
    %120 = vector.broadcast %cst_43 : f32 to vector<1x128xf32>
    %121 = arith.addf %120, %119 : vector<1x128xf32>
    %122 = arith.divf %120, %121 : vector<1x128xf32>
    %123 = vector.extract_strided_slice %110 {offsets = [0, 256], sizes = [1, 128], strides = [1, 1]} : vector<1x512xf32> to vector<1x128xf32>
    %124 = math.tanh %123 : vector<1x128xf32>
    %125 = vector.extract_strided_slice %110 {offsets = [0, 384], sizes = [1, 128], strides = [1, 1]} : vector<1x512xf32> to vector<1x128xf32>
    %126 = arith.negf %125 : vector<1x128xf32>
    %127 = math.exp %126 : vector<1x128xf32>
    %cst_44 = arith.constant 1.000000e+00 : f32
    %128 = vector.broadcast %cst_44 : f32 to vector<1x128xf32>
    %129 = arith.addf %128, %127 : vector<1x128xf32>
    %130 = arith.divf %128, %129 : vector<1x128xf32>
    %131 = arith.mulf %122, %69 : vector<1x128xf32>
    %132 = arith.mulf %116, %124 : vector<1x128xf32>
    %133 = arith.addf %131, %132 : vector<1x128xf32>
    %134 = math.tanh %133 : vector<1x128xf32>
    %135 = arith.mulf %130, %134 : vector<1x128xf32>
    %c1_45 = arith.constant 1 : index
    %c0_46 = arith.constant 0 : index
    %136 = vector.load %arg8[%c1_45, %c0_46] : memref<8x128xf32, #tpu.memory_space<vmem>>, vector<1x128xf32>
    tpu.vector_store %arg8[%c1_45, %c0_46], %135 {strides = array<i32>} : memref<8x128xf32, #tpu.memory_space<vmem>>, vector<1x128xf32>,
    %c2 = arith.constant 2 : index
    %c0_47 = arith.constant 0 : index
    %137 = vector.load %arg9[%c2, %c0_47] : memref<8x512xf32, #tpu.memory_space<vmem>>, vector<1x512xf32>
    %138 = arith.truncf %102 : vector<1x128xf32> to vector<1x128xbf16>
    %c0_48 = arith.constant 0 : index
    %c0_49 = arith.constant 0 : index
    %139 = vector.load %arg3[%c0_48, %c0_49] : memref<128x512xbf16, #tpu.memory_space<vmem>>, vector<128x512xbf16>
    %cst_50 = arith.constant dense<0.000000e+00> : vector<1x512xf32>
    %140 = tpu.matmul %138, %139, %cst_50 {dimension_numbers = #tpu.dot_dimension_numbers<[1], [0], [0], [1], [0, 0, 1, 1], [], []>} : vector<1x128xbf16>, vector<128x512xbf16>, vector<1x512xf32> -> vector<1x512xf32>
    %141 = arith.addf %137, %140 : vector<1x512xf32>
    %142 = vector.extract_strided_slice %141 {offsets = [0, 0], sizes = [1, 128], strides = [1, 1]} : vector<1x512xf32> to vector<1x128xf32>
    %143 = arith.negf %142 : vector<1x128xf32>
    %144 = math.exp %143 : vector<1x128xf32>
    %cst_51 = arith.constant 1.000000e+00 : f32
    %145 = vector.broadcast %cst_51 : f32 to vector<1x128xf32>
    %146 = arith.addf %145, %144 : vector<1x128xf32>
    %147 = arith.divf %145, %146 : vector<1x128xf32>
    %148 = vector.extract_strided_slice %141 {offsets = [0, 128], sizes = [1, 128], strides = [1, 1]} : vector<1x512xf32> to vector<1x128xf32>
    %149 = arith.negf %148 : vector<1x128xf32>
    %150 = math.exp %149 : vector<1x128xf32>
    %cst_52 = arith.constant 1.000000e+00 : f32
    %151 = vector.broadcast %cst_52 : f32 to vector<1x128xf32>
    %152 = arith.addf %151, %150 : vector<1x128xf32>
    %153 = arith.divf %151, %152 : vector<1x128xf32>
    %154 = vector.extract_strided_slice %141 {offsets = [0, 256], sizes = [1, 128], strides = [1, 1]} : vector<1x512xf32> to vector<1x128xf32>
    %155 = math.tanh %154 : vector<1x128xf32>
    %156 = vector.extract_strided_slice %141 {offsets = [0, 384], sizes = [1, 128], strides = [1, 1]} : vector<1x512xf32> to vector<1x128xf32>
    %157 = arith.negf %156 : vector<1x128xf32>
    %158 = math.exp %157 : vector<1x128xf32>
    %cst_53 = arith.constant 1.000000e+00 : f32
    %159 = vector.broadcast %cst_53 : f32 to vector<1x128xf32>
    %160 = arith.addf %159, %158 : vector<1x128xf32>
    %161 = arith.divf %159, %160 : vector<1x128xf32>
    %162 = arith.mulf %153, %100 : vector<1x128xf32>
    %163 = arith.mulf %147, %155 : vector<1x128xf32>
    %164 = arith.addf %162, %163 : vector<1x128xf32>
    %165 = math.tanh %164 : vector<1x128xf32>
    %166 = arith.mulf %161, %165 : vector<1x128xf32>
    %167 = arith.truncf %166 : vector<1x128xf32> to vector<1x128xbf16>
    %c0_54 = arith.constant 0 : index
    %c0_55 = arith.constant 0 : index
    %168 = vector.load %arg5[%c0_54, %c0_55] : memref<128x512xbf16, #tpu.memory_space<vmem>>, vector<128x512xbf16>
    %cst_56 = arith.constant dense<0.000000e+00> : vector<1x512xf32>
    %169 = tpu.matmul %167, %168, %cst_56 {dimension_numbers = #tpu.dot_dimension_numbers<[1], [0], [0], [1], [0, 0, 1, 1], [], []>} : vector<1x128xbf16>, vector<128x512xbf16>, vector<1x512xf32> -> vector<1x512xf32>
    %170 = arith.truncf %135 : vector<1x128xf32> to vector<1x128xbf16>
    %c0_57 = arith.constant 0 : index
    %c0_58 = arith.constant 0 : index
    %171 = vector.load %arg6[%c0_57, %c0_58] : memref<128x512xbf16, #tpu.memory_space<vmem>>, vector<128x512xbf16>
    %cst_59 = arith.constant dense<0.000000e+00> : vector<1x512xf32>
    %172 = tpu.matmul %170, %171, %cst_59 {dimension_numbers = #tpu.dot_dimension_numbers<[1], [0], [0], [1], [0, 0, 1, 1], [], []>} : vector<1x128xbf16>, vector<128x512xbf16>, vector<1x512xf32> -> vector<1x512xf32>
    %173 = arith.addf %169, %172 : vector<1x512xf32>
    %174 = arith.addf %173, %7 : vector<1x512xf32>
    %175 = vector.extract_strided_slice %174 {offsets = [0, 0], sizes = [1, 128], strides = [1, 1]} : vector<1x512xf32> to vector<1x128xf32>
    %176 = arith.negf %175 : vector<1x128xf32>
    %177 = math.exp %176 : vector<1x128xf32>
    %cst_60 = arith.constant 1.000000e+00 : f32
    %178 = vector.broadcast %cst_60 : f32 to vector<1x128xf32>
    %179 = arith.addf %178, %177 : vector<1x128xf32>
    %180 = arith.divf %178, %179 : vector<1x128xf32>
    %181 = vector.extract_strided_slice %174 {offsets = [0, 128], sizes = [1, 128], strides = [1, 1]} : vector<1x512xf32> to vector<1x128xf32>
    %182 = arith.negf %181 : vector<1x128xf32>
    %183 = math.exp %182 : vector<1x128xf32>
    %cst_61 = arith.constant 1.000000e+00 : f32
    %184 = vector.broadcast %cst_61 : f32 to vector<1x128xf32>
    %185 = arith.addf %184, %183 : vector<1x128xf32>
    %186 = arith.divf %184, %185 : vector<1x128xf32>
    %187 = vector.extract_strided_slice %174 {offsets = [0, 256], sizes = [1, 128], strides = [1, 1]} : vector<1x512xf32> to vector<1x128xf32>
    %188 = math.tanh %187 : vector<1x128xf32>
    %189 = vector.extract_strided_slice %174 {offsets = [0, 384], sizes = [1, 128], strides = [1, 1]} : vector<1x512xf32> to vector<1x128xf32>
    %190 = arith.negf %189 : vector<1x128xf32>
    %191 = math.exp %190 : vector<1x128xf32>
    %cst_62 = arith.constant 1.000000e+00 : f32
    %192 = vector.broadcast %cst_62 : f32 to vector<1x128xf32>
    %193 = arith.addf %192, %191 : vector<1x128xf32>
    %194 = arith.divf %192, %193 : vector<1x128xf32>
    %195 = arith.mulf %186, %133 : vector<1x128xf32>
    %196 = arith.mulf %180, %188 : vector<1x128xf32>
    %197 = arith.addf %195, %196 : vector<1x128xf32>
    %198 = math.tanh %197 : vector<1x128xf32>
    %199 = arith.mulf %194, %198 : vector<1x128xf32>
    %c2_63 = arith.constant 2 : index
    %c0_64 = arith.constant 0 : index
    %200 = vector.load %arg8[%c2_63, %c0_64] : memref<8x128xf32, #tpu.memory_space<vmem>>, vector<1x128xf32>
    tpu.vector_store %arg8[%c2_63, %c0_64], %199 {strides = array<i32>} : memref<8x128xf32, #tpu.memory_space<vmem>>, vector<1x128xf32>,
    %c3 = arith.constant 3 : index
    %c0_65 = arith.constant 0 : index
    %201 = vector.load %arg9[%c3, %c0_65] : memref<8x512xf32, #tpu.memory_space<vmem>>, vector<1x512xf32>
    %202 = arith.truncf %166 : vector<1x128xf32> to vector<1x128xbf16>
    %c0_66 = arith.constant 0 : index
    %c0_67 = arith.constant 0 : index
    %203 = vector.load %arg3[%c0_66, %c0_67] : memref<128x512xbf16, #tpu.memory_space<vmem>>, vector<128x512xbf16>
    %cst_68 = arith.constant dense<0.000000e+00> : vector<1x512xf32>
    %204 = tpu.matmul %202, %203, %cst_68 {dimension_numbers = #tpu.dot_dimension_numbers<[1], [0], [0], [1], [0, 0, 1, 1], [], []>} : vector<1x128xbf16>, vector<128x512xbf16>, vector<1x512xf32> -> vector<1x512xf32>
    %205 = arith.addf %201, %204 : vector<1x512xf32>
    %206 = vector.extract_strided_slice %205 {offsets = [0, 0], sizes = [1, 128], strides = [1, 1]} : vector<1x512xf32> to vector<1x128xf32>
    %207 = arith.negf %206 : vector<1x128xf32>
    %208 = math.exp %207 : vector<1x128xf32>
    %cst_69 = arith.constant 1.000000e+00 : f32
    %209 = vector.broadcast %cst_69 : f32 to vector<1x128xf32>
    %210 = arith.addf %209, %208 : vector<1x128xf32>
    %211 = arith.divf %209, %210 : vector<1x128xf32>
    %212 = vector.extract_strided_slice %205 {offsets = [0, 128], sizes = [1, 128], strides = [1, 1]} : vector<1x512xf32> to vector<1x128xf32>
    %213 = arith.negf %212 : vector<1x128xf32>
    %214 = math.exp %213 : vector<1x128xf32>
    %cst_70 = arith.constant 1.000000e+00 : f32
    %215 = vector.broadcast %cst_70 : f32 to vector<1x128xf32>
    %216 = arith.addf %215, %214 : vector<1x128xf32>
    %217 = arith.divf %215, %216 : vector<1x128xf32>
    %218 = vector.extract_strided_slice %205 {offsets = [0, 256], sizes = [1, 128], strides = [1, 1]} : vector<1x512xf32> to vector<1x128xf32>
    %219 = math.tanh %218 : vector<1x128xf32>
    %220 = vector.extract_strided_slice %205 {offsets = [0, 384], sizes = [1, 128], strides = [1, 1]} : vector<1x512xf32> to vector<1x128xf32>
    %221 = arith.negf %220 : vector<1x128xf32>
    %222 = math.exp %221 : vector<1x128xf32>
    %cst_71 = arith.constant 1.000000e+00 : f32
    %223 = vector.broadcast %cst_71 : f32 to vector<1x128xf32>
    %224 = arith.addf %223, %222 : vector<1x128xf32>
    %225 = arith.divf %223, %224 : vector<1x128xf32>
    %226 = arith.mulf %217, %164 : vector<1x128xf32>
    %227 = arith.mulf %211, %219 : vector<1x128xf32>
    %228 = arith.addf %226, %227 : vector<1x128xf32>
    %229 = math.tanh %228 : vector<1x128xf32>
    %230 = arith.mulf %225, %229 : vector<1x128xf32>
    %231 = arith.truncf %230 : vector<1x128xf32> to vector<1x128xbf16>
    %c0_72 = arith.constant 0 : index
    %c0_73 = arith.constant 0 : index
    %232 = vector.load %arg5[%c0_72, %c0_73] : memref<128x512xbf16, #tpu.memory_space<vmem>>, vector<128x512xbf16>
    %cst_74 = arith.constant dense<0.000000e+00> : vector<1x512xf32>
    %233 = tpu.matmul %231, %232, %cst_74 {dimension_numbers = #tpu.dot_dimension_numbers<[1], [0], [0], [1], [0, 0, 1, 1], [], []>} : vector<1x128xbf16>, vector<128x512xbf16>, vector<1x512xf32> -> vector<1x512xf32>
    %234 = arith.truncf %199 : vector<1x128xf32> to vector<1x128xbf16>
    %c0_75 = arith.constant 0 : index
    %c0_76 = arith.constant 0 : index
    %235 = vector.load %arg6[%c0_75, %c0_76] : memref<128x512xbf16, #tpu.memory_space<vmem>>, vector<128x512xbf16>
    %cst_77 = arith.constant dense<0.000000e+00> : vector<1x512xf32>
    %236 = tpu.matmul %234, %235, %cst_77 {dimension_numbers = #tpu.dot_dimension_numbers<[1], [0], [0], [1], [0, 0, 1, 1], [], []>} : vector<1x128xbf16>, vector<128x512xbf16>, vector<1x512xf32> -> vector<1x512xf32>
    %237 = arith.addf %233, %236 : vector<1x512xf32>
    %238 = arith.addf %237, %7 : vector<1x512xf32>
    %239 = vector.extract_strided_slice %238 {offsets = [0, 0], sizes = [1, 128], strides = [1, 1]} : vector<1x512xf32> to vector<1x128xf32>
    %240 = arith.negf %239 : vector<1x128xf32>
    %241 = math.exp %240 : vector<1x128xf32>
    %cst_78 = arith.constant 1.000000e+00 : f32
    %242 = vector.broadcast %cst_78 : f32 to vector<1x128xf32>
    %243 = arith.addf %242, %241 : vector<1x128xf32>
    %244 = arith.divf %242, %243 : vector<1x128xf32>
    %245 = vector.extract_strided_slice %238 {offsets = [0, 128], sizes = [1, 128], strides = [1, 1]} : vector<1x512xf32> to vector<1x128xf32>
    %246 = arith.negf %245 : vector<1x128xf32>
    %247 = math.exp %246 : vector<1x128xf32>
    %cst_79 = arith.constant 1.000000e+00 : f32
    %248 = vector.broadcast %cst_79 : f32 to vector<1x128xf32>
    %249 = arith.addf %248, %247 : vector<1x128xf32>
    %250 = arith.divf %248, %249 : vector<1x128xf32>
    %251 = vector.extract_strided_slice %238 {offsets = [0, 256], sizes = [1, 128], strides = [1, 1]} : vector<1x512xf32> to vector<1x128xf32>
    %252 = math.tanh %251 : vector<1x128xf32>
    %253 = vector.extract_strided_slice %238 {offsets = [0, 384], sizes = [1, 128], strides = [1, 1]} : vector<1x512xf32> to vector<1x128xf32>
    %254 = arith.negf %253 : vector<1x128xf32>
    %255 = math.exp %254 : vector<1x128xf32>
    %cst_80 = arith.constant 1.000000e+00 : f32
    %256 = vector.broadcast %cst_80 : f32 to vector<1x128xf32>
    %257 = arith.addf %256, %255 : vector<1x128xf32>
    %258 = arith.divf %256, %257 : vector<1x128xf32>
    %259 = arith.mulf %250, %197 : vector<1x128xf32>
    %260 = arith.mulf %244, %252 : vector<1x128xf32>
    %261 = arith.addf %259, %260 : vector<1x128xf32>
    %262 = math.tanh %261 : vector<1x128xf32>
    %263 = arith.mulf %258, %262 : vector<1x128xf32>
    %c3_81 = arith.constant 3 : index
    %c0_82 = arith.constant 0 : index
    %264 = vector.load %arg8[%c3_81, %c0_82] : memref<8x128xf32, #tpu.memory_space<vmem>>, vector<1x128xf32>
    tpu.vector_store %arg8[%c3_81, %c0_82], %263 {strides = array<i32>} : memref<8x128xf32, #tpu.memory_space<vmem>>, vector<1x128xf32>,
    %c4 = arith.constant 4 : index
    %c0_83 = arith.constant 0 : index
    %265 = vector.load %arg9[%c4, %c0_83] : memref<8x512xf32, #tpu.memory_space<vmem>>, vector<1x512xf32>
    %266 = arith.truncf %230 : vector<1x128xf32> to vector<1x128xbf16>
    %c0_84 = arith.constant 0 : index
    %c0_85 = arith.constant 0 : index
    %267 = vector.load %arg3[%c0_84, %c0_85] : memref<128x512xbf16, #tpu.memory_space<vmem>>, vector<128x512xbf16>
    %cst_86 = arith.constant dense<0.000000e+00> : vector<1x512xf32>
    %268 = tpu.matmul %266, %267, %cst_86 {dimension_numbers = #tpu.dot_dimension_numbers<[1], [0], [0], [1], [0, 0, 1, 1], [], []>} : vector<1x128xbf16>, vector<128x512xbf16>, vector<1x512xf32> -> vector<1x512xf32>
    %269 = arith.addf %265, %268 : vector<1x512xf32>
    %270 = vector.extract_strided_slice %269 {offsets = [0, 0], sizes = [1, 128], strides = [1, 1]} : vector<1x512xf32> to vector<1x128xf32>
    %271 = arith.negf %270 : vector<1x128xf32>
    %272 = math.exp %271 : vector<1x128xf32>
    %cst_87 = arith.constant 1.000000e+00 : f32
    %273 = vector.broadcast %cst_87 : f32 to vector<1x128xf32>
    %274 = arith.addf %273, %272 : vector<1x128xf32>
    %275 = arith.divf %273, %274 : vector<1x128xf32>
    %276 = vector.extract_strided_slice %269 {offsets = [0, 128], sizes = [1, 128], strides = [1, 1]} : vector<1x512xf32> to vector<1x128xf32>
    %277 = arith.negf %276 : vector<1x128xf32>
    %278 = math.exp %277 : vector<1x128xf32>
    %cst_88 = arith.constant 1.000000e+00 : f32
    %279 = vector.broadcast %cst_88 : f32 to vector<1x128xf32>
    %280 = arith.addf %279, %278 : vector<1x128xf32>
    %281 = arith.divf %279, %280 : vector<1x128xf32>
    %282 = vector.extract_strided_slice %269 {offsets = [0, 256], sizes = [1, 128], strides = [1, 1]} : vector<1x512xf32> to vector<1x128xf32>
    %283 = math.tanh %282 : vector<1x128xf32>
    %284 = vector.extract_strided_slice %269 {offsets = [0, 384], sizes = [1, 128], strides = [1, 1]} : vector<1x512xf32> to vector<1x128xf32>
    %285 = arith.negf %284 : vector<1x128xf32>
    %286 = math.exp %285 : vector<1x128xf32>
    %cst_89 = arith.constant 1.000000e+00 : f32
    %287 = vector.broadcast %cst_89 : f32 to vector<1x128xf32>
    %288 = arith.addf %287, %286 : vector<1x128xf32>
    %289 = arith.divf %287, %288 : vector<1x128xf32>
    %290 = arith.mulf %281, %228 : vector<1x128xf32>
    %291 = arith.mulf %275, %283 : vector<1x128xf32>
    %292 = arith.addf %290, %291 : vector<1x128xf32>
    %293 = math.tanh %292 : vector<1x128xf32>
    %294 = arith.mulf %289, %293 : vector<1x128xf32>
    %295 = arith.truncf %294 : vector<1x128xf32> to vector<1x128xbf16>
    %c0_90 = arith.constant 0 : index
    %c0_91 = arith.constant 0 : index
    %296 = vector.load %arg5[%c0_90, %c0_91] : memref<128x512xbf16, #tpu.memory_space<vmem>>, vector<128x512xbf16>
    %cst_92 = arith.constant dense<0.000000e+00> : vector<1x512xf32>
    %297 = tpu.matmul %295, %296, %cst_92 {dimension_numbers = #tpu.dot_dimension_numbers<[1], [0], [0], [1], [0, 0, 1, 1], [], []>} : vector<1x128xbf16>, vector<128x512xbf16>, vector<1x512xf32> -> vector<1x512xf32>
    %298 = arith.truncf %263 : vector<1x128xf32> to vector<1x128xbf16>
    %c0_93 = arith.constant 0 : index
    %c0_94 = arith.constant 0 : index
    %299 = vector.load %arg6[%c0_93, %c0_94] : memref<128x512xbf16, #tpu.memory_space<vmem>>, vector<128x512xbf16>
    %cst_95 = arith.constant dense<0.000000e+00> : vector<1x512xf32>
    %300 = tpu.matmul %298, %299, %cst_95 {dimension_numbers = #tpu.dot_dimension_numbers<[1], [0], [0], [1], [0, 0, 1, 1], [], []>} : vector<1x128xbf16>, vector<128x512xbf16>, vector<1x512xf32> -> vector<1x512xf32>
    %301 = arith.addf %297, %300 : vector<1x512xf32>
    %302 = arith.addf %301, %7 : vector<1x512xf32>
    %303 = vector.extract_strided_slice %302 {offsets = [0, 0], sizes = [1, 128], strides = [1, 1]} : vector<1x512xf32> to vector<1x128xf32>
    %304 = arith.negf %303 : vector<1x128xf32>
    %305 = math.exp %304 : vector<1x128xf32>
    %cst_96 = arith.constant 1.000000e+00 : f32
    %306 = vector.broadcast %cst_96 : f32 to vector<1x128xf32>
    %307 = arith.addf %306, %305 : vector<1x128xf32>
    %308 = arith.divf %306, %307 : vector<1x128xf32>
    %309 = vector.extract_strided_slice %302 {offsets = [0, 128], sizes = [1, 128], strides = [1, 1]} : vector<1x512xf32> to vector<1x128xf32>
    %310 = arith.negf %309 : vector<1x128xf32>
    %311 = math.exp %310 : vector<1x128xf32>
    %cst_97 = arith.constant 1.000000e+00 : f32
    %312 = vector.broadcast %cst_97 : f32 to vector<1x128xf32>
    %313 = arith.addf %312, %311 : vector<1x128xf32>
    %314 = arith.divf %312, %313 : vector<1x128xf32>
    %315 = vector.extract_strided_slice %302 {offsets = [0, 256], sizes = [1, 128], strides = [1, 1]} : vector<1x512xf32> to vector<1x128xf32>
    %316 = math.tanh %315 : vector<1x128xf32>
    %317 = vector.extract_strided_slice %302 {offsets = [0, 384], sizes = [1, 128], strides = [1, 1]} : vector<1x512xf32> to vector<1x128xf32>
    %318 = arith.negf %317 : vector<1x128xf32>
    %319 = math.exp %318 : vector<1x128xf32>
    %cst_98 = arith.constant 1.000000e+00 : f32
    %320 = vector.broadcast %cst_98 : f32 to vector<1x128xf32>
    %321 = arith.addf %320, %319 : vector<1x128xf32>
    %322 = arith.divf %320, %321 : vector<1x128xf32>
    %323 = arith.mulf %314, %261 : vector<1x128xf32>
    %324 = arith.mulf %308, %316 : vector<1x128xf32>
    %325 = arith.addf %323, %324 : vector<1x128xf32>
    %326 = math.tanh %325 : vector<1x128xf32>
    %327 = arith.mulf %322, %326 : vector<1x128xf32>
    %c4_99 = arith.constant 4 : index
    %c0_100 = arith.constant 0 : index
    %328 = vector.load %arg8[%c4_99, %c0_100] : memref<8x128xf32, #tpu.memory_space<vmem>>, vector<1x128xf32>
    tpu.vector_store %arg8[%c4_99, %c0_100], %327 {strides = array<i32>} : memref<8x128xf32, #tpu.memory_space<vmem>>, vector<1x128xf32>,
    %c5 = arith.constant 5 : index
    %c0_101 = arith.constant 0 : index
    %329 = vector.load %arg9[%c5, %c0_101] : memref<8x512xf32, #tpu.memory_space<vmem>>, vector<1x512xf32>
    %330 = arith.truncf %294 : vector<1x128xf32> to vector<1x128xbf16>
    %c0_102 = arith.constant 0 : index
    %c0_103 = arith.constant 0 : index
    %331 = vector.load %arg3[%c0_102, %c0_103] : memref<128x512xbf16, #tpu.memory_space<vmem>>, vector<128x512xbf16>
    %cst_104 = arith.constant dense<0.000000e+00> : vector<1x512xf32>
    %332 = tpu.matmul %330, %331, %cst_104 {dimension_numbers = #tpu.dot_dimension_numbers<[1], [0], [0], [1], [0, 0, 1, 1], [], []>} : vector<1x128xbf16>, vector<128x512xbf16>, vector<1x512xf32> -> vector<1x512xf32>
    %333 = arith.addf %329, %332 : vector<1x512xf32>
    %334 = vector.extract_strided_slice %333 {offsets = [0, 0], sizes = [1, 128], strides = [1, 1]} : vector<1x512xf32> to vector<1x128xf32>
    %335 = arith.negf %334 : vector<1x128xf32>
    %336 = math.exp %335 : vector<1x128xf32>
    %cst_105 = arith.constant 1.000000e+00 : f32
    %337 = vector.broadcast %cst_105 : f32 to vector<1x128xf32>
    %338 = arith.addf %337, %336 : vector<1x128xf32>
    %339 = arith.divf %337, %338 : vector<1x128xf32>
    %340 = vector.extract_strided_slice %333 {offsets = [0, 128], sizes = [1, 128], strides = [1, 1]} : vector<1x512xf32> to vector<1x128xf32>
    %341 = arith.negf %340 : vector<1x128xf32>
    %342 = math.exp %341 : vector<1x128xf32>
    %cst_106 = arith.constant 1.000000e+00 : f32
    %343 = vector.broadcast %cst_106 : f32 to vector<1x128xf32>
    %344 = arith.addf %343, %342 : vector<1x128xf32>
    %345 = arith.divf %343, %344 : vector<1x128xf32>
    %346 = vector.extract_strided_slice %333 {offsets = [0, 256], sizes = [1, 128], strides = [1, 1]} : vector<1x512xf32> to vector<1x128xf32>
    %347 = math.tanh %346 : vector<1x128xf32>
    %348 = vector.extract_strided_slice %333 {offsets = [0, 384], sizes = [1, 128], strides = [1, 1]} : vector<1x512xf32> to vector<1x128xf32>
    %349 = arith.negf %348 : vector<1x128xf32>
    %350 = math.exp %349 : vector<1x128xf32>
    %cst_107 = arith.constant 1.000000e+00 : f32
    %351 = vector.broadcast %cst_107 : f32 to vector<1x128xf32>
    %352 = arith.addf %351, %350 : vector<1x128xf32>
    %353 = arith.divf %351, %352 : vector<1x128xf32>
    %354 = arith.mulf %345, %292 : vector<1x128xf32>
    %355 = arith.mulf %339, %347 : vector<1x128xf32>
    %356 = arith.addf %354, %355 : vector<1x128xf32>
    %357 = math.tanh %356 : vector<1x128xf32>
    %358 = arith.mulf %353, %357 : vector<1x128xf32>
    %359 = arith.truncf %358 : vector<1x128xf32> to vector<1x128xbf16>
    %c0_108 = arith.constant 0 : index
    %c0_109 = arith.constant 0 : index
    %360 = vector.load %arg5[%c0_108, %c0_109] : memref<128x512xbf16, #tpu.memory_space<vmem>>, vector<128x512xbf16>
    %cst_110 = arith.constant dense<0.000000e+00> : vector<1x512xf32>
    %361 = tpu.matmul %359, %360, %cst_110 {dimension_numbers = #tpu.dot_dimension_numbers<[1], [0], [0], [1], [0, 0, 1, 1], [], []>} : vector<1x128xbf16>, vector<128x512xbf16>, vector<1x512xf32> -> vector<1x512xf32>
    %362 = arith.truncf %327 : vector<1x128xf32> to vector<1x128xbf16>
    %c0_111 = arith.constant 0 : index
    %c0_112 = arith.constant 0 : index
    %363 = vector.load %arg6[%c0_111, %c0_112] : memref<128x512xbf16, #tpu.memory_space<vmem>>, vector<128x512xbf16>
    %cst_113 = arith.constant dense<0.000000e+00> : vector<1x512xf32>
    %364 = tpu.matmul %362, %363, %cst_113 {dimension_numbers = #tpu.dot_dimension_numbers<[1], [0], [0], [1], [0, 0, 1, 1], [], []>} : vector<1x128xbf16>, vector<128x512xbf16>, vector<1x512xf32> -> vector<1x512xf32>
    %365 = arith.addf %361, %364 : vector<1x512xf32>
    %366 = arith.addf %365, %7 : vector<1x512xf32>
    %367 = vector.extract_strided_slice %366 {offsets = [0, 0], sizes = [1, 128], strides = [1, 1]} : vector<1x512xf32> to vector<1x128xf32>
    %368 = arith.negf %367 : vector<1x128xf32>
    %369 = math.exp %368 : vector<1x128xf32>
    %cst_114 = arith.constant 1.000000e+00 : f32
    %370 = vector.broadcast %cst_114 : f32 to vector<1x128xf32>
    %371 = arith.addf %370, %369 : vector<1x128xf32>
    %372 = arith.divf %370, %371 : vector<1x128xf32>
    %373 = vector.extract_strided_slice %366 {offsets = [0, 128], sizes = [1, 128], strides = [1, 1]} : vector<1x512xf32> to vector<1x128xf32>
    %374 = arith.negf %373 : vector<1x128xf32>
    %375 = math.exp %374 : vector<1x128xf32>
    %cst_115 = arith.constant 1.000000e+00 : f32
    %376 = vector.broadcast %cst_115 : f32 to vector<1x128xf32>
    %377 = arith.addf %376, %375 : vector<1x128xf32>
    %378 = arith.divf %376, %377 : vector<1x128xf32>
    %379 = vector.extract_strided_slice %366 {offsets = [0, 256], sizes = [1, 128], strides = [1, 1]} : vector<1x512xf32> to vector<1x128xf32>
    %380 = math.tanh %379 : vector<1x128xf32>
    %381 = vector.extract_strided_slice %366 {offsets = [0, 384], sizes = [1, 128], strides = [1, 1]} : vector<1x512xf32> to vector<1x128xf32>
    %382 = arith.negf %381 : vector<1x128xf32>
    %383 = math.exp %382 : vector<1x128xf32>
    %cst_116 = arith.constant 1.000000e+00 : f32
    %384 = vector.broadcast %cst_116 : f32 to vector<1x128xf32>
    %385 = arith.addf %384, %383 : vector<1x128xf32>
    %386 = arith.divf %384, %385 : vector<1x128xf32>
    %387 = arith.mulf %378, %325 : vector<1x128xf32>
    %388 = arith.mulf %372, %380 : vector<1x128xf32>
    %389 = arith.addf %387, %388 : vector<1x128xf32>
    %390 = math.tanh %389 : vector<1x128xf32>
    %391 = arith.mulf %386, %390 : vector<1x128xf32>
    %c5_117 = arith.constant 5 : index
    %c0_118 = arith.constant 0 : index
    %392 = vector.load %arg8[%c5_117, %c0_118] : memref<8x128xf32, #tpu.memory_space<vmem>>, vector<1x128xf32>
    tpu.vector_store %arg8[%c5_117, %c0_118], %391 {strides = array<i32>} : memref<8x128xf32, #tpu.memory_space<vmem>>, vector<1x128xf32>,
    %c6 = arith.constant 6 : index
    %c0_119 = arith.constant 0 : index
    %393 = vector.load %arg9[%c6, %c0_119] : memref<8x512xf32, #tpu.memory_space<vmem>>, vector<1x512xf32>
    %394 = arith.truncf %358 : vector<1x128xf32> to vector<1x128xbf16>
    %c0_120 = arith.constant 0 : index
    %c0_121 = arith.constant 0 : index
    %395 = vector.load %arg3[%c0_120, %c0_121] : memref<128x512xbf16, #tpu.memory_space<vmem>>, vector<128x512xbf16>
    %cst_122 = arith.constant dense<0.000000e+00> : vector<1x512xf32>
    %396 = tpu.matmul %394, %395, %cst_122 {dimension_numbers = #tpu.dot_dimension_numbers<[1], [0], [0], [1], [0, 0, 1, 1], [], []>} : vector<1x128xbf16>, vector<128x512xbf16>, vector<1x512xf32> -> vector<1x512xf32>
    %397 = arith.addf %393, %396 : vector<1x512xf32>
    %398 = vector.extract_strided_slice %397 {offsets = [0, 0], sizes = [1, 128], strides = [1, 1]} : vector<1x512xf32> to vector<1x128xf32>
    %399 = arith.negf %398 : vector<1x128xf32>
    %400 = math.exp %399 : vector<1x128xf32>
    %cst_123 = arith.constant 1.000000e+00 : f32
    %401 = vector.broadcast %cst_123 : f32 to vector<1x128xf32>
    %402 = arith.addf %401, %400 : vector<1x128xf32>
    %403 = arith.divf %401, %402 : vector<1x128xf32>
    %404 = vector.extract_strided_slice %397 {offsets = [0, 128], sizes = [1, 128], strides = [1, 1]} : vector<1x512xf32> to vector<1x128xf32>
    %405 = arith.negf %404 : vector<1x128xf32>
    %406 = math.exp %405 : vector<1x128xf32>
    %cst_124 = arith.constant 1.000000e+00 : f32
    %407 = vector.broadcast %cst_124 : f32 to vector<1x128xf32>
    %408 = arith.addf %407, %406 : vector<1x128xf32>
    %409 = arith.divf %407, %408 : vector<1x128xf32>
    %410 = vector.extract_strided_slice %397 {offsets = [0, 256], sizes = [1, 128], strides = [1, 1]} : vector<1x512xf32> to vector<1x128xf32>
    %411 = math.tanh %410 : vector<1x128xf32>
    %412 = vector.extract_strided_slice %397 {offsets = [0, 384], sizes = [1, 128], strides = [1, 1]} : vector<1x512xf32> to vector<1x128xf32>
    %413 = arith.negf %412 : vector<1x128xf32>
    %414 = math.exp %413 : vector<1x128xf32>
    %cst_125 = arith.constant 1.000000e+00 : f32
    %415 = vector.broadcast %cst_125 : f32 to vector<1x128xf32>
    %416 = arith.addf %415, %414 : vector<1x128xf32>
    %417 = arith.divf %415, %416 : vector<1x128xf32>
    %418 = arith.mulf %409, %356 : vector<1x128xf32>
    %419 = arith.mulf %403, %411 : vector<1x128xf32>
    %420 = arith.addf %418, %419 : vector<1x128xf32>
    %421 = math.tanh %420 : vector<1x128xf32>
    %422 = arith.mulf %417, %421 : vector<1x128xf32>
    %423 = arith.truncf %422 : vector<1x128xf32> to vector<1x128xbf16>
    %c0_126 = arith.constant 0 : index
    %c0_127 = arith.constant 0 : index
    %424 = vector.load %arg5[%c0_126, %c0_127] : memref<128x512xbf16, #tpu.memory_space<vmem>>, vector<128x512xbf16>
    %cst_128 = arith.constant dense<0.000000e+00> : vector<1x512xf32>
    %425 = tpu.matmul %423, %424, %cst_128 {dimension_numbers = #tpu.dot_dimension_numbers<[1], [0], [0], [1], [0, 0, 1, 1], [], []>} : vector<1x128xbf16>, vector<128x512xbf16>, vector<1x512xf32> -> vector<1x512xf32>
    %426 = arith.truncf %391 : vector<1x128xf32> to vector<1x128xbf16>
    %c0_129 = arith.constant 0 : index
    %c0_130 = arith.constant 0 : index
    %427 = vector.load %arg6[%c0_129, %c0_130] : memref<128x512xbf16, #tpu.memory_space<vmem>>, vector<128x512xbf16>
    %cst_131 = arith.constant dense<0.000000e+00> : vector<1x512xf32>
    %428 = tpu.matmul %426, %427, %cst_131 {dimension_numbers = #tpu.dot_dimension_numbers<[1], [0], [0], [1], [0, 0, 1, 1], [], []>} : vector<1x128xbf16>, vector<128x512xbf16>, vector<1x512xf32> -> vector<1x512xf32>
    %429 = arith.addf %425, %428 : vector<1x512xf32>
    %430 = arith.addf %429, %7 : vector<1x512xf32>
    %431 = vector.extract_strided_slice %430 {offsets = [0, 0], sizes = [1, 128], strides = [1, 1]} : vector<1x512xf32> to vector<1x128xf32>
    %432 = arith.negf %431 : vector<1x128xf32>
    %433 = math.exp %432 : vector<1x128xf32>
    %cst_132 = arith.constant 1.000000e+00 : f32
    %434 = vector.broadcast %cst_132 : f32 to vector<1x128xf32>
    %435 = arith.addf %434, %433 : vector<1x128xf32>
    %436 = arith.divf %434, %435 : vector<1x128xf32>
    %437 = vector.extract_strided_slice %430 {offsets = [0, 128], sizes = [1, 128], strides = [1, 1]} : vector<1x512xf32> to vector<1x128xf32>
    %438 = arith.negf %437 : vector<1x128xf32>
    %439 = math.exp %438 : vector<1x128xf32>
    %cst_133 = arith.constant 1.000000e+00 : f32
    %440 = vector.broadcast %cst_133 : f32 to vector<1x128xf32>
    %441 = arith.addf %440, %439 : vector<1x128xf32>
    %442 = arith.divf %440, %441 : vector<1x128xf32>
    %443 = vector.extract_strided_slice %430 {offsets = [0, 256], sizes = [1, 128], strides = [1, 1]} : vector<1x512xf32> to vector<1x128xf32>
    %444 = math.tanh %443 : vector<1x128xf32>
    %445 = vector.extract_strided_slice %430 {offsets = [0, 384], sizes = [1, 128], strides = [1, 1]} : vector<1x512xf32> to vector<1x128xf32>
    %446 = arith.negf %445 : vector<1x128xf32>
    %447 = math.exp %446 : vector<1x128xf32>
    %cst_134 = arith.constant 1.000000e+00 : f32
    %448 = vector.broadcast %cst_134 : f32 to vector<1x128xf32>
    %449 = arith.addf %448, %447 : vector<1x128xf32>
    %450 = arith.divf %448, %449 : vector<1x128xf32>
    %451 = arith.mulf %442, %389 : vector<1x128xf32>
    %452 = arith.mulf %436, %444 : vector<1x128xf32>
    %453 = arith.addf %451, %452 : vector<1x128xf32>
    %454 = math.tanh %453 : vector<1x128xf32>
    %455 = arith.mulf %450, %454 : vector<1x128xf32>
    %c6_135 = arith.constant 6 : index
    %c0_136 = arith.constant 0 : index
    %456 = vector.load %arg8[%c6_135, %c0_136] : memref<8x128xf32, #tpu.memory_space<vmem>>, vector<1x128xf32>
    tpu.vector_store %arg8[%c6_135, %c0_136], %455 {strides = array<i32>} : memref<8x128xf32, #tpu.memory_space<vmem>>, vector<1x128xf32>,
    %c7 = arith.constant 7 : index
    %c0_137 = arith.constant 0 : index
    %457 = vector.load %arg9[%c7, %c0_137] : memref<8x512xf32, #tpu.memory_space<vmem>>, vector<1x512xf32>
    %458 = arith.truncf %422 : vector<1x128xf32> to vector<1x128xbf16>
    %c0_138 = arith.constant 0 : index
    %c0_139 = arith.constant 0 : index
    %459 = vector.load %arg3[%c0_138, %c0_139] : memref<128x512xbf16, #tpu.memory_space<vmem>>, vector<128x512xbf16>
    %cst_140 = arith.constant dense<0.000000e+00> : vector<1x512xf32>
    %460 = tpu.matmul %458, %459, %cst_140 {dimension_numbers = #tpu.dot_dimension_numbers<[1], [0], [0], [1], [0, 0, 1, 1], [], []>} : vector<1x128xbf16>, vector<128x512xbf16>, vector<1x512xf32> -> vector<1x512xf32>
    %461 = arith.addf %457, %460 : vector<1x512xf32>
    %462 = vector.extract_strided_slice %461 {offsets = [0, 0], sizes = [1, 128], strides = [1, 1]} : vector<1x512xf32> to vector<1x128xf32>
    %463 = arith.negf %462 : vector<1x128xf32>
    %464 = math.exp %463 : vector<1x128xf32>
    %cst_141 = arith.constant 1.000000e+00 : f32
    %465 = vector.broadcast %cst_141 : f32 to vector<1x128xf32>
    %466 = arith.addf %465, %464 : vector<1x128xf32>
    %467 = arith.divf %465, %466 : vector<1x128xf32>
    %468 = vector.extract_strided_slice %461 {offsets = [0, 128], sizes = [1, 128], strides = [1, 1]} : vector<1x512xf32> to vector<1x128xf32>
    %469 = arith.negf %468 : vector<1x128xf32>
    %470 = math.exp %469 : vector<1x128xf32>
    %cst_142 = arith.constant 1.000000e+00 : f32
    %471 = vector.broadcast %cst_142 : f32 to vector<1x128xf32>
    %472 = arith.addf %471, %470 : vector<1x128xf32>
    %473 = arith.divf %471, %472 : vector<1x128xf32>
    %474 = vector.extract_strided_slice %461 {offsets = [0, 256], sizes = [1, 128], strides = [1, 1]} : vector<1x512xf32> to vector<1x128xf32>
    %475 = math.tanh %474 : vector<1x128xf32>
    %476 = vector.extract_strided_slice %461 {offsets = [0, 384], sizes = [1, 128], strides = [1, 1]} : vector<1x512xf32> to vector<1x128xf32>
    %477 = arith.negf %476 : vector<1x128xf32>
    %478 = math.exp %477 : vector<1x128xf32>
    %cst_143 = arith.constant 1.000000e+00 : f32
    %479 = vector.broadcast %cst_143 : f32 to vector<1x128xf32>
    %480 = arith.addf %479, %478 : vector<1x128xf32>
    %481 = arith.divf %479, %480 : vector<1x128xf32>
    %482 = arith.mulf %473, %420 : vector<1x128xf32>
    %483 = arith.mulf %467, %475 : vector<1x128xf32>
    %484 = arith.addf %482, %483 : vector<1x128xf32>
    %485 = math.tanh %484 : vector<1x128xf32>
    %486 = arith.mulf %481, %485 : vector<1x128xf32>
    %487 = arith.truncf %486 : vector<1x128xf32> to vector<1x128xbf16>
    %c0_144 = arith.constant 0 : index
    %c0_145 = arith.constant 0 : index
    %488 = vector.load %arg5[%c0_144, %c0_145] : memref<128x512xbf16, #tpu.memory_space<vmem>>, vector<128x512xbf16>
    %cst_146 = arith.constant dense<0.000000e+00> : vector<1x512xf32>
    %489 = tpu.matmul %487, %488, %cst_146 {dimension_numbers = #tpu.dot_dimension_numbers<[1], [0], [0], [1], [0, 0, 1, 1], [], []>} : vector<1x128xbf16>, vector<128x512xbf16>, vector<1x512xf32> -> vector<1x512xf32>
    %490 = arith.truncf %455 : vector<1x128xf32> to vector<1x128xbf16>
    %c0_147 = arith.constant 0 : index
    %c0_148 = arith.constant 0 : index
    %491 = vector.load %arg6[%c0_147, %c0_148] : memref<128x512xbf16, #tpu.memory_space<vmem>>, vector<128x512xbf16>
    %cst_149 = arith.constant dense<0.000000e+00> : vector<1x512xf32>
    %492 = tpu.matmul %490, %491, %cst_149 {dimension_numbers = #tpu.dot_dimension_numbers<[1], [0], [0], [1], [0, 0, 1, 1], [], []>} : vector<1x128xbf16>, vector<128x512xbf16>, vector<1x512xf32> -> vector<1x512xf32>
    %493 = arith.addf %489, %492 : vector<1x512xf32>
    %494 = arith.addf %493, %7 : vector<1x512xf32>
    %495 = vector.extract_strided_slice %494 {offsets = [0, 0], sizes = [1, 128], strides = [1, 1]} : vector<1x512xf32> to vector<1x128xf32>
    %496 = arith.negf %495 : vector<1x128xf32>
    %497 = math.exp %496 : vector<1x128xf32>
    %cst_150 = arith.constant 1.000000e+00 : f32
    %498 = vector.broadcast %cst_150 : f32 to vector<1x128xf32>
    %499 = arith.addf %498, %497 : vector<1x128xf32>
    %500 = arith.divf %498, %499 : vector<1x128xf32>
    %501 = vector.extract_strided_slice %494 {offsets = [0, 128], sizes = [1, 128], strides = [1, 1]} : vector<1x512xf32> to vector<1x128xf32>
    %502 = arith.negf %501 : vector<1x128xf32>
    %503 = math.exp %502 : vector<1x128xf32>
    %cst_151 = arith.constant 1.000000e+00 : f32
    %504 = vector.broadcast %cst_151 : f32 to vector<1x128xf32>
    %505 = arith.addf %504, %503 : vector<1x128xf32>
    %506 = arith.divf %504, %505 : vector<1x128xf32>
    %507 = vector.extract_strided_slice %494 {offsets = [0, 256], sizes = [1, 128], strides = [1, 1]} : vector<1x512xf32> to vector<1x128xf32>
    %508 = math.tanh %507 : vector<1x128xf32>
    %509 = vector.extract_strided_slice %494 {offsets = [0, 384], sizes = [1, 128], strides = [1, 1]} : vector<1x512xf32> to vector<1x128xf32>
    %510 = arith.negf %509 : vector<1x128xf32>
    %511 = math.exp %510 : vector<1x128xf32>
    %cst_152 = arith.constant 1.000000e+00 : f32
    %512 = vector.broadcast %cst_152 : f32 to vector<1x128xf32>
    %513 = arith.addf %512, %511 : vector<1x128xf32>
    %514 = arith.divf %512, %513 : vector<1x128xf32>
    %515 = arith.mulf %506, %453 : vector<1x128xf32>
    %516 = arith.mulf %500, %508 : vector<1x128xf32>
    %517 = arith.addf %515, %516 : vector<1x128xf32>
    %518 = math.tanh %517 : vector<1x128xf32>
    %519 = arith.mulf %514, %518 : vector<1x128xf32>
    %c7_153 = arith.constant 7 : index
    %c0_154 = arith.constant 0 : index
    %520 = vector.load %arg8[%c7_153, %c0_154] : memref<8x128xf32, #tpu.memory_space<vmem>>, vector<1x128xf32>
    tpu.vector_store %arg8[%c7_153, %c0_154], %519 {strides = array<i32>} : memref<8x128xf32, #tpu.memory_space<vmem>>, vector<1x128xf32>,
    return
  }
  func.func @transform_0(%arg0: i32) -> (i32, i32) {
    %c0_i32 = arith.constant 0 : i32
    %c0_i32_0 = arith.constant 0 : i32
    %c0_i32_1 = arith.constant 0 : i32
    return %c0_i32, %c0_i32_0 : i32, i32
  }
  func.func @transform_1(%arg0: i32) -> (i32, i32) {
    %c0_i32 = arith.constant 0 : i32
    %c0_i32_0 = arith.constant 0 : i32
    %c0_i32_1 = arith.constant 0 : i32
    return %c0_i32, %c0_i32_0 : i32, i32
  }
  func.func @transform_2(%arg0: i32) -> (i32, i32) {
    %c0_i32 = arith.constant 0 : i32
    %c0_i32_0 = arith.constant 0 : i32
    %c0_i32_1 = arith.constant 0 : i32
    return %c0_i32, %c0_i32_0 : i32, i32
  }
  func.func @transform_3(%arg0: i32) -> (i32, i32) {
    %c0_i32 = arith.constant 0 : i32
    %c0_i32_0 = arith.constant 0 : i32
    %c0_i32_1 = arith.constant 0 : i32
    return %c0_i32, %c0_i32_0 : i32, i32
  }
  func.func @transform_4(%arg0: i32) -> (i32, i32) {
    %c0_i32 = arith.constant 0 : i32
    %c0_i32_0 = arith.constant 0 : i32
    %c0_i32_1 = arith.constant 0 : i32
    return %c0_i32, %c0_i32_0 : i32, i32
  }
  func.func @transform_5(%arg0: i32) -> (i32, i32) {
    %c0_i32 = arith.constant 0 : i32
    %c0_i32_0 = arith.constant 0 : i32
    %c0_i32_1 = arith.constant 0 : i32
    return %c0_i32, %c0_i32_0 : i32, i32
  }
  func.func @transform_6(%arg0: i32) -> (i32, i32) {
    %c0_i32 = arith.constant 0 : i32
    %c0_i32_0 = arith.constant 0 : i32
    %c0_i32_1 = arith.constant 0 : i32
    return %c0_i32, %c0_i32_0 : i32, i32
  }
  func.func @transform_7(%arg0: i32) -> (i32, i32) {
    %c0_i32 = arith.constant 0 : i32
    %c0_i32_0 = arith.constant 0 : i32
    %c0_i32_1 = arith.constant 0 : i32
    return %c0_i32, %c0_i32_0 : i32, i32
  }
}

</mosaic_0001>

<bundles_post_ra>
// kernel: tpu_custom_call.1
= control target key start
LH: loop header
LB: loop body
LE: loop exit
PB: predicated region body
PF: predicated region fallthrough
CT: control target
= control target key end

     0   :  { %12 = vsyncpa [#allocation4], 0  ;;  %s11311_s0 = inlined_call_operand.hbm [shape: bf16[8,64], index: 0, kind: input, shape index: {}]   ;;  %s11312_s1 = inlined_call_operand.hbm [shape: bf16[64,512], index: 1, kind: input, shape index: {}]   ;;  %s11313_s2 = inlined_call_operand.hbm [shape: bf16[128,512], index: 2, kind: input, shape index: {}]   ;;  %s11314_s3 = inlined_call_operand.vmem [shape: f32[1,512], index: 3, kind: input, shape index: {}]   ;;  %s11315_s4 = inlined_call_operand.hbm [shape: bf16[128,512], index: 4, kind: input, shape index: {}]   ;;  %s11316_s5 = inlined_call_operand.hbm [shape: bf16[128,512], index: 5, kind: input, shape index: {}]   ;;  %s11317_s6 = inlined_call_operand.vmem [shape: f32[1,512], index: 6, kind: input, shape index: {}]   ;;  %s11318_s7 = inlined_call_operand.hbm [shape: f32[8,128], index: 7, kind: output, shape index: {}]  }
   0x1   :  { %13 = vsyncpa [#allocation7], 0 }
   0x2   :  { %14 = vsyncpa [#allocation10], 0 }
   0x3   :  { %15 = vsyncpa [#allocation5], 0  ;;  %s9540_s24 = smov [#allocation6]   ;;  %s9400_s28 = scalar_lea.hbm %s11312_s1, 2048 }
   0x4   :  { %s31_s25 = sshll.u32 %s9540_s24, 4  ;;  %p9401_p0 = scmp.ne.s32.totalorder %s11312_s1, %s9400_s28  ;;  %s32_s25 = int_to_ptr.vmem [resolvable:$true] %s31_s25 }
   0x5   :  { %p9404_p1 = scmp.lt.u32.totalorder %s9400_s28, %s11312_s1 }
   0x7   :  { %p9406_p2 = pnand %p9404_p1, %p9401_p0 }
   0x9   :  { %9409 = shalt.err (!%p9406_p2)
}
   0xa   :  { %s9410_s10 = scalar_lea.vmem %s32_s25, 2048  ;;  %p9415_p4 = scmp.lt.s32.totalorder %s32_s25, %s32_s25 }
   0xb   :  { %p9411_p3 = scmp.ne.s32.totalorder %s32_s25, %s9410_s10  ;;  %p9416_p5 = scmp.lt.s32.totalorder %s9410_s10, %s9410_s10 }
   0xd   :  { %p9417_p6 = por %p9416_p5, %p9415_p4 }
   0xf   :  { %p9418_p7 = pnand %p9417_p6, %p9411_p3 }
  0x11   :  { %9421 = shalt.err (!%p9418_p7)
}
  0x12   :  { %s9541_s11 = smov 256   ;;  %s9542_s12 = smov 16  }
  0x13   :  { %37 = dma.hbm_to_vmem [thread:$0]  %s11312_s1, 2048, %s32_s25, [#allocation7], %s9541_s11, %s9541_s11, %s9542_s12  }
  0x14   :  { %s9543_s15 = smov [#allocation9]   ;;  %s9544_s17 = smov [#allocation3]  }
  0x15   :  { %s57_s16 = sshll.u32 %s9543_s15, 4  ;;  %s22_s18 = sshll.u32 %s9544_s17, 4  ;;  %s58_s16 = int_to_ptr.vmem [resolvable:$true] %s57_s16  ;;  %s23_s18 = int_to_ptr.vmem [resolvable:$true] %s22_s18 }
  0x16   :  { %s9422_s21 = scalar_lea.hbm %s11315_s4, 4096 }
  0x17   :  { %p9423_p8 = scmp.ne.s32.totalorder %s11315_s4, %s9422_s21  ;;  %p9426_p9 = scmp.lt.u32.totalorder %s9422_s21, %s11315_s4 }
  0x19   :  { %p9428_p10 = pnand %p9426_p9, %p9423_p8 }
  0x1b   :  { %9431 = shalt.err (!%p9428_p10)
}
  0x1c   :  { %s9432_s1 = scalar_lea.vmem %s58_s16, 4096  ;;  %p9437_p12 = scmp.lt.s32.totalorder %s58_s16, %s58_s16 }
  0x1d   :  { %p9433_p11 = scmp.ne.s32.totalorder %s58_s16, %s9432_s1  ;;  %p9438_p13 = scmp.lt.s32.totalorder %s9432_s1, %s9432_s1 }
  0x1f   :  { %p9439_p0 = por %p9438_p13, %p9437_p12 }
  0x21   :  { %p9440_p1 = pnand %p9439_p0, %p9433_p11 }
  0x23   :  { %9443 = shalt.err (!%p9440_p1)
}
  0x24   :  { %63 = dma.hbm_to_vmem [thread:$0]  %s11315_s4, 4096, %s58_s16, [#allocation10], %s9541_s11, %s9541_s11, %s9542_s12  }
  0x25   :  { %s9444_s30 = scalar_lea.hbm %s11311_s0, 64 }
  0x26   :  { %p9445_p2 = scmp.ne.s32.totalorder %s11311_s0, %s9444_s30  ;;  %p9448_p3 = scmp.lt.u32.totalorder %s9444_s30, %s11311_s0 }
  0x28   :  { %p9450_p4 = pnand %p9448_p3, %p9445_p2 }
  0x2a   :  { %9453 = shalt.err (!%p9450_p4)
}
  0x2b   :  { %s9454_s14 = scalar_lea.vmem %s23_s18, 64  ;;  %p9459_p6 = scmp.lt.s32.totalorder %s23_s18, %s23_s18 }
  0x2c   :  { %p9455_p5 = scmp.ne.s32.totalorder %s23_s18, %s9454_s14  ;;  %p9460_p7 = scmp.lt.s32.totalorder %s9454_s14, %s9454_s14 }
  0x2e   :  { %p9461_p8 = por %p9460_p7, %p9459_p6 }
  0x30   :  { %p9462_p9 = pnand %p9461_p8, %p9455_p5 }
  0x32   :  { %9465 = shalt.err (!%p9462_p9)
}
  0x33   :  { %25 = dma.hbm_to_vmem [thread:$0]  %s11311_s0, 64, %s23_s18, [#allocation4]  }
  0x34   :  { %s9545_s16 = smov [#allocation8]   ;;  %s9546_s19 = smov [#allocation11]  }
  0x35   :  { %s43_s17 = sshll.u32 %s9545_s16, 4  ;;  %s69_s20 = sshll.u32 %s9546_s19, 4  ;;  %s44_s17 = int_to_ptr.vmem [resolvable:$true] %s43_s17  ;;  %s70_s20 = int_to_ptr.vmem [resolvable:$true] %s69_s20 }
  0x36   :  { %s9466_s23 = scalar_lea.hbm %s11313_s2, 4096 }
  0x37   :  { %p9467_p10 = scmp.ne.s32.totalorder %s11313_s2, %s9466_s23  ;;  %p9470_p11 = scmp.lt.u32.totalorder %s9466_s23, %s11313_s2 }
  0x39   :  { %p9472_p12 = pnand %p9470_p11, %p9467_p10 }
  0x3b   :  { %9475 = shalt.err (!%p9472_p12)
}
  0x3c   :  { %s9476_s0 = scalar_lea.vmem %s44_s17, 4096  ;;  %p9481_p0 = scmp.lt.s32.totalorder %s44_s17, %s44_s17 }
  0x3d   :  { %p9477_p13 = scmp.ne.s32.totalorder %s44_s17, %s9476_s0  ;;  %p9482_p1 = scmp.lt.s32.totalorder %s9476_s0, %s9476_s0 }
  0x3f   :  { %p9483_p2 = por %p9482_p1, %p9481_p0 }
  0x41   :  { %p9484_p3 = pnand %p9483_p2, %p9477_p13 }
  0x43   :  { %9487 = shalt.err (!%p9484_p3)
}
  0x44   :  { %49 = dma.hbm_to_vmem [thread:$0]  %s11313_s2, 4096, %s44_s17, [#allocation7], %s9541_s11, %s9541_s11, %s9542_s12  }
  0x45   :  { %s9488_s30 = scalar_lea.hbm %s11316_s5, 4096 }
  0x46   :  { %p9489_p4 = scmp.ne.s32.totalorder %s11316_s5, %s9488_s30  ;;  %p9492_p5 = scmp.lt.u32.totalorder %s9488_s30, %s11316_s5 }
  0x48   :  { %p9494_p6 = pnand %p9492_p5, %p9489_p4 }
  0x4a   :  { %9497 = shalt.err (!%p9494_p6)
}
  0x4b   :  { %s9498_s14 = scalar_lea.vmem %s70_s20, 4096  ;;  %p9503_p8 = scmp.lt.s32.totalorder %s70_s20, %s70_s20 }
  0x4c   :  { %p9499_p7 = scmp.ne.s32.totalorder %s70_s20, %s9498_s14  ;;  %p9504_p9 = scmp.lt.s32.totalorder %s9498_s14, %s9498_s14 }
  0x4e   :  { %p9505_p10 = por %p9504_p9, %p9503_p8 }
  0x50   :  { %p9506_p11 = pnand %p9505_p10, %p9499_p7 }
  0x52   :  { %9509 = shalt.err (!%p9506_p11)
}
  0x53   :  { %75 = dma.hbm_to_vmem [thread:$0]  %s11316_s5, 4096, %s70_s20, [#allocation10], %s9541_s11, %s9541_s11, %s9542_s12  }
  0x54   :  { %9532 = dma.done.wait [#allocation4], 64  }
  0x55   :  { %9533 = vsyncadd [#allocation4], 4294967232 }
  0x56   :  { %9534 = dma.done.wait [#allocation7], 6144  }
  0x57   :  { %9535 = vsyncadd [#allocation7], 4294961152 }
  0x58   :  { %9536 = dma.done.wait [#allocation10], 8192  }
  0x59   :  { %9537 = vsyncadd [#allocation10], 4294959104  ;;  %v11319_v0 = vmov 0   ;;  %v8512_v1 = vld [vmem:[#allocation6 + $0x4] ss:$16 sps:$4 sm:$0xff]   ;;  %vm213_vm0 = vcmask 523264  }
  0x5a   :  { %249 = vmatprep.mubr.bf16.mxu0 %v11319_v0  ;;  %290 = vmatprep.mubr.bf16.mxu1 %v11319_v0  ;;  %v8514_v2 = vld [vmem:[#allocation6 + $0xc] ss:$16 sps:$4 sm:$0xff]   ;;  %v8516_v3 = vld [vmem:[#allocation6] ss:$16 sps:$4 sm:$0xff]   ;;  %v8517_v4 = vld [vmem:[#allocation6 + $0x8] ss:$16 sps:$4 sm:$0xff]  }
  0x5b   :  { %217 = vmatprep.subr.bf16.mxu0 %v8512_v1  ;;  %258 = vmatprep.subr.bf16.mxu1 %v8514_v2  ;;  %v8518_v5 = vld [vmem:[#allocation6 + $0x24] ss:$16 sps:$4 sm:$0xff]   ;;  %v8520_v6 = vld [vmem:[#allocation6 + $0x2c] ss:$16 sps:$4 sm:$0xff]   ;;  %v8522_v7 = vld [vmem:[#allocation6 + $0x20] ss:$16 sps:$4 sm:$0xff]  }
  0x5c   :  { %218 = vmatpush1.bf16.msra.mxu0 %v8516_v3  ;;  %259 = vmatpush1.bf16.msra.mxu1 %v8517_v4  ;;  %v8523_v8 = vld [vmem:[#allocation6 + $0x28] ss:$16 sps:$4 sm:$0xff]   ;;  %v8524_v9 = vld [vmem:[#allocation6 + $0x44] ss:$16 sps:$4 sm:$0xff]   ;;  %v8526_v10 = vld [vmem:[#allocation6 + $0x4c] ss:$16 sps:$4 sm:$0xff]  }
  0x5d   :  { %219 = vmatprep.subr.bf16.mxu0 %v8518_v5  ;;  %260 = vmatprep.subr.bf16.mxu1 %v8520_v6  ;;  %v8528_v11 = vld [vmem:[#allocation6 + $0x40] ss:$16 sps:$4 sm:$0xff]   ;;  %v8529_v12 = vld [vmem:[#allocation6 + $0x48] ss:$16 sps:$4 sm:$0xff]   ;;  %v8530_v13 = vld [vmem:[#allocation6 + $0x64] ss:$16 sps:$4 sm:$0xff]  }
  0x5e   :  { %v8532_v14 = vld [vmem:[#allocation6 + $0x6c] ss:$16 sps:$4 sm:$0xff]   ;;  %v8534_v15 = vld [vmem:[#allocation6 + $0x60] ss:$16 sps:$4 sm:$0xff]   ;;  %v8535_v16 = vld [vmem:[#allocation6 + $0x68] ss:$16 sps:$4 sm:$0xff]  }
  0x5f   :  { %v8538_v17 = vld [vmem:[#allocation8 + $0x4] ss:$16 sps:$4 sm:$0xff]   ;;  %v8541_v18 = vld [vmem:[#allocation8 + $0xc] ss:$16 sps:$4 sm:$0xff]   ;;  %v8536_v20 = vld [vmem:[#allocation8] ss:$16 sps:$4 sm:$0xff]  }
  0x60   :  { %220 = vmatpush1.bf16.msra.mxu0 %v8522_v7  ;;  %261 = vmatpush1.bf16.msra.mxu1 %v8523_v8  ;;  %v94_v19 = vld [vmem:[#allocation3] sm:$0xf]  ;;  %v8539_v21 = vld [vmem:[#allocation8 + $0x8] ss:$16 sps:$4 sm:$0xff]   ;;  %v8544_v22 = vld [vmem:[#allocation8 + $0x24] ss:$16 sps:$4 sm:$0xff]  }
  0x61   :  { %221 = vmatprep.subr.bf16.mxu0 %v8524_v9  ;;  %262 = vmatprep.subr.bf16.mxu1 %v8526_v10  ;;  %v8547_v23 = vld [vmem:[#allocation8 + $0x2c] ss:$16 sps:$4 sm:$0xff]   ;;  %v8542_v24 = vld [vmem:[#allocation8 + $0x20] ss:$16 sps:$4 sm:$0xff]   ;;  %v8545_v25 = vld [vmem:[#allocation8 + $0x28] ss:$16 sps:$4 sm:$0xff]  }
  0x62   :  { %v8550_v26 = vld [vmem:[#allocation8 + $0x44] ss:$16 sps:$4 sm:$0xff]   ;;  %v8553_v27 = vld [vmem:[#allocation8 + $0x4c] ss:$16 sps:$4 sm:$0xff]   ;;  %v8548_v28 = vld [vmem:[#allocation8 + $0x40] ss:$16 sps:$4 sm:$0xff]  }
  0x63   :  { %v8551_v29 = vld [vmem:[#allocation8 + $0x48] ss:$16 sps:$4 sm:$0xff]   ;;  %v8556_v30 = vld [vmem:[#allocation8 + $0x64] ss:$16 sps:$4 sm:$0xff]   ;;  %v8559_v31 = vld [vmem:[#allocation8 + $0x6c] ss:$16 sps:$4 sm:$0xff]  }
  0x64   :  { %222 = vmatpush1.bf16.msra.mxu0 %v8528_v11  ;;  %263 = vmatpush1.bf16.msra.mxu1 %v8529_v12  ;;  %v8554_v32 = vld [vmem:[#allocation8 + $0x60] ss:$16 sps:$4 sm:$0xff]   ;;  %v8557_v33 = vld [vmem:[#allocation8 + $0x68] ss:$16 sps:$4 sm:$0xff]   ;;  %v8562_v34 = vld [vmem:[#allocation8 + $0x84] ss:$16 sps:$4 sm:$0xff]  }
  0x65   :  { %223 = vmatprep.subr.bf16.mxu0 %v8530_v13  ;;  %264 = vmatprep.subr.bf16.mxu1 %v8532_v14  ;;  %v8565_v35 = vld [vmem:[#allocation8 + $0x8c] ss:$16 sps:$4 sm:$0xff]   ;;  %v8560_v36 = vld [vmem:[#allocation8 + $0x80] ss:$16 sps:$4 sm:$0xff]   ;;  %v8563_v37 = vld [vmem:[#allocation8 + $0x88] ss:$16 sps:$4 sm:$0xff]  }
  0x66   :  { %v8568_v38 = vld [vmem:[#allocation8 + $0xa4] ss:$16 sps:$4 sm:$0xff]   ;;  %v8571_v39 = vld [vmem:[#allocation8 + $0xac] ss:$16 sps:$4 sm:$0xff]   ;;  %v8566_v40 = vld [vmem:[#allocation8 + $0xa0] ss:$16 sps:$4 sm:$0xff]  }
  0x67   :  { %v8569_v41 = vld [vmem:[#allocation8 + $0xa8] ss:$16 sps:$4 sm:$0xff]   ;;  %v8574_v42 = vld [vmem:[#allocation8 + $0xc4] ss:$16 sps:$4 sm:$0xff]   ;;  %v8577_v43 = vld [vmem:[#allocation8 + $0xcc] ss:$16 sps:$4 sm:$0xff]  }
  0x68   :  { %224 = vmatpush1.bf16.msra.mxu0 %v8534_v15  ;;  %265 = vmatpush1.bf16.msra.mxu1 %v8535_v16  ;;  %v8572_v44 = vld [vmem:[#allocation8 + $0xc0] ss:$16 sps:$4 sm:$0xff]   ;;  %v8575_v45 = vld [vmem:[#allocation8 + $0xc8] ss:$16 sps:$4 sm:$0xff]   ;;  %v8580_v46 = vld [vmem:[#allocation8 + $0xe4] ss:$16 sps:$4 sm:$0xff]  }
  0x69   :  { %497 = vmatprep.subr.bf16.mxu0 %v8538_v17  ;;  %538 = vmatprep.subr.bf16.mxu1 %v8541_v18  ;;  %v8583_v47 = vld [vmem:[#allocation8 + $0xec] ss:$16 sps:$4 sm:$0xff]   ;;  %v8578_v48 = vld [vmem:[#allocation8 + $0xe0] ss:$16 sps:$4 sm:$0xff]   ;;  %v8581_v49 = vld [vmem:[#allocation8 + $0xe8] ss:$16 sps:$4 sm:$0xff]  }
  0x6a   :  { %v9670_v50 = vld [vmem:[#allocation11] ss:$16 sps:$4 sm:$0xff]   ;;  %v9672_v51 = vld [vmem:[#allocation11 + $0x4] ss:$16 sps:$4 sm:$0xff]   ;;  %v9674_v52 = vld [vmem:[#allocation11 + $0x8] ss:$16 sps:$4 sm:$0xff]  }
  0x6b   :  { %7684 = vmatmul.mubr.msk.bf16.vlgmr.msra.gmra.mrb[0].mxu0 %vm213_vm0, %v94_v19  ;;  %7685 = vmatmul.mubr.msk.bf16.vlgmr.msra.gmra.mrb[0].mxu1 %vm213_vm0, %v94_v19  ;;  %v9676_v53 = vld [vmem:[#allocation11 + $0xc] ss:$16 sps:$4 sm:$0xff]   ;;  %v9678_v54 = vld [vmem:[#allocation11 + $0x20] ss:$16 sps:$4 sm:$0xff]   ;;  %v9680_v55 = vld [vmem:[#allocation11 + $0x24] ss:$16 sps:$4 sm:$0xff]  }
  0x6c   :  { %498 = vmatpush1.bf16.msra.mxu0 %v8536_v20  ;;  %539 = vmatpush1.bf16.msra.mxu1 %v8539_v21  ;;  %v9683_v56 = vld [vmem:[#allocation11 + $0x28] ss:$16 sps:$4 sm:$0xff]   ;;  %v9685_v57 = vld [vmem:[#allocation11 + $0x2c] ss:$16 sps:$4 sm:$0xff]   ;;  %v9694_v58 = vld [vmem:[#allocation11 + $0x44] ss:$16 sps:$4 sm:$0xff]  }
  0x6d   :  { %499 = vmatprep.subr.bf16.mxu0 %v8544_v22  ;;  %540 = vmatprep.subr.bf16.mxu1 %v8547_v23  ;;  %v9696_v59 = vld [vmem:[#allocation11 + $0x4c] ss:$16 sps:$4 sm:$0xff]   ;;  %v9698_v60 = vld [vmem:[#allocation11 + $0x40] ss:$16 sps:$4 sm:$0xff]   ;;  %v9700_v61 = vld [vmem:[#allocation11 + $0x48] ss:$16 sps:$4 sm:$0xff]  }
  0x6e   :  { %529 = vmatprep.mubr.bf16.mxu0 %v11319_v0  ;;  %570 = vmatprep.mubr.bf16.mxu1 %v11319_v0  ;;  %v9706_v62 = vld [vmem:[#allocation11 + $0x64] ss:$16 sps:$4 sm:$0xff]   ;;  %v9708_v63 = vld [vmem:[#allocation11 + $0x6c] ss:$16 sps:$4 sm:$0xff]   ;;  %v9710_v1 = vld [vmem:[#allocation11 + $0x60] ss:$16 sps:$4 sm:$0xff]  }
  0x6f   :  { %v9712_v2 = vld [vmem:[#allocation11 + $0x68] ss:$16 sps:$4 sm:$0xff]   ;;  %v9718_v3 = vld [vmem:[#allocation11 + $0x84] ss:$16 sps:$4 sm:$0xff]   ;;  %v9720_v4 = vld [vmem:[#allocation11 + $0x8c] ss:$16 sps:$4 sm:$0xff]  }
  0x70   :  { %500 = vmatpush1.bf16.msra.mxu0 %v8542_v24  ;;  %541 = vmatpush1.bf16.msra.mxu1 %v8545_v25  ;;  %v9722_v5 = vld [vmem:[#allocation11 + $0x80] ss:$16 sps:$4 sm:$0xff]   ;;  %v9724_v6 = vld [vmem:[#allocation11 + $0x88] ss:$16 sps:$4 sm:$0xff]   ;;  %v9730_v7 = vld [vmem:[#allocation11 + $0xa4] ss:$16 sps:$4 sm:$0xff]  }
  0x71   :  { %501 = vmatprep.subr.bf16.mxu0 %v8550_v26  ;;  %542 = vmatprep.subr.bf16.mxu1 %v8553_v27  ;;  %v9732_v8 = vld [vmem:[#allocation11 + $0xac] ss:$16 sps:$4 sm:$0xff]   ;;  %v9734_v9 = vld [vmem:[#allocation11 + $0xa0] ss:$16 sps:$4 sm:$0xff]   ;;  %v9736_v10 = vld [vmem:[#allocation11 + $0xa8] ss:$16 sps:$4 sm:$0xff]  }
  0x72   :  { %v9742_v11 = vld [vmem:[#allocation11 + $0xc4] ss:$16 sps:$4 sm:$0xff]   ;;  %v9744_v12 = vld [vmem:[#allocation11 + $0xcc] ss:$16 sps:$4 sm:$0xff]   ;;  %v9746_v13 = vld [vmem:[#allocation11 + $0xc0] ss:$16 sps:$4 sm:$0xff]  }
  0x73   :  { %v9748_v14 = vld [vmem:[#allocation11 + $0xc8] ss:$16 sps:$4 sm:$0xff]   ;;  %v9754_v15 = vld [vmem:[#allocation11 + $0xe4] ss:$16 sps:$4 sm:$0xff]   ;;  %v9756_v16 = vld [vmem:[#allocation11 + $0xec] ss:$16 sps:$4 sm:$0xff]  }
  0x74   :  { %502 = vmatpush1.bf16.msra.mxu0 %v8548_v28  ;;  %543 = vmatpush1.bf16.msra.mxu1 %v8551_v29  ;;  %v9758_v17 = vld [vmem:[#allocation11 + $0xe0] ss:$16 sps:$4 sm:$0xff]   ;;  %v9760_v18 = vld [vmem:[#allocation11 + $0xe8] ss:$16 sps:$4 sm:$0xff]   ;;  %v9768_v19 = vld [vmem:[#allocation9 + $0x4] ss:$16 sps:$4 sm:$0xff]  }
  0x75   :  { %503 = vmatprep.subr.bf16.mxu0 %v8556_v30  ;;  %544 = vmatprep.subr.bf16.mxu1 %v8559_v31  ;;  %v9770_v20 = vld [vmem:[#allocation9 + $0xc] ss:$16 sps:$4 sm:$0xff]   ;;  %v9772_v21 = vld [vmem:[#allocation9] ss:$16 sps:$4 sm:$0xff]   ;;  %v9774_v22 = vld [vmem:[#allocation9 + $0x8] ss:$16 sps:$4 sm:$0xff]  }
  0x76   :  { %v9782_v23 = vld [vmem:[#allocation9 + $0x20] ss:$16 sps:$4 sm:$0xff]   ;;  %v9784_v24 = vld [vmem:[#allocation9 + $0x24] ss:$16 sps:$4 sm:$0xff]   ;;  %v9786_v25 = vld [vmem:[#allocation9 + $0x28] ss:$16 sps:$4 sm:$0xff]  }
  0x77   :  { %v9788_v26 = vld [vmem:[#allocation9 + $0x2c] ss:$16 sps:$4 sm:$0xff]   ;;  %v9790_v27 = vld [vmem:[#allocation9 + $0x44] ss:$16 sps:$4 sm:$0xff]   ;;  %v9797_v29 = vld [vmem:[#allocation9 + $0x40] ss:$16 sps:$4 sm:$0xff]  }
  0x78   :  { %504 = vmatpush1.bf16.msra.mxu0 %v8554_v32  ;;  %545 = vmatpush1.bf16.msra.mxu1 %v8557_v33  ;;  %v9793_v28 = vld [vmem:[#allocation9 + $0x4c] ss:$16 sps:$4 sm:$0xff]   ;;  %11487 = vst [vmem:[#allocation17_spill] sm:$0xff] %v9797_v29  ;;  %v9801_v30 = vld [vmem:[#allocation9 + $0x48] ss:$16 sps:$4 sm:$0xff]  }
  0x79   :  { %505 = vmatprep.subr.bf16.mxu0 %v8562_v34  ;;  %546 = vmatprep.subr.bf16.mxu1 %v8565_v35  ;;  %11488 = vst [vmem:[#allocation18_spill] sm:$0xff] %v9801_v30  ;;  %v9803_v31 = vld [vmem:[#allocation9 + $0x64] ss:$16 sps:$4 sm:$0xff]   ;;  %v9806_v32 = vld [vmem:[#allocation9 + $0x6c] ss:$16 sps:$4 sm:$0xff]  }
  0x7a   :  { %11489 = vst [vmem:[#allocation19_spill] sm:$0xff] %v9803_v31  ;;  %11490 = vst [vmem:[#allocation20_spill] sm:$0xff] %v9806_v32  ;;  %v9809_v33 = vld [vmem:[#allocation9 + $0x60] ss:$16 sps:$4 sm:$0xff]   ;;  %v9813_v34 = vld [vmem:[#allocation9 + $0x68] ss:$16 sps:$4 sm:$0xff]  }
  0x7b   :  { %11491 = vst [vmem:[#allocation21_spill] sm:$0xff] %v9809_v33  ;;  %11492 = vst [vmem:[#allocation22_spill] sm:$0xff] %v9813_v34  ;;  %v9815_v35 = vld [vmem:[#allocation9 + $0x84] ss:$16 sps:$4 sm:$0xff]  }
  0x7c   :  { %506 = vmatpush1.bf16.msra.mxu0 %v8560_v36  ;;  %547 = vmatpush1.bf16.msra.mxu1 %v8563_v37  ;;  %11493 = vst [vmem:[#allocation23_spill] sm:$0xff] %v9815_v35  ;;  %v9818_v36 = vld [vmem:[#allocation9 + $0x8c] ss:$16 sps:$4 sm:$0xff]   ;;  %v9821_v37 = vld [vmem:[#allocation9 + $0x80] ss:$16 sps:$4 sm:$0xff]  }
  0x7d   :  { %507 = vmatprep.subr.bf16.mxu0 %v8568_v38  ;;  %548 = vmatprep.subr.bf16.mxu1 %v8571_v39  ;;  %11494 = vst [vmem:[#allocation24_spill] sm:$0xff] %v9818_v36  ;;  %11495 = vst [vmem:[#allocation25_spill] sm:$0xff] %v9821_v37  ;;  %v9825_v38 = vld [vmem:[#allocation9 + $0x88] ss:$16 sps:$4 sm:$0xff]   ;;  %v9827_v39 = vld [vmem:[#allocation9 + $0xa4] ss:$16 sps:$4 sm:$0xff]  }
  0x7e   :  { %11496 = vst [vmem:[#allocation26_spill] sm:$0xff] %v9825_v38  ;;  %11497 = vst [vmem:[#allocation27_spill] sm:$0xff] %v9827_v39 }
  0x80   :  { %508 = vmatpush1.bf16.msra.mxu0 %v8566_v40  ;;  %549 = vmatpush1.bf16.msra.mxu1 %v8569_v41  ;;  %v9830_v40 = vld [vmem:[#allocation9 + $0xac] ss:$16 sps:$4 sm:$0xff]   ;;  %v9833_v41 = vld [vmem:[#allocation9 + $0xa0] ss:$16 sps:$4 sm:$0xff]  }
  0x81   :  { %509 = vmatprep.subr.bf16.mxu0 %v8574_v42  ;;  %550 = vmatprep.subr.bf16.mxu1 %v8577_v43  ;;  %11498 = vst [vmem:[#allocation28_spill] sm:$0xff] %v9830_v40  ;;  %11499 = vst [vmem:[#allocation29_spill] sm:$0xff] %v9833_v41  ;;  %v9837_v42 = vld [vmem:[#allocation9 + $0xa8] ss:$16 sps:$4 sm:$0xff]   ;;  %v9839_v43 = vld [vmem:[#allocation9 + $0xc4] ss:$16 sps:$4 sm:$0xff]  }
  0x82   :  { %11500 = vst [vmem:[#allocation30_spill] sm:$0xff] %v9837_v42  ;;  %11501 = vst [vmem:[#allocation31_spill] sm:$0xff] %v9839_v43 }
  0x84   :  { %510 = vmatpush1.bf16.msra.mxu0 %v8572_v44  ;;  %551 = vmatpush1.bf16.msra.mxu1 %v8575_v45  ;;  %v9842_v44 = vld [vmem:[#allocation9 + $0xcc] ss:$16 sps:$4 sm:$0xff]   ;;  %v9845_v45 = vld [vmem:[#allocation9 + $0xc0] ss:$16 sps:$4 sm:$0xff]  }
  0x85   :  { %511 = vmatprep.subr.bf16.mxu0 %v8580_v46  ;;  %552 = vmatprep.subr.bf16.mxu1 %v8583_v47  ;;  %11502 = vst [vmem:[#allocation32_spill] sm:$0xff] %v9842_v44  ;;  %11503 = vst [vmem:[#allocation33_spill] sm:$0xff] %v9845_v45  ;;  %v9849_v46 = vld [vmem:[#allocation9 + $0xc8] ss:$16 sps:$4 sm:$0xff]   ;;  %v9851_v47 = vld [vmem:[#allocation9 + $0xe4] ss:$16 sps:$4 sm:$0xff]  }
  0x86   :  { %11504 = vst [vmem:[#allocation34_spill] sm:$0xff] %v9849_v46  ;;  %11505 = vst [vmem:[#allocation35_spill] sm:$0xff] %v9851_v47 }
  0x88   :  { %512 = vmatpush1.bf16.msra.mxu0 %v8578_v48  ;;  %553 = vmatpush1.bf16.msra.mxu1 %v8581_v49  ;;  %v9854_v48 = vld [vmem:[#allocation9 + $0xec] ss:$16 sps:$4 sm:$0xff]   ;;  %v9857_v49 = vld [vmem:[#allocation9 + $0xe0] ss:$16 sps:$4 sm:$0xff]  }
  0x89   :  { %865 = vmatprep.subr.bf16.mxu0 %v9672_v51  ;;  %906 = vmatprep.subr.bf16.mxu1 %v9676_v53  ;;  %11506 = vst [vmem:[#allocation36_spill] sm:$0xff] %v9854_v48  ;;  %11507 = vst [vmem:[#allocation37_spill] sm:$0xff] %v9857_v49 }
  0x8b   :  { %530 = vmatmul.mubr.bf16.vlgmr.msra.gmra.mrb[4].mxu0 %v11319_v0  ;;  %571 = vmatmul.mubr.bf16.vlgmr.msra.gmra.mrb[4].mxu1 %v11319_v0 }
  0x8c   :  { %897 = vmatprep.mubr.bf16.mxu0 %v11319_v0  ;;  %938 = vmatprep.mubr.bf16.mxu1 %v11319_v0 }
  0x8d   :  { %866 = vmatpush1.bf16.msra.mxu0 %v9670_v50  ;;  %907 = vmatpush1.bf16.msra.mxu1 %v9674_v52 }
  0x8e   :  { %867 = vmatprep.subr.bf16.mxu0 %v9680_v55  ;;  %908 = vmatprep.subr.bf16.mxu1 %v9685_v57 }
  0x91   :  { %868 = vmatpush1.bf16.msra.mxu0 %v9678_v54  ;;  %909 = vmatpush1.bf16.msra.mxu1 %v9683_v56 }
  0x92   :  { %869 = vmatprep.subr.bf16.mxu0 %v9694_v58  ;;  %910 = vmatprep.subr.bf16.mxu1 %v9696_v59 }
  0x95   :  { %870 = vmatpush1.bf16.msra.mxu0 %v9698_v60  ;;  %911 = vmatpush1.bf16.msra.mxu1 %v9700_v61 }
  0x96   :  { %871 = vmatprep.subr.bf16.mxu0 %v9706_v62  ;;  %912 = vmatprep.subr.bf16.mxu1 %v9708_v63 }
  0x99   :  { %872 = vmatpush1.bf16.msra.mxu0 %v9710_v1  ;;  %913 = vmatpush1.bf16.msra.mxu1 %v9712_v2 }
  0x9a   :  { %873 = vmatprep.subr.bf16.mxu0 %v9718_v3  ;;  %914 = vmatprep.subr.bf16.mxu1 %v9720_v4 }
  0x9d   :  { %874 = vmatpush1.bf16.msra.mxu0 %v9722_v5  ;;  %915 = vmatpush1.bf16.msra.mxu1 %v9724_v6 }
  0x9e   :  { %875 = vmatprep.subr.bf16.mxu0 %v9730_v7  ;;  %916 = vmatprep.subr.bf16.mxu1 %v9732_v8 }
  0xa1   :  { %876 = vmatpush1.bf16.msra.mxu0 %v9734_v9  ;;  %917 = vmatpush1.bf16.msra.mxu1 %v9736_v10 }
  0xa2   :  { %877 = vmatprep.subr.bf16.mxu0 %v9742_v11  ;;  %918 = vmatprep.subr.bf16.mxu1 %v9744_v12 }
  0xa5   :  { %878 = vmatpush1.bf16.msra.mxu0 %v9746_v13  ;;  %919 = vmatpush1.bf16.msra.mxu1 %v9748_v14 }
  0xa6   :  { %879 = vmatprep.subr.bf16.mxu0 %v9754_v15  ;;  %920 = vmatprep.subr.bf16.mxu1 %v9756_v16 }
  0xa9   :  { %880 = vmatpush1.bf16.msra.mxu0 %v9758_v17  ;;  %921 = vmatpush1.bf16.msra.mxu1 %v9760_v18 }
  0xaa   :  { %1107 = vmatprep.subr.bf16.mxu0 %v9768_v19  ;;  %1148 = vmatprep.subr.bf16.mxu1 %v9770_v20 }
  0xac   :  { %898 = vmatmul.mubr.bf16.vlgmr.msra.gmra.mrb[8].mxu0 %v11319_v0  ;;  %939 = vmatmul.mubr.bf16.vlgmr.msra.gmra.mrb[8].mxu1 %v11319_v0 }
  0xad   :  { %1139 = vmatprep.mubr.bf16.mxu0 %v11319_v0  ;;  %1180 = vmatprep.mubr.bf16.mxu1 %v11319_v0  ;;  %v9861_v0 = vld [vmem:[#allocation9 + $0xe8] ss:$16 sps:$4 sm:$0xff]  }
  0xae   :  { %1108 = vmatpush1.bf16.msra.mxu0 %v9772_v21  ;;  %1149 = vmatpush1.bf16.msra.mxu1 %v9774_v22  ;;  %11508 = vst [vmem:[#allocation38_spill] sm:$0xff] %v9861_v0 }
  0xaf   :  { %1109 = vmatprep.subr.bf16.mxu0 %v9784_v24  ;;  %1150 = vmatprep.subr.bf16.mxu1 %v9788_v26 }
  0xb2   :  { %1110 = vmatpush1.bf16.msra.mxu0 %v9782_v23  ;;  %1151 = vmatpush1.bf16.msra.mxu1 %v9786_v25 }
  0xb3   :  { %1111 = vmatprep.subr.bf16.mxu0 %v9790_v27  ;;  %1152 = vmatprep.subr.bf16.mxu1 %v9793_v28 }
  0xb6   :  { %1112 = vmatpush1.bf16.msra.mxu0 %v9797_v29  ;;  %1153 = vmatpush1.bf16.msra.mxu1 %v9801_v30 }
  0xb7   :  { %1113 = vmatprep.subr.bf16.mxu0 %v9803_v31  ;;  %1154 = vmatprep.subr.bf16.mxu1 %v9806_v32 }
  0xba   :  { %1114 = vmatpush1.bf16.msra.mxu0 %v9809_v33  ;;  %1155 = vmatpush1.bf16.msra.mxu1 %v9813_v34 }
  0xbb   :  { %1115 = vmatprep.subr.bf16.mxu0 %v9815_v35  ;;  %1156 = vmatprep.subr.bf16.mxu1 %v9818_v36 }
  0xbe   :  { %1116 = vmatpush1.bf16.msra.mxu0 %v9821_v37  ;;  %1157 = vmatpush1.bf16.msra.mxu1 %v9825_v38 }
  0xbf   :  { %1117 = vmatprep.subr.bf16.mxu0 %v9827_v39  ;;  %1158 = vmatprep.subr.bf16.mxu1 %v9830_v40 }
  0xc2   :  { %1118 = vmatpush1.bf16.msra.mxu0 %v9833_v41  ;;  %1159 = vmatpush1.bf16.msra.mxu1 %v9837_v42  ;;  %v113_v42 = vlaneseq }
  0xc3   :  { %1119 = vmatprep.subr.bf16.mxu0 %v9839_v43  ;;  %1160 = vmatprep.subr.bf16.mxu1 %v9842_v44  ;;  %v9368_v43 = vld [vmem:[#allocation8 + $0x4] ss:$16 sps:$4 sm:$0xff]   ;;  %v9369_v44 = vld [vmem:[#allocation8 + $0xc] ss:$16 sps:$4 sm:$0xff]  }
  0xc6   :  { %1120 = vmatpush1.bf16.msra.mxu0 %v9845_v45  ;;  %1161 = vmatpush1.bf16.msra.mxu1 %v9849_v46  ;;  %v9866_v45 = vshrl.u32 %v113_v42, 7 }
  0xc7   :  { %1121 = vmatprep.subr.bf16.mxu0 %v9851_v47  ;;  %1162 = vmatprep.subr.bf16.mxu1 %v9854_v48  ;;  %v111_v47 = vld [vmem:[%s11314_s3] sm:$0xf] }
  0xc8   :  { %v11341_v41 = vsub.s32 0, %v9866_v45  ;;  %v11342_v46 = vsub.s32 2, %v9866_v45  ;;  %v11343_v48 = vsub.s32 1, %v9866_v45 }
  0xca   :  { %1122 = vmatpush1.bf16.msra.mxu0 %v9857_v49  ;;  %1163 = vmatpush1.bf16.msra.mxu1 %v9861_v0  ;;  %v127_v49 = vsub.s32 3, %v9866_v45  ;;  %v120_v42 = vrot.slane %v111_v47, %v11343_v48  ;;  %v9548_v48 = vmov 1966171168  }
  0xcb   :  { %1433 = vmatprep.subr.bf16.mxu0 %v9368_v43  ;;  %1474 = vmatprep.subr.bf16.mxu1 %v9369_v44  ;;  %v116_v43 = vrot.slane %v111_v47, %v11341_v41  ;;  %v124_v44 = vrot.slane %v111_v47, %v11342_v46  ;;  %v586_v30 = vunpack.c.l.s4 %v9548_v48 }
  0xcc   :  { %v128_v0 = vrot.slane %v111_v47, %v127_v49 }
  0xcd   :  { %v587_v29 = vunpack.c.0.s8 %v586_v30 }
  0xcf   :  { %v9884_v47 = vsub.s32 %v587_v29, %v9866_v45 }
 0x13e   :  { %v251_v40 = vpop.f32.mrb[0].mxu0  ;;  %v292_v39 = vpop.f32.mrb[0].mxu1 }
 0x13f   :  { %v252_v38 = vadd.f32 %v251_v40, %v116_v43  ;;  %v293_v37 = vadd.f32 %v292_v39, %v124_v44  ;;  %v253_v36 = vpop.f32.mrb[1].mxu0  ;;  %v294_v35 = vpop.f32.mrb[1].mxu1 }
 0x140   :  { %v254_v34 = vadd.f32 %v253_v36, %v120_v42  ;;  %v295_v33 = vadd.f32 %v294_v35, %v128_v0  ;;  %v255_v32 = vpop.f32.mrb[2].mxu0  ;;  %v296_v31 = vpop.f32.mrb[2].mxu1 }
 0x141   :  { %299 = vst [vmem:[#allocation2] sm:$0xff] %v252_v38  ;;  %301 = vst [vmem:[#allocation2 + $0x10] sm:$0xff] %v293_v37  ;;  %v256_v41 = vpop.f32.mrb[3].mxu0  ;;  %v297_v46 = vpop.f32.mrb[3].mxu1 }
 0x142   :  { %300 = vst [vmem:[#allocation2 + $0x8] sm:$0xff] %v254_v34  ;;  %302 = vst [vmem:[#allocation2 + $0x18] sm:$0xff] %v295_v33 }
 0x149   :  { %v304_v41 = vld [vmem:[#allocation2] ss:$8 sm:$0xf] }
 0x15e   :  { %v531_v40 = vpop.f32.mrb[4].mxu0  ;;  %v572_v39 = vpop.f32.mrb[4].mxu1 }
 0x15f   :  { %v533_v43 = vpop.f32.mrb[5].mxu0  ;;  %v574_v44 = vpop.f32.mrb[5].mxu1 }
 0x160   :  { %v583_v36 = vcombine.low %v531_v40, %v533_v43  ;;  %v584_v0 = vcombine.low %v572_v39, %v574_v44  ;;  %v535_v32 = vpop.f32.mrb[6].mxu0  ;;  %v576_v31 = vpop.f32.mrb[6].mxu1 }
 0x161   :  { %v536_v35 = vpop.f32.mrb[7].mxu0  ;;  %v577_v37 = vpop.f32.mrb[7].mxu1 }
 0x162   :  { %v591_v38 = vrot.slane %v583_v36, %v9884_v47  ;;  %v598_v33 = vrot.slane %v584_v0, %v9884_v47 }
 0x164   :  { %v599_v34 = vcombine.low %v591_v38, %v598_v33 }
 0x166   :  { %v606_v30 = vrot.slane %v599_v34, %v9884_v47 }
 0x168   :  { %v608_v29 = vadd.f32 %v606_v30, %v304_v41 }
 0x16a   :  { %v7718_v46 = vmul.f32 -1.442695, %v608_v29  ;;  %v616_v48 = vrot.slane %v608_v29, 1  ;;  %v627_v40 = vrot.slane %v608_v29, 3  ;;  %v624_v44 = vrot.slane %v608_v29, 2 }
 0x16c   :  { %9112 = vpow2.f32 %v7718_v46  ;;  %v7719_v42 = vmul.f32 -1.442695, %v616_v48  ;;  %v7720_v39 = vmul.f32 -1.442695, %v627_v40  ;;  %v9370_v40 = vld [vmem:[#allocation8] ss:$16 sps:$4 sm:$0xff]  }
 0x16e   :  { %9114 = vpow2.f32 %v7719_v42 }
 0x16f   :  { %9116 = vpow2.f32 %v7720_v39  ;;  %v9371_v39 = vld [vmem:[#allocation8 + $0x8] ss:$16 sps:$4 sm:$0xff]  }
 0x176   :  { %v9113_v43 = vpop.eup %9112 }
 0x177   :  { %v612_v32 = vadd.f32 1.0, %v9113_v43  ;;  %v9372_v43 = vld [vmem:[#allocation8 + $0x24] ss:$16 sps:$4 sm:$0xff]  }
 0x178   :  { %v9115_v31 = vpop.eup %9114 }
 0x179   :  { %9118 = vrcp.f32 %v612_v32  ;;  %v621_v36 = vadd.f32 1.0, %v9115_v31  ;;  %v9117_v0 = vpop.eup %9116  ;;  %v11509_v32 = vmov 0   ;;  %v9374_v31 = vld [vmem:[#allocation8 + $0x20] ss:$16 sps:$4 sm:$0xff]  }
 0x17a   :  { %9120 = vtanh.f32 %v624_v44  ;;  %v632_v33 = vadd.f32 1.0, %v9117_v0  ;;  %v9373_v44 = vld [vmem:[#allocation8 + $0x2c] ss:$16 sps:$4 sm:$0xff]   ;;  %v9376_v0 = vld [vmem:[#allocation8 + $0x44] ss:$16 sps:$4 sm:$0xff]  }
 0x17b   :  { %9122 = vrcp.f32 %v621_v36  ;;  %v9375_v36 = vld [vmem:[#allocation8 + $0x28] ss:$16 sps:$4 sm:$0xff]  }
 0x17c   :  { %9124 = vrcp.f32 %v632_v33  ;;  %v9380_v33 = vld [vmem:[#allocation8 + $0x64] ss:$16 sps:$4 sm:$0xff]  }
 0x183   :  { %v9119_v35 = vpop.eup %9118 }
 0x184   :  { %v9121_v37 = vpop.eup %9120 }
 0x185   :  { %v9123_v38 = vpop.eup %9122  ;;  %v636_v30 = vmul.f32 %v9121_v37, %v9119_v35  ;;  %v9377_v35 = vld [vmem:[#allocation8 + $0x4c] ss:$16 sps:$4 sm:$0xff]   ;;  %v9378_v37 = vld [vmem:[#allocation8 + $0x40] ss:$16 sps:$4 sm:$0xff]  }
 0x186   :  { %v635_v34 = vmul.f32 0.0, %v9123_v38  ;;  %v9125_v29 = vpop.eup %9124  ;;  %v9379_v38 = vld [vmem:[#allocation8 + $0x48] ss:$16 sps:$4 sm:$0xff]  }
 0x188   :  { %v9889_v41 = vadd.f32 %v636_v30, %v635_v34  ;;  %v9381_v34 = vld [vmem:[#allocation8 + $0x6c] ss:$16 sps:$4 sm:$0xff]   ;;  %v9382_v30 = vld [vmem:[#allocation8 + $0x60] ss:$16 sps:$4 sm:$0xff]  }
 0x18a   :  { %9126 = vtanh.f32 %v9889_v41 }
 0x194   :  { %v9127_v46 = vpop.eup %9126 }
 0x195   :  { %v639_v48 = vmul.f32 %v9127_v46, %v9125_v29  ;;  %v9383_v29 = vld [vmem:[#allocation8 + $0x68] ss:$16 sps:$4 sm:$0xff]   ;;  %v9384_v46 = vld [vmem:[#allocation8 + $0x84] ss:$16 sps:$4 sm:$0xff]  }
 0x197   :  { %v9892_v42 = vpack.c.bf16 %v639_v48, %v639_v48  ;;  %v9385_v48 = vld [vmem:[#allocation8 + $0x8c] ss:$16 sps:$4 sm:$0xff]  }
 0x199   :  { %1140 = vmatmul.mubr.bf16.vlgmr.msra.gmra.mrb[12].mxu0 %v9892_v42  ;;  %1181 = vmatmul.mubr.bf16.vlgmr.msra.gmra.mrb[12].mxu1 %v9892_v42 }
 0x19a   :  { %1434 = vmatpush1.bf16.msra.mxu0 %v9370_v40  ;;  %1475 = vmatpush1.bf16.msra.mxu1 %v9371_v39  ;;  %v9386_v40 = vld [vmem:[#allocation8 + $0x80] ss:$16 sps:$4 sm:$0xff]   ;;  %v9387_v39 = vld [vmem:[#allocation8 + $0x88] ss:$16 sps:$4 sm:$0xff]  }
 0x19b   :  { %1435 = vmatprep.subr.bf16.mxu0 %v9372_v43  ;;  %1476 = vmatprep.subr.bf16.mxu1 %v9373_v44  ;;  %v9388_v43 = vld [vmem:[#allocation8 + $0xa4] ss:$16 sps:$4 sm:$0xff]   ;;  %v9389_v44 = vld [vmem:[#allocation8 + $0xac] ss:$16 sps:$4 sm:$0xff]  }
 0x19c   :  { %1465 = vmatprep.mubr.bf16.mxu0 %v11509_v32  ;;  %1506 = vmatprep.mubr.bf16.mxu1 %v11509_v32 }
 0x19e   :  { %1436 = vmatpush1.bf16.msra.mxu0 %v9374_v31  ;;  %1477 = vmatpush1.bf16.msra.mxu1 %v9375_v36  ;;  %v9390_v31 = vld [vmem:[#allocation8 + $0xa0] ss:$16 sps:$4 sm:$0xff]   ;;  %v9391_v36 = vld [vmem:[#allocation8 + $0xa8] ss:$16 sps:$4 sm:$0xff]  }
 0x19f   :  { %1437 = vmatprep.subr.bf16.mxu0 %v9376_v0  ;;  %1478 = vmatprep.subr.bf16.mxu1 %v9377_v35  ;;  %v9392_v0 = vld [vmem:[#allocation8 + $0xc4] ss:$16 sps:$4 sm:$0xff]   ;;  %v9393_v35 = vld [vmem:[#allocation8 + $0xcc] ss:$16 sps:$4 sm:$0xff]  }
 0x1a2   :  { %1438 = vmatpush1.bf16.msra.mxu0 %v9378_v37  ;;  %1479 = vmatpush1.bf16.msra.mxu1 %v9379_v38  ;;  %v9394_v37 = vld [vmem:[#allocation8 + $0xc0] ss:$16 sps:$4 sm:$0xff]   ;;  %v9395_v38 = vld [vmem:[#allocation8 + $0xc8] ss:$16 sps:$4 sm:$0xff]  }
 0x1a3   :  { %1439 = vmatprep.subr.bf16.mxu0 %v9380_v33  ;;  %1480 = vmatprep.subr.bf16.mxu1 %v9381_v34  ;;  %v9396_v33 = vld [vmem:[#allocation8 + $0xe4] ss:$16 sps:$4 sm:$0xff]   ;;  %v9397_v34 = vld [vmem:[#allocation8 + $0xec] ss:$16 sps:$4 sm:$0xff]  }
 0x1a6   :  { %1440 = vmatpush1.bf16.msra.mxu0 %v9382_v30  ;;  %1481 = vmatpush1.bf16.msra.mxu1 %v9383_v29  ;;  %v9398_v30 = vld [vmem:[#allocation8 + $0xe0] ss:$16 sps:$4 sm:$0xff]   ;;  %v9399_v29 = vld [vmem:[#allocation8 + $0xe8] ss:$16 sps:$4 sm:$0xff]  }
 0x1a7   :  { %1441 = vmatprep.subr.bf16.mxu0 %v9384_v46  ;;  %1482 = vmatprep.subr.bf16.mxu1 %v9385_v48 }
 0x1aa   :  { %1442 = vmatpush1.bf16.msra.mxu0 %v9386_v40  ;;  %1483 = vmatpush1.bf16.msra.mxu1 %v9387_v39 }
 0x1ab   :  { %1443 = vmatprep.subr.bf16.mxu0 %v9388_v43  ;;  %1484 = vmatprep.subr.bf16.mxu1 %v9389_v44 }
 0x1ae   :  { %1444 = vmatpush1.bf16.msra.mxu0 %v9390_v31  ;;  %1485 = vmatpush1.bf16.msra.mxu1 %v9391_v36 }
 0x1af   :  { %1445 = vmatprep.subr.bf16.mxu0 %v9392_v0  ;;  %1486 = vmatprep.subr.bf16.mxu1 %v9393_v35 }
 0x1b2   :  { %1446 = vmatpush1.bf16.msra.mxu0 %v9394_v37  ;;  %1487 = vmatpush1.bf16.msra.mxu1 %v9395_v38 }
 0x1b3   :  { %1447 = vmatprep.subr.bf16.mxu0 %v9396_v33  ;;  %1488 = vmatprep.subr.bf16.mxu1 %v9397_v34 }
 0x1b6   :  { %1448 = vmatpush1.bf16.msra.mxu0 %v9398_v30  ;;  %1489 = vmatpush1.bf16.msra.mxu1 %v9399_v29 }
 0x1b7   :  { %1802 = vmatprep.subr.bf16.mxu0 %v9672_v51  ;;  %1843 = vmatprep.subr.bf16.mxu1 %v9676_v53  ;;  %v940_v51 = vpop.f32.mrb[8].mxu1 }
 0x1b8   :  { %v942_v53 = vpop.f32.mrb[9].mxu1 }
 0x1b9   :  { %1466 = vmatmul.mubr.bf16.vlgmr.msra.gmra.mrb[16].mxu0 %v9892_v42  ;;  %1507 = vmatmul.mubr.bf16.vlgmr.msra.gmra.mrb[16].mxu1 %v9892_v42 }
 0x1ba   :  { %1803 = vmatpush1.bf16.msra.mxu0 %v9670_v50  ;;  %1844 = vmatpush1.bf16.msra.mxu1 %v9674_v52  ;;  %v899_v50 = vpop.f32.mrb[8].mxu0 }
 0x1bb   :  { %1804 = vmatprep.subr.bf16.mxu0 %v9680_v55  ;;  %1845 = vmatprep.subr.bf16.mxu1 %v9685_v57  ;;  %v901_v52 = vpop.f32.mrb[9].mxu0  ;;  %v944_v55 = vpop.f32.mrb[10].mxu1 }
 0x1bc   :  { %1834 = vmatprep.mubr.bf16.mxu0 %v11509_v32  ;;  %1875 = vmatprep.mubr.bf16.mxu1 %v11509_v32  ;;  %v945_v57 = vpop.f32.mrb[11].mxu1 }
 0x1be   :  { %1805 = vmatpush1.bf16.msra.mxu0 %v9678_v54  ;;  %1846 = vmatpush1.bf16.msra.mxu1 %v9683_v56  ;;  %v903_v54 = vpop.f32.mrb[10].mxu0 }
 0x1bf   :  { %1806 = vmatprep.subr.bf16.mxu0 %v9694_v58  ;;  %1847 = vmatprep.subr.bf16.mxu1 %v9696_v59  ;;  %v904_v56 = vpop.f32.mrb[11].mxu0  ;;  %v303_v58 = vld [vmem:[%s11317_s6] sm:$0xf]  ;;  %v11510_v59 = vsub.s32 0, %v9866_v45  ;;  %s9549_s6 = smov [#allocation12]  }
 0x1c0   :  { %s7657_s15 = sshll.u32 %s9549_s6, 4  ;;  %s7658_s15 = int_to_ptr.vmem [resolvable:$true] %s7657_s15 }
 0x1c1   :  { %s9510_s16 = scalar_lea.vmem %s7658_s15, 128  ;;  %p9515_p13 = scmp.lt.s32.totalorder %s7658_s15, %s7658_s15 }
 0x1c2   :  { %1807 = vmatpush1.bf16.msra.mxu0 %v9698_v60  ;;  %1848 = vmatpush1.bf16.msra.mxu1 %v9700_v61  ;;  %v9941_v60 = vrot.slane %v303_v58, %v11510_v59  ;;  %v11511_v61 = vsub.s32 1, %v9866_v45  ;;  %p9511_p12 = scmp.ne.s32.totalorder %s7658_s15, %s9510_s16  ;;  %p9516_p0 = scmp.lt.s32.totalorder %s9510_s16, %s9510_s16 }
 0x1c3   :  { %1808 = vmatprep.subr.bf16.mxu0 %v9706_v62  ;;  %1849 = vmatprep.subr.bf16.mxu1 %v9708_v63 }
 0x1c4   :  { %v9945_v62 = vrot.slane %v303_v58, %v11511_v61  ;;  %p9517_p1 = por %p9516_p0, %p9515_p13 }
 0x1c6   :  { %1809 = vmatpush1.bf16.msra.mxu0 %v9710_v1  ;;  %1850 = vmatpush1.bf16.msra.mxu1 %v9712_v2  ;;  %p9518_p2 = pnand %p9517_p1, %p9511_p12 }
 0x1c7   :  { %1810 = vmatprep.subr.bf16.mxu0 %v9718_v3  ;;  %1851 = vmatprep.subr.bf16.mxu1 %v9720_v4 }
 0x1ca   :  { %1811 = vmatpush1.bf16.msra.mxu0 %v9722_v5  ;;  %1852 = vmatpush1.bf16.msra.mxu1 %v9724_v6 }
 0x1cb   :  { %1812 = vmatprep.subr.bf16.mxu0 %v9730_v7  ;;  %1853 = vmatprep.subr.bf16.mxu1 %v9732_v8 }
 0x1ce   :  { %1813 = vmatpush1.bf16.msra.mxu0 %v9734_v9  ;;  %1854 = vmatpush1.bf16.msra.mxu1 %v9736_v10 }
 0x1cf   :  { %1814 = vmatprep.subr.bf16.mxu0 %v9742_v11  ;;  %1855 = vmatprep.subr.bf16.mxu1 %v9744_v12 }
 0x1d2   :  { %1815 = vmatpush1.bf16.msra.mxu0 %v9746_v13  ;;  %1856 = vmatpush1.bf16.msra.mxu1 %v9748_v14 }
 0x1d3   :  { %1816 = vmatprep.subr.bf16.mxu0 %v9754_v15  ;;  %1857 = vmatprep.subr.bf16.mxu1 %v9756_v16  ;;  %v9951_v15 = vrot.slane %v303_v58, %v127_v49 }
 0x1d6   :  { %1817 = vmatpush1.bf16.msra.mxu0 %v9758_v17  ;;  %1858 = vmatpush1.bf16.msra.mxu1 %v9760_v18  ;;  %v11512_v18 = vsub.s32 2, %v9866_v45 }
 0x1d7   :  { %2044 = vmatprep.subr.bf16.mxu0 %v9768_v19  ;;  %2085 = vmatprep.subr.bf16.mxu1 %v9770_v20 }
 0x1d8   :  { %v9956_v19 = vrot.slane %v303_v58, %v11512_v18  ;;  %v1240_v58 = vld [vmem:[#allocation2 + $0x1] ss:$8 sm:$0xf] }
 0x1d9   :  { %v11523_v18 = vld [vmem:[#allocation27_spill] sm:$0xff] }
 0x26c   :  { %v1141_v63 = vpop.f32.mrb[12].mxu0  ;;  %v1182_v1 = vpop.f32.mrb[12].mxu1 }
 0x26d   :  { %v1142_v2 = vadd.f32 %v1141_v63, %v899_v50  ;;  %v1183_v3 = vadd.f32 %v1182_v1, %v940_v51  ;;  %v1143_v4 = vpop.f32.mrb[13].mxu0  ;;  %v1184_v5 = vpop.f32.mrb[13].mxu1 }
 0x26e   :  { %v1144_v6 = vadd.f32 %v1143_v4, %v901_v52  ;;  %v1185_v7 = vadd.f32 %v1184_v5, %v942_v53  ;;  %v1145_v8 = vpop.f32.mrb[14].mxu0  ;;  %v1186_v9 = vpop.f32.mrb[14].mxu1 }
 0x26f   :  { %v1210_v10 = vadd.f32 %v9941_v60, %v1142_v2  ;;  %v1146_v11 = vpop.f32.mrb[15].mxu0  ;;  %v1187_v12 = vpop.f32.mrb[15].mxu1  ;;  %v1212_v42 = vadd.f32 %v9956_v19, %v1183_v3 }
 0x270   :  { %v1211_v13 = vadd.f32 %v9945_v62, %v1144_v6  ;;  %v1213_v17 = vadd.f32 %v9951_v15, %v1185_v7  ;;  %v11515_v11 = vld [vmem:[#allocation19_spill] sm:$0xff]  ;;  %v11518_v12 = vld [vmem:[#allocation22_spill] sm:$0xff] }
 0x271   :  { %v7785_v14 = vmul.f32 -1.442695, %v1210_v10 }
 0x272   :  { %v7786_v16 = vmul.f32 -1.442695, %v1211_v13  ;;  %v7787_v20 = vmul.f32 -1.442695, %v1213_v17 }
 0x273   :  { %9128 = vpow2.f32 %v7785_v14  ;;  %v11521_v14 = vld [vmem:[#allocation25_spill] sm:$0xff] }
 0x274   :  { %9130 = vpow2.f32 %v7786_v16  ;;  %v11522_v16 = vld [vmem:[#allocation26_spill] sm:$0xff] }
 0x275   :  { %9132 = vpow2.f32 %v7787_v20  ;;  %v11524_v20 = vld [vmem:[#allocation28_spill] sm:$0xff] }
 0x276   :  { %9134 = vtanh.f32 %v1212_v42 }
 0x27d   :  { %v9129_v46 = vpop.eup %9128 }
 0x27e   :  { %v9131_v48 = vpop.eup %9130  ;;  %v1217_v40 = vadd.f32 1.0, %v9129_v46 }
 0x27f   :  { %v1223_v39 = vadd.f32 1.0, %v9131_v48  ;;  %v9133_v49 = vpop.eup %9132 }
 0x280   :  { %9136 = vrcp.f32 %v1217_v40  ;;  %v9135_v43 = vpop.eup %9134  ;;  %v1230_v0 = vadd.f32 1.0, %v9133_v49  ;;  %v11525_v40 = vld [vmem:[#allocation29_spill] sm:$0xff] }
 0x281   :  { %9138 = vrcp.f32 %v1223_v39  ;;  %v11526_v39 = vld [vmem:[#allocation30_spill] sm:$0xff] }
 0x282   :  { %9140 = vrcp.f32 %v1230_v0  ;;  %v11529_v0 = vld [vmem:[#allocation33_spill] sm:$0xff] }
 0x28a   :  { %v9137_v44 = vpop.eup %9136 }
 0x28b   :  { %v9139_v31 = vpop.eup %9138  ;;  %v1234_v36 = vmul.f32 %v9137_v44, %v9135_v43  ;;  %v11527_v44 = vld [vmem:[#allocation31_spill] sm:$0xff] }
 0x28c   :  { %v1233_v45 = vmul.f32 0.0, %v9139_v31  ;;  %v1467_v35 = vpop.f32.mrb[16].mxu0  ;;  %v1508_v37 = vpop.f32.mrb[16].mxu1  ;;  %v11528_v31 = vld [vmem:[#allocation32_spill] sm:$0xff] }
 0x28d   :  { %v1469_v38 = vpop.f32.mrb[17].mxu0  ;;  %v1510_v33 = vpop.f32.mrb[17].mxu1 }
 0x28e   :  { %v9959_v34 = vadd.f32 %v1234_v36, %v1233_v45  ;;  %v1519_v30 = vcombine.low %v1467_v35, %v1469_v38  ;;  %v1520_v29 = vcombine.low %v1508_v37, %v1510_v33  ;;  %v1471_v50 = vpop.f32.mrb[18].mxu0  ;;  %v1512_v51 = vpop.f32.mrb[18].mxu1  ;;  %v11530_v45 = vld [vmem:[#allocation34_spill] sm:$0xff]  ;;  %v11531_v35 = vld [vmem:[#allocation35_spill] sm:$0xff]  ;;  %v11532_v37 = vld [vmem:[#allocation36_spill] sm:$0xff] }
 0x28f   :  { %v1472_v52 = vpop.f32.mrb[19].mxu0  ;;  %v1513_v53 = vpop.f32.mrb[19].mxu1  ;;  %v9999_v38 = vld [vmem:[#allocation8 + $0x4] ss:$16 sps:$4 sm:$0xff]   ;;  %v11533_v33 = vld [vmem:[#allocation37_spill] sm:$0xff] }
 0x290   :  { %9142 = vtanh.f32 %v9959_v34  ;;  %v1527_v54 = vrot.slane %v1519_v30, %v9884_v47  ;;  %v1534_v55 = vrot.slane %v1520_v29, %v9884_v47  ;;  %v9141_v1 = vpop.eup %9140  ;;  %v11534_v30 = vld [vmem:[#allocation38_spill] sm:$0xff]  ;;  %v10009_v53 = vld [vmem:[#allocation8 + $0x8] ss:$16 sps:$4 sm:$0xff]  }
 0x291   :  { %v10007_v52 = vld [vmem:[#allocation8] ss:$16 sps:$4 sm:$0xff]  }
 0x292   :  { %v1535_v56 = vcombine.low %v1527_v54, %v1534_v55  ;;  %v10013_v55 = vld [vmem:[#allocation8 + $0x24] ss:$16 sps:$4 sm:$0xff]  }
 0x294   :  { %v1542_v57 = vrot.slane %v1535_v56, %v9884_v47  ;;  %v10015_v56 = vld [vmem:[#allocation8 + $0x2c] ss:$16 sps:$4 sm:$0xff]  }
 0x296   :  { %v1544_v59 = vadd.f32 %v1542_v57, %v1240_v58  ;;  %v10021_v57 = vld [vmem:[#allocation8 + $0x20] ss:$16 sps:$4 sm:$0xff]   ;;  %v10023_v58 = vld [vmem:[#allocation8 + $0x28] ss:$16 sps:$4 sm:$0xff]  }
 0x298   :  { %v7820_v61 = vmul.f32 -1.442695, %v1544_v59  ;;  %v1552_v63 = vrot.slane %v1544_v59, 1  ;;  %v1563_v6 = vrot.slane %v1544_v59, 3  ;;  %v1560_v9 = vrot.slane %v1544_v59, 2 }
 0x299   :  { %v10027_v59 = vld [vmem:[#allocation8 + $0x44] ss:$16 sps:$4 sm:$0xff]  }
 0x29a   :  { %v9143_v2 = vpop.eup %9142  ;;  %9144 = vpow2.f32 %v7820_v61  ;;  %v7821_v3 = vmul.f32 -1.442695, %v1552_v63  ;;  %v7822_v7 = vmul.f32 -1.442695, %v1563_v6  ;;  %v10029_v61 = vld [vmem:[#allocation8 + $0x4c] ss:$16 sps:$4 sm:$0xff]  }
 0x29b   :  { %v1237_v4 = vmul.f32 %v9143_v2, %v9141_v1  ;;  %v10035_v63 = vld [vmem:[#allocation8 + $0x40] ss:$16 sps:$4 sm:$0xff]   ;;  %v10037_v1 = vld [vmem:[#allocation8 + $0x48] ss:$16 sps:$4 sm:$0xff]   ;;  %v10041_v2 = vld [vmem:[#allocation8 + $0x64] ss:$16 sps:$4 sm:$0xff]  }
 0x29c   :  { %9146 = vpow2.f32 %v7821_v3  ;;  %v10043_v3 = vld [vmem:[#allocation8 + $0x6c] ss:$16 sps:$4 sm:$0xff]   ;;  %v10053_v6 = vld [vmem:[#allocation8 + $0x84] ss:$16 sps:$4 sm:$0xff]  }
 0x29d   :  { %1238 = vst [vmem:[#allocation12] sm:$0x1] %v1237_v4  ;;  %v1609_v5 = vpack.c.bf16 %v1237_v4, %v1237_v4  ;;  %9148 = vpow2.f32 %v7822_v7  ;;  %v10047_v4 = vld [vmem:[#allocation8 + $0x60] ss:$16 sps:$4 sm:$0xff]   ;;  %v10055_v7 = vld [vmem:[#allocation8 + $0x8c] ss:$16 sps:$4 sm:$0xff]  }
 0x29f   :  { %1835 = vmatmul.mubr.bf16.vlgmr.msra.gmra.mrb[20].mxu0 %v1609_v5  ;;  %1876 = vmatmul.mubr.bf16.vlgmr.msra.gmra.mrb[20].mxu1 %v1609_v5  ;;  %v10049_v5 = vld [vmem:[#allocation8 + $0x68] ss:$16 sps:$4 sm:$0xff]  }
 0x2a0   :  { %2045 = vmatpush1.bf16.msra.mxu0 %v9772_v21  ;;  %2086 = vmatpush1.bf16.msra.mxu1 %v9774_v22 }
 0x2a1   :  { %2046 = vmatprep.subr.bf16.mxu0 %v9784_v24  ;;  %2087 = vmatprep.subr.bf16.mxu1 %v9788_v26  ;;  %v11513_v24 = vld [vmem:[#allocation17_spill] sm:$0xff]  ;;  %v11514_v26 = vld [vmem:[#allocation18_spill] sm:$0xff] }
 0x2a2   :  { %2076 = vmatprep.mubr.bf16.mxu0 %v11509_v32  ;;  %2117 = vmatprep.mubr.bf16.mxu1 %v11509_v32 }
 0x2a4   :  { %v9145_v8 = vpop.eup %9144  ;;  %2047 = vmatpush1.bf16.msra.mxu0 %v9782_v23  ;;  %2088 = vmatpush1.bf16.msra.mxu1 %v9786_v25  ;;  %v11516_v23 = vld [vmem:[#allocation20_spill] sm:$0xff]  ;;  %v11517_v25 = vld [vmem:[#allocation21_spill] sm:$0xff] }
 0x2a5   :  { %v1548_v10 = vadd.f32 1.0, %v9145_v8  ;;  %2048 = vmatprep.subr.bf16.mxu0 %v9790_v27  ;;  %2089 = vmatprep.subr.bf16.mxu1 %v9793_v28  ;;  %v11519_v27 = vld [vmem:[#allocation23_spill] sm:$0xff]  ;;  %v11520_v28 = vld [vmem:[#allocation24_spill] sm:$0xff] }
 0x2a6   :  { %v9147_v21 = vpop.eup %9146  ;;  %v10059_v8 = vld [vmem:[#allocation8 + $0x80] ss:$16 sps:$4 sm:$0xff]  }
 0x2a7   :  { %9150 = vrcp.f32 %v1548_v10  ;;  %v1557_v22 = vadd.f32 1.0, %v9147_v21  ;;  %v9149_v13 = vpop.eup %9148  ;;  %v10065_v10 = vld [vmem:[#allocation8 + $0xa4] ss:$16 sps:$4 sm:$0xff]   ;;  %v10067_v21 = vld [vmem:[#allocation8 + $0xac] ss:$16 sps:$4 sm:$0xff]  }
 0x2a8   :  { %9152 = vtanh.f32 %v1560_v9  ;;  %2049 = vmatpush1.bf16.msra.mxu0 %v11513_v24  ;;  %2090 = vmatpush1.bf16.msra.mxu1 %v11514_v26  ;;  %v1568_v48 = vadd.f32 1.0, %v9149_v13  ;;  %v10061_v9 = vld [vmem:[#allocation8 + $0x88] ss:$16 sps:$4 sm:$0xff]   ;;  %v10077_v26 = vld [vmem:[#allocation8 + $0xc4] ss:$16 sps:$4 sm:$0xff]  }
 0x2a9   :  { %9154 = vrcp.f32 %v1557_v22  ;;  %2050 = vmatprep.subr.bf16.mxu0 %v11515_v11  ;;  %2091 = vmatprep.subr.bf16.mxu1 %v11516_v23  ;;  %v10071_v22 = vld [vmem:[#allocation8 + $0xa0] ss:$16 sps:$4 sm:$0xff]   ;;  %v10073_v24 = vld [vmem:[#allocation8 + $0xa8] ss:$16 sps:$4 sm:$0xff]   ;;  %v10079_v11 = vld [vmem:[#allocation8 + $0xcc] ss:$16 sps:$4 sm:$0xff]  }
 0x2aa   :  { %9156 = vrcp.f32 %v1568_v48  ;;  %v10083_v23 = vld [vmem:[#allocation8 + $0xc0] ss:$16 sps:$4 sm:$0xff]   ;;  %v10097_v13 = vld [vmem:[#allocation8 + $0xe8] ss:$16 sps:$4 sm:$0xff]  }
 0x2ab   :  { %v10125_v48 = vld [vmem:[#allocation11 + $0x28] ss:$16 sps:$4 sm:$0xff]  }
 0x2ac   :  { %2051 = vmatpush1.bf16.msra.mxu0 %v11517_v25  ;;  %2092 = vmatpush1.bf16.msra.mxu1 %v11518_v12  ;;  %v10085_v25 = vld [vmem:[#allocation8 + $0xc8] ss:$16 sps:$4 sm:$0xff]   ;;  %v10089_v12 = vld [vmem:[#allocation8 + $0xe4] ss:$16 sps:$4 sm:$0xff]   ;;  %11540 = vst [vmem:[#allocation22_spill] sm:$0xff] %v10125_v48 }
 0x2ad   :  { %2052 = vmatprep.subr.bf16.mxu0 %v11519_v27  ;;  %2093 = vmatprep.subr.bf16.mxu1 %v11520_v28  ;;  %v10091_v27 = vld [vmem:[#allocation8 + $0xec] ss:$16 sps:$4 sm:$0xff]   ;;  %v10095_v28 = vld [vmem:[#allocation8 + $0xe0] ss:$16 sps:$4 sm:$0xff]  }
 0x2b0   :  { %2053 = vmatpush1.bf16.msra.mxu0 %v11521_v14  ;;  %2094 = vmatpush1.bf16.msra.mxu1 %v11522_v16  ;;  %v10107_v14 = vld [vmem:[#allocation11 + $0x4] ss:$16 sps:$4 sm:$0xff]   ;;  %v10109_v16 = vld [vmem:[#allocation11 + $0xc] ss:$16 sps:$4 sm:$0xff]  }
 0x2b1   :  { %v9151_v17 = vpop.eup %9150  ;;  %2054 = vmatprep.subr.bf16.mxu0 %v11523_v18  ;;  %2095 = vmatprep.subr.bf16.mxu1 %v11524_v20  ;;  %v10113_v18 = vld [vmem:[#allocation11 + $0x8] ss:$16 sps:$4 sm:$0xff]   ;;  %v10119_v20 = vld [vmem:[#allocation11 + $0x24] ss:$16 sps:$4 sm:$0xff]  }
 0x2b2   :  { %v9153_v42 = vpop.eup %9152  ;;  %11536 = vst [vmem:[#allocation18_spill] sm:$0xff] %v10113_v18  ;;  %11537 = vst [vmem:[#allocation19_spill] sm:$0xff] %v10119_v20 }
 0x2b3   :  { %v9155_v46 = vpop.eup %9154  ;;  %v1572_v43 = vmul.f32 %v9153_v42, %v9151_v17  ;;  %v10111_v17 = vld [vmem:[#allocation11] ss:$16 sps:$4 sm:$0xff]   ;;  %v10121_v42 = vld [vmem:[#allocation11 + $0x2c] ss:$16 sps:$4 sm:$0xff]  }
 0x2b4   :  { %2055 = vmatpush1.bf16.msra.mxu0 %v11525_v40  ;;  %2096 = vmatpush1.bf16.msra.mxu1 %v11526_v39  ;;  %v1571_v49 = vmul.f32 %v9155_v46, %v9889_v41  ;;  %v10001_v41 = vld [vmem:[#allocation8 + $0xc] ss:$16 sps:$4 sm:$0xff]   ;;  %v9157_v29 = vpop.eup %9156  ;;  %11535 = vst [vmem:[#allocation17_spill] sm:$0xff] %v10111_v17  ;;  %11538 = vst [vmem:[#allocation20_spill] sm:$0xff] %v10121_v42  ;;  %v10123_v46 = vld [vmem:[#allocation11 + $0x20] ss:$16 sps:$4 sm:$0xff]  }
 0x2b5   :  { %2056 = vmatprep.subr.bf16.mxu0 %v11527_v44  ;;  %2097 = vmatprep.subr.bf16.mxu1 %v11528_v31  ;;  %11539 = vst [vmem:[#allocation21_spill] sm:$0xff] %v10123_v46  ;;  %v10131_v40 = vld [vmem:[#allocation11 + $0x44] ss:$16 sps:$4 sm:$0xff]   ;;  %v10133_v39 = vld [vmem:[#allocation11 + $0x4c] ss:$16 sps:$4 sm:$0xff]  }
 0x2b6   :  { %v9992_v36 = vadd.f32 %v1572_v43, %v1571_v49  ;;  %11541 = vst [vmem:[#allocation23_spill] sm:$0xff] %v10131_v40  ;;  %11542 = vst [vmem:[#allocation24_spill] sm:$0xff] %v10133_v39  ;;  %v10135_v49 = vld [vmem:[#allocation11 + $0x40] ss:$16 sps:$4 sm:$0xff]   ;;  %v10137_v43 = vld [vmem:[#allocation11 + $0x48] ss:$16 sps:$4 sm:$0xff]  }
 0x2b7   :  { %11543 = vst [vmem:[#allocation25_spill] sm:$0xff] %v10135_v49  ;;  %11544 = vst [vmem:[#allocation26_spill] sm:$0xff] %v10137_v43  ;;  %v10143_v44 = vld [vmem:[#allocation11 + $0x64] ss:$16 sps:$4 sm:$0xff]   ;;  %v10145_v31 = vld [vmem:[#allocation11 + $0x6c] ss:$16 sps:$4 sm:$0xff]  }
 0x2b8   :  { %2057 = vmatpush1.bf16.msra.mxu0 %v11529_v0  ;;  %2098 = vmatpush1.bf16.msra.mxu1 %v11530_v45  ;;  %9158 = vtanh.f32 %v9992_v36  ;;  %11545 = vst [vmem:[#allocation27_spill] sm:$0xff] %v10143_v44  ;;  %11546 = vst [vmem:[#allocation28_spill] sm:$0xff] %v10145_v31  ;;  %v10147_v0 = vld [vmem:[#allocation11 + $0x60] ss:$16 sps:$4 sm:$0xff]   ;;  %v10149_v45 = vld [vmem:[#allocation11 + $0x68] ss:$16 sps:$4 sm:$0xff]  }
 0x2b9   :  { %2058 = vmatprep.subr.bf16.mxu0 %v11531_v35  ;;  %2099 = vmatprep.subr.bf16.mxu1 %v11532_v37  ;;  %11547 = vst [vmem:[#allocation29_spill] sm:$0xff] %v10147_v0  ;;  %11548 = vst [vmem:[#allocation30_spill] sm:$0xff] %v10149_v45  ;;  %v10155_v35 = vld [vmem:[#allocation11 + $0x84] ss:$16 sps:$4 sm:$0xff]   ;;  %v10157_v37 = vld [vmem:[#allocation11 + $0x8c] ss:$16 sps:$4 sm:$0xff]  }
 0x2ba   :  { %11549 = vst [vmem:[#allocation31_spill] sm:$0xff] %v10155_v35  ;;  %11550 = vst [vmem:[#allocation32_spill] sm:$0xff] %v10157_v37 }
 0x2bc   :  { %2059 = vmatpush1.bf16.msra.mxu0 %v11533_v33  ;;  %2100 = vmatpush1.bf16.msra.mxu1 %v11534_v30  ;;  %v10159_v33 = vld [vmem:[#allocation11 + $0x80] ss:$16 sps:$4 sm:$0xff]   ;;  %v10161_v30 = vld [vmem:[#allocation11 + $0x88] ss:$16 sps:$4 sm:$0xff]  }
 0x2bd   :  { %2349 = vmatprep.subr.bf16.mxu0 %v9999_v38  ;;  %2390 = vmatprep.subr.bf16.mxu1 %v10001_v41  ;;  %11551 = vst [vmem:[#allocation33_spill] sm:$0xff] %v10159_v33  ;;  %11552 = vst [vmem:[#allocation34_spill] sm:$0xff] %v10161_v30 }
 0x2c2   :  { %v9159_v50 = vpop.eup %9158 }
 0x2c3   :  { %v1575_v51 = vmul.f32 %v9159_v50, %v9157_v29  ;;  %v10167_v29 = vld [vmem:[#allocation11 + $0xa4] ss:$16 sps:$4 sm:$0xff]   ;;  %v10169_v50 = vld [vmem:[#allocation11 + $0xac] ss:$16 sps:$4 sm:$0xff]  }
 0x2c4   :  { %11553 = vst [vmem:[#allocation35_spill] sm:$0xff] %v10167_v29  ;;  %11554 = vst [vmem:[#allocation36_spill] sm:$0xff] %v10169_v50 }
 0x2c5   :  { %v10011_v54 = vpack.c.bf16 %v1575_v51, %v1575_v51  ;;  %v10171_v51 = vld [vmem:[#allocation11 + $0xa0] ss:$16 sps:$4 sm:$0xff]  }
 0x2c6   :  { %11555 = vst [vmem:[#allocation37_spill] sm:$0xff] %v10171_v51 }
 0x2c7   :  { %2077 = vmatmul.mubr.bf16.vlgmr.msra.gmra.mrb[24].mxu0 %v10011_v54  ;;  %2118 = vmatmul.mubr.bf16.vlgmr.msra.gmra.mrb[24].mxu1 %v10011_v54 }
 0x2c8   :  { %2350 = vmatpush1.bf16.msra.mxu0 %v10007_v52  ;;  %2391 = vmatpush1.bf16.msra.mxu1 %v10009_v53 }
 0x2c9   :  { %2351 = vmatprep.subr.bf16.mxu0 %v10013_v55  ;;  %2392 = vmatprep.subr.bf16.mxu1 %v10015_v56 }
 0x2ca   :  { %2381 = vmatprep.mubr.bf16.mxu0 %v11509_v32  ;;  %2422 = vmatprep.mubr.bf16.mxu1 %v11509_v32 }
 0x2cc   :  { %2352 = vmatpush1.bf16.msra.mxu0 %v10021_v57  ;;  %2393 = vmatpush1.bf16.msra.mxu1 %v10023_v58 }
 0x2cd   :  { %2353 = vmatprep.subr.bf16.mxu0 %v10027_v59  ;;  %2394 = vmatprep.subr.bf16.mxu1 %v10029_v61 }
 0x2d0   :  { %2354 = vmatpush1.bf16.msra.mxu0 %v10035_v63  ;;  %2395 = vmatpush1.bf16.msra.mxu1 %v10037_v1 }
 0x2d1   :  { %2355 = vmatprep.subr.bf16.mxu0 %v10041_v2  ;;  %2396 = vmatprep.subr.bf16.mxu1 %v10043_v3 }
 0x2d4   :  { %2356 = vmatpush1.bf16.msra.mxu0 %v10047_v4  ;;  %2397 = vmatpush1.bf16.msra.mxu1 %v10049_v5 }
 0x2d5   :  { %2357 = vmatprep.subr.bf16.mxu0 %v10053_v6  ;;  %2398 = vmatprep.subr.bf16.mxu1 %v10055_v7 }
 0x2d8   :  { %2358 = vmatpush1.bf16.msra.mxu0 %v10059_v8  ;;  %2399 = vmatpush1.bf16.msra.mxu1 %v10061_v9 }
 0x2d9   :  { %2359 = vmatprep.subr.bf16.mxu0 %v10065_v10  ;;  %2400 = vmatprep.subr.bf16.mxu1 %v10067_v21 }
 0x2dc   :  { %2360 = vmatpush1.bf16.msra.mxu0 %v10071_v22  ;;  %2401 = vmatpush1.bf16.msra.mxu1 %v10073_v24 }
 0x2dd   :  { %2361 = vmatprep.subr.bf16.mxu0 %v10077_v26  ;;  %2402 = vmatprep.subr.bf16.mxu1 %v10079_v11 }
 0x2e0   :  { %2362 = vmatpush1.bf16.msra.mxu0 %v10083_v23  ;;  %2403 = vmatpush1.bf16.msra.mxu1 %v10085_v25 }
 0x2e1   :  { %2363 = vmatprep.subr.bf16.mxu0 %v10089_v12  ;;  %2404 = vmatprep.subr.bf16.mxu1 %v10091_v27 }
 0x2e4   :  { %2364 = vmatpush1.bf16.msra.mxu0 %v10095_v28  ;;  %2405 = vmatpush1.bf16.msra.mxu1 %v10097_v13 }
 0x2e5   :  { %2718 = vmatprep.subr.bf16.mxu0 %v10107_v14  ;;  %2759 = vmatprep.subr.bf16.mxu1 %v10109_v16 }
 0x2e7   :  { %2382 = vmatmul.mubr.bf16.vlgmr.msra.gmra.mrb[28].mxu0 %v10011_v54  ;;  %2423 = vmatmul.mubr.bf16.vlgmr.msra.gmra.mrb[28].mxu1 %v10011_v54  ;;  %v10173_v54 = vld [vmem:[#allocation11 + $0xa8] ss:$16 sps:$4 sm:$0xff]  }
 0x2e8   :  { %2750 = vmatprep.mubr.bf16.mxu0 %v11509_v32  ;;  %2791 = vmatprep.mubr.bf16.mxu1 %v11509_v32  ;;  %11556 = vst [vmem:[#allocation38_spill] sm:$0xff] %v10173_v54 }
 0x2e9   :  { %2719 = vmatpush1.bf16.msra.mxu0 %v10111_v17  ;;  %2760 = vmatpush1.bf16.msra.mxu1 %v10113_v18 }
 0x2ea   :  { %2720 = vmatprep.subr.bf16.mxu0 %v10119_v20  ;;  %2761 = vmatprep.subr.bf16.mxu1 %v10121_v42 }
 0x2ed   :  { %2721 = vmatpush1.bf16.msra.mxu0 %v10123_v46  ;;  %2762 = vmatpush1.bf16.msra.mxu1 %v10125_v48 }
 0x2ee   :  { %2722 = vmatprep.subr.bf16.mxu0 %v10131_v40  ;;  %2763 = vmatprep.subr.bf16.mxu1 %v10133_v39 }
 0x2f1   :  { %2723 = vmatpush1.bf16.msra.mxu0 %v10135_v49  ;;  %2764 = vmatpush1.bf16.msra.mxu1 %v10137_v43 }
 0x2f2   :  { %2724 = vmatprep.subr.bf16.mxu0 %v10143_v44  ;;  %2765 = vmatprep.subr.bf16.mxu1 %v10145_v31 }
 0x2f5   :  { %2725 = vmatpush1.bf16.msra.mxu0 %v10147_v0  ;;  %2766 = vmatpush1.bf16.msra.mxu1 %v10149_v45 }
 0x2f6   :  { %2726 = vmatprep.subr.bf16.mxu0 %v10155_v35  ;;  %2767 = vmatprep.subr.bf16.mxu1 %v10157_v37  ;;  %v10179_v37 = vld [vmem:[#allocation11 + $0xc4] ss:$16 sps:$4 sm:$0xff]   ;;  %v10185_v35 = vld [vmem:[#allocation11 + $0xc8] ss:$16 sps:$4 sm:$0xff]  }
 0x2f7   :  { %11557 = vst [vmem:[#allocation39_spill] sm:$0xff] %v10179_v37  ;;  %11560 = vst [vmem:[#allocation42_spill] sm:$0xff] %v10185_v35 }
 0x2f9   :  { %2727 = vmatpush1.bf16.msra.mxu0 %v10159_v33  ;;  %2768 = vmatpush1.bf16.msra.mxu1 %v10161_v30  ;;  %v10181_v33 = vld [vmem:[#allocation11 + $0xcc] ss:$16 sps:$4 sm:$0xff]   ;;  %v10183_v30 = vld [vmem:[#allocation11 + $0xc0] ss:$16 sps:$4 sm:$0xff]  }
 0x2fa   :  { %2728 = vmatprep.subr.bf16.mxu0 %v10167_v29  ;;  %2769 = vmatprep.subr.bf16.mxu1 %v10169_v50  ;;  %11558 = vst [vmem:[#allocation40_spill] sm:$0xff] %v10181_v33  ;;  %11559 = vst [vmem:[#allocation41_spill] sm:$0xff] %v10183_v30  ;;  %v10191_v50 = vld [vmem:[#allocation11 + $0xe4] ss:$16 sps:$4 sm:$0xff]   ;;  %v10197_v29 = vld [vmem:[#allocation11 + $0xe8] ss:$16 sps:$4 sm:$0xff]  }
 0x2fb   :  { %11561 = vst [vmem:[#allocation43_spill] sm:$0xff] %v10191_v50  ;;  %11564 = vst [vmem:[#allocation46_spill] sm:$0xff] %v10197_v29 }
 0x2fd   :  { %2729 = vmatpush1.bf16.msra.mxu0 %v10171_v51  ;;  %2770 = vmatpush1.bf16.msra.mxu1 %v10173_v54  ;;  %v10193_v51 = vld [vmem:[#allocation11 + $0xec] ss:$16 sps:$4 sm:$0xff]   ;;  %v10195_v54 = vld [vmem:[#allocation11 + $0xe0] ss:$16 sps:$4 sm:$0xff]  }
 0x2fe   :  { %2730 = vmatprep.subr.bf16.mxu0 %v10179_v37  ;;  %2771 = vmatprep.subr.bf16.mxu1 %v10181_v33  ;;  %11562 = vst [vmem:[#allocation44_spill] sm:$0xff] %v10193_v51  ;;  %11563 = vst [vmem:[#allocation45_spill] sm:$0xff] %v10195_v54  ;;  %v10203_v33 = vld [vmem:[#allocation9 + $0x4] ss:$16 sps:$4 sm:$0xff]  }
 0x2ff   :  { %11565 = vst [vmem:[#allocation47_spill] sm:$0xff] %v10203_v33 }
 0x301   :  { %2731 = vmatpush1.bf16.msra.mxu0 %v10183_v30  ;;  %2772 = vmatpush1.bf16.msra.mxu1 %v10185_v35  ;;  %v10205_v30 = vld [vmem:[#allocation9 + $0xc] ss:$16 sps:$4 sm:$0xff]  }
 0x302   :  { %2732 = vmatprep.subr.bf16.mxu0 %v10191_v50  ;;  %2773 = vmatprep.subr.bf16.mxu1 %v10193_v51  ;;  %11566 = vst [vmem:[#allocation48_spill] sm:$0xff] %v10205_v30 }
 0x305   :  { %2733 = vmatpush1.bf16.msra.mxu0 %v10195_v54  ;;  %2774 = vmatpush1.bf16.msra.mxu1 %v10197_v29 }
 0x306   :  { %2960 = vmatprep.subr.bf16.mxu0 %v10203_v33  ;;  %3001 = vmatprep.subr.bf16.mxu1 %v10205_v30 }
 0x372   :  { %v1836_v35 = vpop.f32.mrb[20].mxu0  ;;  %v1877_v37 = vpop.f32.mrb[20].mxu1 }
 0x373   :  { %v1838_v45 = vpop.f32.mrb[21].mxu0  ;;  %v1879_v0 = vpop.f32.mrb[21].mxu1 }
 0x374   :  { %v1840_v31 = vpop.f32.mrb[22].mxu0  ;;  %v1881_v50 = vpop.f32.mrb[22].mxu1 }
 0x375   :  { %v1841_v44 = vpop.f32.mrb[23].mxu0  ;;  %v1882_v51 = vpop.f32.mrb[23].mxu1 }
 0x39a   :  { %v2078_v43 = vpop.f32.mrb[24].mxu0  ;;  %v2119_v54 = vpop.f32.mrb[24].mxu1 }
 0x39b   :  { %v2079_v49 = vadd.f32 %v2078_v43, %v1836_v35  ;;  %v2120_v29 = vadd.f32 %v2119_v54, %v1877_v37  ;;  %v2080_v39 = vpop.f32.mrb[25].mxu0  ;;  %v2121_v40 = vpop.f32.mrb[25].mxu1 }
 0x39c   :  { %v2081_v48 = vadd.f32 %v2080_v39, %v1838_v45  ;;  %v2122_v46 = vadd.f32 %v2121_v40, %v1879_v0  ;;  %v2082_v42 = vpop.f32.mrb[26].mxu0  ;;  %v2123_v33 = vpop.f32.mrb[26].mxu1 }
 0x39d   :  { %v2126_v30 = vadd.f32 %v2079_v49, %v9941_v60  ;;  %v2083_v20 = vpop.f32.mrb[27].mxu0  ;;  %v2124_v18 = vpop.f32.mrb[27].mxu1  ;;  %v2128_v35 = vadd.f32 %v2120_v29, %v9956_v19 }
 0x39e   :  { %v2127_v17 = vadd.f32 %v2081_v48, %v9945_v62  ;;  %v2129_v44 = vadd.f32 %v2122_v46, %v9951_v15 }
 0x39f   :  { %v7887_v31 = vmul.f32 -1.442695, %v2126_v30 }
 0x3a0   :  { %v7888_v50 = vmul.f32 -1.442695, %v2127_v17  ;;  %v7889_v43 = vmul.f32 -1.442695, %v2129_v44 }
 0x3a1   :  { %9160 = vpow2.f32 %v7887_v31 }
 0x3a2   :  { %9162 = vpow2.f32 %v7888_v50 }
 0x3a3   :  { %9164 = vpow2.f32 %v7889_v43 }
 0x3a4   :  { %9166 = vtanh.f32 %v2128_v35 }
 0x3ab   :  { %v9161_v37 = vpop.eup %9160 }
 0x3ac   :  { %v9163_v39 = vpop.eup %9162  ;;  %v2133_v40 = vadd.f32 1.0, %v9161_v37 }
 0x3ad   :  { %v2139_v42 = vadd.f32 1.0, %v9163_v39  ;;  %v9165_v18 = vpop.eup %9164 }
 0x3ae   :  { %9168 = vrcp.f32 %v2133_v40  ;;  %v9167_v20 = vpop.eup %9166  ;;  %v2146_v0 = vadd.f32 1.0, %v9165_v18 }
 0x3af   :  { %9170 = vrcp.f32 %v2139_v42  ;;  %v2156_v42 = vld [vmem:[#allocation2 + $0x2] ss:$8 sm:$0xf] }
 0x3b0   :  { %9172 = vrcp.f32 %v2146_v0 }
 0x3b8   :  { %v9169_v48 = vpop.eup %9168 }
 0x3b9   :  { %v9171_v49 = vpop.eup %9170  ;;  %v2150_v17 = vmul.f32 %v9169_v48, %v9167_v20 }
 0x3ba   :  { %v2149_v45 = vmul.f32 %v9171_v49, %v9959_v34  ;;  %v2383_v46 = vpop.f32.mrb[28].mxu0  ;;  %v2424_v33 = vpop.f32.mrb[28].mxu1 }
 0x3bb   :  { %v2385_v30 = vpop.f32.mrb[29].mxu0  ;;  %v2426_v29 = vpop.f32.mrb[29].mxu1 }
 0x3bc   :  { %v10214_v51 = vadd.f32 %v2150_v17, %v2149_v45  ;;  %v2435_v54 = vcombine.low %v2383_v46, %v2385_v30  ;;  %v2436_v31 = vcombine.low %v2424_v33, %v2426_v29  ;;  %v2387_v50 = vpop.f32.mrb[30].mxu0  ;;  %v2428_v44 = vpop.f32.mrb[30].mxu1  ;;  %v10220_v46 = vld [vmem:[#allocation9] ss:$16 sps:$4 sm:$0xff]   ;;  %v10222_v33 = vld [vmem:[#allocation9 + $0x8] ss:$16 sps:$4 sm:$0xff]  }
 0x3bd   :  { %v2388_v43 = vpop.f32.mrb[31].mxu0  ;;  %v2429_v35 = vpop.f32.mrb[31].mxu1  ;;  %v10224_v29 = vld [vmem:[#allocation9 + $0x24] ss:$16 sps:$4 sm:$0xff]   ;;  %v10230_v50 = vld [vmem:[#allocation9 + $0x20] ss:$16 sps:$4 sm:$0xff]  }
 0x3be   :  { %v2443_v37 = vrot.slane %v2435_v54, %v9884_v47  ;;  %v2450_v39 = vrot.slane %v2436_v31, %v9884_v47  ;;  %9174 = vtanh.f32 %v10214_v51  ;;  %v9173_v49 = vpop.eup %9172  ;;  %v10226_v54 = vld [vmem:[#allocation9 + $0x2c] ss:$16 sps:$4 sm:$0xff]   ;;  %v10232_v44 = vld [vmem:[#allocation9 + $0x28] ss:$16 sps:$4 sm:$0xff]   ;;  %v10236_v43 = vld [vmem:[#allocation9 + $0x44] ss:$16 sps:$4 sm:$0xff]  }
 0x3bf   :  { %v10238_v35 = vld [vmem:[#allocation9 + $0x4c] ss:$16 sps:$4 sm:$0xff]  }
 0x3c0   :  { %v2451_v34 = vcombine.low %v2443_v37, %v2450_v39  ;;  %11567 = vst [vmem:[#allocation49_spill] sm:$0xff] %v10238_v35 }
 0x3c2   :  { %v2458_v40 = vrot.slane %v2451_v34, %v9884_v47 }
 0x3c4   :  { %v2460_v18 = vadd.f32 %v2458_v40, %v2156_v42  ;;  %v10244_v40 = vld [vmem:[#allocation9 + $0x40] ss:$16 sps:$4 sm:$0xff]   ;;  %v10246_v42 = vld [vmem:[#allocation9 + $0x48] ss:$16 sps:$4 sm:$0xff]  }
 0x3c5   :  { %11568 = vst [vmem:[#allocation50_spill] sm:$0xff] %v10244_v40  ;;  %11569 = vst [vmem:[#allocation51_spill] sm:$0xff] %v10246_v42 }
 0x3c6   :  { %v7922_v20 = vmul.f32 -1.442695, %v2460_v18  ;;  %v2468_v48 = vrot.slane %v2460_v18, 1  ;;  %v2479_v31 = vrot.slane %v2460_v18, 3  ;;  %v2476_v34 = vrot.slane %v2460_v18, 2 }
 0x3c8   :  { %v9175_v17 = vpop.eup %9174  ;;  %9176 = vpow2.f32 %v7922_v20  ;;  %v7923_v45 = vmul.f32 -1.442695, %v2468_v48  ;;  %v7924_v37 = vmul.f32 -1.442695, %v2479_v31  ;;  %v10250_v48 = vld [vmem:[#allocation9 + $0x64] ss:$16 sps:$4 sm:$0xff]  }
 0x3c9   :  { %v2153_v0 = vmul.f32 %v9175_v17, %v9173_v49  ;;  %11570 = vst [vmem:[#allocation52_spill] sm:$0xff] %v10250_v48  ;;  %v10252_v49 = vld [vmem:[#allocation9 + $0x6c] ss:$16 sps:$4 sm:$0xff]  }
 0x3ca   :  { %9178 = vpow2.f32 %v7923_v45  ;;  %11571 = vst [vmem:[#allocation53_spill] sm:$0xff] %v10252_v49  ;;  %v10256_v45 = vld [vmem:[#allocation9 + $0x60] ss:$16 sps:$4 sm:$0xff]   ;;  %v10264_v31 = vld [vmem:[#allocation9 + $0x8c] ss:$16 sps:$4 sm:$0xff]  }
 0x3cb   :  { %2154 = vst [vmem:[#allocation12 + $0x1] sm:$0x1] %v2153_v0  ;;  %v2525_v30 = vpack.c.bf16 %v2153_v0, %v2153_v0  ;;  %9180 = vpow2.f32 %v7924_v37  ;;  %11572 = vst [vmem:[#allocation54_spill] sm:$0xff] %v10256_v45  ;;  %v10258_v0 = vld [vmem:[#allocation9 + $0x68] ss:$16 sps:$4 sm:$0xff]  }
 0x3cc   :  { %11573 = vst [vmem:[#allocation55_spill] sm:$0xff] %v10258_v0  ;;  %11575 = vst [vmem:[#allocation57_spill] sm:$0xff] %v10264_v31  ;;  %v10268_v37 = vld [vmem:[#allocation9 + $0x80] ss:$16 sps:$4 sm:$0xff]  }
 0x3cd   :  { %2751 = vmatmul.mubr.bf16.vlgmr.msra.gmra.mrb[32].mxu0 %v2525_v30  ;;  %2792 = vmatmul.mubr.bf16.vlgmr.msra.gmra.mrb[32].mxu1 %v2525_v30  ;;  %v10262_v30 = vld [vmem:[#allocation9 + $0x84] ss:$16 sps:$4 sm:$0xff]   ;;  %11576 = vst [vmem:[#allocation58_spill] sm:$0xff] %v10268_v37 }
 0x3ce   :  { %2961 = vmatpush1.bf16.msra.mxu0 %v10220_v46  ;;  %3002 = vmatpush1.bf16.msra.mxu1 %v10222_v33  ;;  %11574 = vst [vmem:[#allocation56_spill] sm:$0xff] %v10262_v30 }
 0x3cf   :  { %2962 = vmatprep.subr.bf16.mxu0 %v10224_v29  ;;  %3003 = vmatprep.subr.bf16.mxu1 %v10226_v54 }
 0x3d0   :  { %2992 = vmatprep.mubr.bf16.mxu0 %v11509_v32  ;;  %3033 = vmatprep.mubr.bf16.mxu1 %v11509_v32 }
 0x3d2   :  { %v9177_v39 = vpop.eup %9176  ;;  %2963 = vmatpush1.bf16.msra.mxu0 %v10230_v50  ;;  %3004 = vmatpush1.bf16.msra.mxu1 %v10232_v44 }
 0x3d3   :  { %v2464_v20 = vadd.f32 1.0, %v9177_v39  ;;  %2964 = vmatprep.subr.bf16.mxu0 %v10236_v43  ;;  %3005 = vmatprep.subr.bf16.mxu1 %v10238_v35  ;;  %v10270_v39 = vld [vmem:[#allocation9 + $0x88] ss:$16 sps:$4 sm:$0xff]   ;;  %v10301_v35 = vld [vmem:[#allocation9 + $0xec] ss:$16 sps:$4 sm:$0xff]  }
 0x3d4   :  { %v9179_v17 = vpop.eup %9178  ;;  %11577 = vst [vmem:[#allocation59_spill] sm:$0xff] %v10270_v39 }
 0x3d5   :  { %9182 = vrcp.f32 %v2464_v20  ;;  %v2473_v18 = vadd.f32 1.0, %v9179_v17  ;;  %v10276_v20 = vld [vmem:[#allocation9 + $0xac] ss:$16 sps:$4 sm:$0xff]   ;;  %v9181_v17 = vpop.eup %9180 }
 0x3d6   :  { %9184 = vtanh.f32 %v2476_v34  ;;  %2965 = vmatpush1.bf16.msra.mxu0 %v10244_v40  ;;  %3006 = vmatpush1.bf16.msra.mxu1 %v10246_v42  ;;  %v10274_v34 = vld [vmem:[#allocation9 + $0xa4] ss:$16 sps:$4 sm:$0xff]   ;;  %11579 = vst [vmem:[#allocation61_spill] sm:$0xff] %v10276_v20  ;;  %v2484_v42 = vadd.f32 1.0, %v9181_v17 }
 0x3d7   :  { %9186 = vrcp.f32 %v2473_v18  ;;  %2966 = vmatprep.subr.bf16.mxu0 %v10250_v48  ;;  %3007 = vmatprep.subr.bf16.mxu1 %v10252_v49  ;;  %11578 = vst [vmem:[#allocation60_spill] sm:$0xff] %v10274_v34  ;;  %v10280_v18 = vld [vmem:[#allocation9 + $0xa0] ss:$16 sps:$4 sm:$0xff]  }
 0x3d8   :  { %11580 = vst [vmem:[#allocation62_spill] sm:$0xff] %v10280_v18  ;;  %9188 = vrcp.f32 %v2484_v42 }
 0x3da   :  { %2967 = vmatpush1.bf16.msra.mxu0 %v10256_v45  ;;  %3008 = vmatpush1.bf16.msra.mxu1 %v10258_v0  ;;  %v10282_v0 = vld [vmem:[#allocation9 + $0xa8] ss:$16 sps:$4 sm:$0xff]  }
 0x3db   :  { %2968 = vmatprep.subr.bf16.mxu0 %v10262_v30  ;;  %3009 = vmatprep.subr.bf16.mxu1 %v10264_v31  ;;  %11581 = vst [vmem:[#allocation63_spill] sm:$0xff] %v10282_v0  ;;  %v10286_v30 = vld [vmem:[#allocation9 + $0xc4] ss:$16 sps:$4 sm:$0xff]   ;;  %v10288_v31 = vld [vmem:[#allocation9 + $0xcc] ss:$16 sps:$4 sm:$0xff]  }
 0x3de   :  { %2969 = vmatpush1.bf16.msra.mxu0 %v10268_v37  ;;  %3010 = vmatpush1.bf16.msra.mxu1 %v10270_v39  ;;  %v10292_v39 = vld [vmem:[#allocation9 + $0xc0] ss:$16 sps:$4 sm:$0xff]   ;;  %v10294_v37 = vld [vmem:[#allocation9 + $0xc8] ss:$16 sps:$4 sm:$0xff]  }
 0x3df   :  { %v9183_v45 = vpop.eup %9182  ;;  %2970 = vmatprep.subr.bf16.mxu0 %v10274_v34  ;;  %3011 = vmatprep.subr.bf16.mxu1 %v10276_v20  ;;  %v10299_v20 = vld [vmem:[#allocation9 + $0xe4] ss:$16 sps:$4 sm:$0xff]  }
 0x3e0   :  { %v9185_v49 = vpop.eup %9184 }
 0x3e1   :  { %v9187_v48 = vpop.eup %9186  ;;  %v2488_v34 = vmul.f32 %v9185_v49, %v9183_v45 }
 0x3e2   :  { %2971 = vmatpush1.bf16.msra.mxu0 %v10280_v18  ;;  %3012 = vmatpush1.bf16.msra.mxu1 %v10282_v0  ;;  %v2487_v40 = vmul.f32 %v9187_v48, %v9992_v36  ;;  %v10307_v0 = vld [vmem:[#allocation9 + $0xe0] ss:$16 sps:$4 sm:$0xff]   ;;  %v10309_v18 = vld [vmem:[#allocation9 + $0xe8] ss:$16 sps:$4 sm:$0xff]   ;;  %v9189_v36 = vpop.eup %9188 }
 0x3e3   :  { %2972 = vmatprep.subr.bf16.mxu0 %v10286_v30  ;;  %3013 = vmatprep.subr.bf16.mxu1 %v10288_v31 }
 0x3e4   :  { %v10303_v17 = vadd.f32 %v2488_v34, %v2487_v40 }
 0x3e6   :  { %2973 = vmatpush1.bf16.msra.mxu0 %v10292_v39  ;;  %3014 = vmatpush1.bf16.msra.mxu1 %v10294_v37  ;;  %9190 = vtanh.f32 %v10303_v17 }
 0x3e7   :  { %2974 = vmatprep.subr.bf16.mxu0 %v10299_v20  ;;  %3015 = vmatprep.subr.bf16.mxu1 %v10301_v35 }
 0x3ea   :  { %2975 = vmatpush1.bf16.msra.mxu0 %v10307_v0  ;;  %3016 = vmatpush1.bf16.msra.mxu1 %v10309_v18 }
 0x3eb   :  { %3265 = vmatprep.subr.bf16.mxu0 %v9999_v38  ;;  %3306 = vmatprep.subr.bf16.mxu1 %v10001_v41  ;;  %v11582_v38 = vld [vmem:[#allocation17_spill] sm:$0xff]  ;;  %v11583_v41 = vld [vmem:[#allocation18_spill] sm:$0xff] }
 0x3f0   :  { %v9191_v40 = vpop.eup %9190 }
 0x3f1   :  { %v2491_v42 = vmul.f32 %v9191_v40, %v9189_v36 }
 0x3f3   :  { %v2492_v48 = vpack.c.bf16 %v2491_v42, %v2491_v42 }
 0x3f5   :  { %2993 = vmatmul.mubr.bf16.vlgmr.msra.gmra.mrb[36].mxu0 %v2492_v48  ;;  %3034 = vmatmul.mubr.bf16.vlgmr.msra.gmra.mrb[36].mxu1 %v2492_v48 }
 0x3f6   :  { %3266 = vmatpush1.bf16.msra.mxu0 %v10007_v52  ;;  %3307 = vmatpush1.bf16.msra.mxu1 %v10009_v53  ;;  %v11584_v52 = vld [vmem:[#allocation19_spill] sm:$0xff]  ;;  %v11585_v53 = vld [vmem:[#allocation20_spill] sm:$0xff] }
 0x3f7   :  { %3267 = vmatprep.subr.bf16.mxu0 %v10013_v55  ;;  %3308 = vmatprep.subr.bf16.mxu1 %v10015_v56  ;;  %v11586_v55 = vld [vmem:[#allocation21_spill] sm:$0xff]  ;;  %v11587_v56 = vld [vmem:[#allocation22_spill] sm:$0xff] }
 0x3f8   :  { %3297 = vmatprep.mubr.bf16.mxu0 %v11509_v32  ;;  %3338 = vmatprep.mubr.bf16.mxu1 %v11509_v32 }
 0x3fa   :  { %3268 = vmatpush1.bf16.msra.mxu0 %v10021_v57  ;;  %3309 = vmatpush1.bf16.msra.mxu1 %v10023_v58  ;;  %v11588_v57 = vld [vmem:[#allocation23_spill] sm:$0xff]  ;;  %v11589_v58 = vld [vmem:[#allocation24_spill] sm:$0xff] }
 0x3fb   :  { %3269 = vmatprep.subr.bf16.mxu0 %v10027_v59  ;;  %3310 = vmatprep.subr.bf16.mxu1 %v10029_v61  ;;  %v11590_v59 = vld [vmem:[#allocation25_spill] sm:$0xff]  ;;  %v11591_v61 = vld [vmem:[#allocation26_spill] sm:$0xff] }
 0x3fe   :  { %3270 = vmatpush1.bf16.msra.mxu0 %v10035_v63  ;;  %3311 = vmatpush1.bf16.msra.mxu1 %v10037_v1  ;;  %v11592_v63 = vld [vmem:[#allocation27_spill] sm:$0xff]  ;;  %v11593_v1 = vld [vmem:[#allocation28_spill] sm:$0xff] }
 0x3ff   :  { %3271 = vmatprep.subr.bf16.mxu0 %v10041_v2  ;;  %3312 = vmatprep.subr.bf16.mxu1 %v10043_v3  ;;  %v11594_v2 = vld [vmem:[#allocation29_spill] sm:$0xff]  ;;  %v11595_v3 = vld [vmem:[#allocation30_spill] sm:$0xff] }
 0x402   :  { %3272 = vmatpush1.bf16.msra.mxu0 %v10047_v4  ;;  %3313 = vmatpush1.bf16.msra.mxu1 %v10049_v5  ;;  %v11596_v4 = vld [vmem:[#allocation31_spill] sm:$0xff]  ;;  %v11597_v5 = vld [vmem:[#allocation32_spill] sm:$0xff] }
 0x403   :  { %3273 = vmatprep.subr.bf16.mxu0 %v10053_v6  ;;  %3314 = vmatprep.subr.bf16.mxu1 %v10055_v7  ;;  %v11598_v6 = vld [vmem:[#allocation33_spill] sm:$0xff]  ;;  %v11599_v7 = vld [vmem:[#allocation34_spill] sm:$0xff] }
 0x406   :  { %3274 = vmatpush1.bf16.msra.mxu0 %v10059_v8  ;;  %3315 = vmatpush1.bf16.msra.mxu1 %v10061_v9  ;;  %v11600_v8 = vld [vmem:[#allocation35_spill] sm:$0xff]  ;;  %v11601_v9 = vld [vmem:[#allocation36_spill] sm:$0xff] }
 0x407   :  { %3275 = vmatprep.subr.bf16.mxu0 %v10065_v10  ;;  %3316 = vmatprep.subr.bf16.mxu1 %v10067_v21  ;;  %v11602_v10 = vld [vmem:[#allocation37_spill] sm:$0xff]  ;;  %v11603_v21 = vld [vmem:[#allocation38_spill] sm:$0xff] }
 0x40a   :  { %3276 = vmatpush1.bf16.msra.mxu0 %v10071_v22  ;;  %3317 = vmatpush1.bf16.msra.mxu1 %v10073_v24  ;;  %v11604_v22 = vld [vmem:[#allocation39_spill] sm:$0xff]  ;;  %v11605_v24 = vld [vmem:[#allocation40_spill] sm:$0xff] }
 0x40b   :  { %3277 = vmatprep.subr.bf16.mxu0 %v10077_v26  ;;  %3318 = vmatprep.subr.bf16.mxu1 %v10079_v11  ;;  %v11606_v26 = vld [vmem:[#allocation41_spill] sm:$0xff]  ;;  %v11607_v11 = vld [vmem:[#allocation42_spill] sm:$0xff] }
 0x40e   :  { %3278 = vmatpush1.bf16.msra.mxu0 %v10083_v23  ;;  %3319 = vmatpush1.bf16.msra.mxu1 %v10085_v25  ;;  %v11608_v23 = vld [vmem:[#allocation43_spill] sm:$0xff]  ;;  %v11609_v25 = vld [vmem:[#allocation44_spill] sm:$0xff] }
 0x40f   :  { %3279 = vmatprep.subr.bf16.mxu0 %v10089_v12  ;;  %3320 = vmatprep.subr.bf16.mxu1 %v10091_v27  ;;  %v11610_v12 = vld [vmem:[#allocation45_spill] sm:$0xff]  ;;  %v11611_v27 = vld [vmem:[#allocation46_spill] sm:$0xff] }
 0x412   :  { %3280 = vmatpush1.bf16.msra.mxu0 %v10095_v28  ;;  %3321 = vmatpush1.bf16.msra.mxu1 %v10097_v13  ;;  %v11612_v28 = vld [vmem:[#allocation47_spill] sm:$0xff]  ;;  %v11613_v13 = vld [vmem:[#allocation48_spill] sm:$0xff] }
 0x413   :  { %3634 = vmatprep.subr.bf16.mxu0 %v10107_v14  ;;  %3675 = vmatprep.subr.bf16.mxu1 %v10109_v16 }
 0x415   :  { %3298 = vmatmul.mubr.bf16.vlgmr.msra.gmra.mrb[40].mxu0 %v2492_v48  ;;  %3339 = vmatmul.mubr.bf16.vlgmr.msra.gmra.mrb[40].mxu1 %v2492_v48 }
 0x416   :  { %3635 = vmatpush1.bf16.msra.mxu0 %v11582_v38  ;;  %3676 = vmatpush1.bf16.msra.mxu1 %v11583_v41 }
 0x417   :  { %3636 = vmatprep.subr.bf16.mxu0 %v11584_v52  ;;  %3677 = vmatprep.subr.bf16.mxu1 %v11585_v53 }
 0x418   :  { %3666 = vmatprep.mubr.bf16.mxu0 %v11509_v32  ;;  %3707 = vmatprep.mubr.bf16.mxu1 %v11509_v32 }
 0x41a   :  { %3637 = vmatpush1.bf16.msra.mxu0 %v11586_v55  ;;  %3678 = vmatpush1.bf16.msra.mxu1 %v11587_v56 }
 0x41b   :  { %3638 = vmatprep.subr.bf16.mxu0 %v11588_v57  ;;  %3679 = vmatprep.subr.bf16.mxu1 %v11589_v58 }
 0x41e   :  { %3639 = vmatpush1.bf16.msra.mxu0 %v11590_v59  ;;  %3680 = vmatpush1.bf16.msra.mxu1 %v11591_v61 }
 0x41f   :  { %3640 = vmatprep.subr.bf16.mxu0 %v11592_v63  ;;  %3681 = vmatprep.subr.bf16.mxu1 %v11593_v1 }
 0x422   :  { %3641 = vmatpush1.bf16.msra.mxu0 %v11594_v2  ;;  %3682 = vmatpush1.bf16.msra.mxu1 %v11595_v3 }
 0x423   :  { %3642 = vmatprep.subr.bf16.mxu0 %v11596_v4  ;;  %3683 = vmatprep.subr.bf16.mxu1 %v11597_v5 }
 0x426   :  { %3643 = vmatpush1.bf16.msra.mxu0 %v11598_v6  ;;  %3684 = vmatpush1.bf16.msra.mxu1 %v11599_v7 }
 0x427   :  { %3644 = vmatprep.subr.bf16.mxu0 %v11600_v8  ;;  %3685 = vmatprep.subr.bf16.mxu1 %v11601_v9 }
 0x42a   :  { %3645 = vmatpush1.bf16.msra.mxu0 %v11602_v10  ;;  %3686 = vmatpush1.bf16.msra.mxu1 %v11603_v21 }
 0x42b   :  { %3646 = vmatprep.subr.bf16.mxu0 %v11604_v22  ;;  %3687 = vmatprep.subr.bf16.mxu1 %v11605_v24 }
 0x42e   :  { %3647 = vmatpush1.bf16.msra.mxu0 %v11606_v26  ;;  %3688 = vmatpush1.bf16.msra.mxu1 %v11607_v11 }
 0x42f   :  { %3648 = vmatprep.subr.bf16.mxu0 %v11608_v23  ;;  %3689 = vmatprep.subr.bf16.mxu1 %v11609_v25 }
 0x432   :  { %3649 = vmatpush1.bf16.msra.mxu0 %v11610_v12  ;;  %3690 = vmatpush1.bf16.msra.mxu1 %v11611_v27 }
 0x433   :  { %3876 = vmatprep.subr.bf16.mxu0 %v11612_v28  ;;  %3917 = vmatprep.subr.bf16.mxu1 %v11613_v13 }
 0x4a0   :  { %v2752_v14 = vpop.f32.mrb[32].mxu0  ;;  %v2793_v16 = vpop.f32.mrb[32].mxu1 }
 0x4a1   :  { %v2754_v49 = vpop.f32.mrb[33].mxu0  ;;  %v2795_v45 = vpop.f32.mrb[33].mxu1 }
 0x4a2   :  { %v2756_v34 = vpop.f32.mrb[34].mxu0  ;;  %v2797_v36 = vpop.f32.mrb[34].mxu1 }
 0x4a3   :  { %v2757_v40 = vpop.f32.mrb[35].mxu0  ;;  %v2798_v42 = vpop.f32.mrb[35].mxu1 }
 0x4c8   :  { %v2994_v48 = vpop.f32.mrb[36].mxu0  ;;  %v3035_v38 = vpop.f32.mrb[36].mxu1 }
 0x4c9   :  { %v2995_v41 = vadd.f32 %v2994_v48, %v2752_v14  ;;  %v3036_v52 = vadd.f32 %v3035_v38, %v2793_v16  ;;  %v2996_v53 = vpop.f32.mrb[37].mxu0  ;;  %v3037_v55 = vpop.f32.mrb[37].mxu1 }
 0x4ca   :  { %v2997_v56 = vadd.f32 %v2996_v53, %v2754_v49  ;;  %v3038_v57 = vadd.f32 %v3037_v55, %v2795_v45  ;;  %v2998_v58 = vpop.f32.mrb[38].mxu0  ;;  %v3039_v59 = vpop.f32.mrb[38].mxu1 }
 0x4cb   :  { %v3042_v61 = vadd.f32 %v2995_v41, %v9941_v60  ;;  %v2999_v63 = vpop.f32.mrb[39].mxu0  ;;  %v3040_v1 = vpop.f32.mrb[39].mxu1  ;;  %v3044_v7 = vadd.f32 %v3036_v52, %v9956_v19  ;;  %v3072_v52 = vld [vmem:[#allocation2 + $0x3] ss:$8 sm:$0xf] }
 0x4cc   :  { %v3043_v2 = vadd.f32 %v2997_v56, %v9945_v62  ;;  %v3045_v5 = vadd.f32 %v3038_v57, %v9951_v15 }
 0x4cd   :  { %v7989_v3 = vmul.f32 -1.442695, %v3042_v61 }
 0x4ce   :  { %v7990_v4 = vmul.f32 -1.442695, %v3043_v2  ;;  %v7991_v6 = vmul.f32 -1.442695, %v3045_v5 }
 0x4cf   :  { %9192 = vpow2.f32 %v7989_v3 }
 0x4d0   :  { %9194 = vpow2.f32 %v7990_v4 }
 0x4d1   :  { %9196 = vpow2.f32 %v7991_v6  ;;  %v11616_v6 = vld [vmem:[#allocation51_spill] sm:$0xff] }
 0x4d2   :  { %9198 = vtanh.f32 %v3044_v7  ;;  %v11617_v7 = vld [vmem:[#allocation52_spill] sm:$0xff] }
 0x4d9   :  { %v9193_v8 = vpop.eup %9192 }
 0x4da   :  { %v9195_v9 = vpop.eup %9194  ;;  %v3049_v10 = vadd.f32 1.0, %v9193_v8  ;;  %v11620_v8 = vld [vmem:[#allocation55_spill] sm:$0xff] }
 0x4db   :  { %v3055_v21 = vadd.f32 1.0, %v9195_v9  ;;  %v9197_v22 = vpop.eup %9196  ;;  %v11622_v9 = vld [vmem:[#allocation57_spill] sm:$0xff] }
 0x4dc   :  { %9200 = vrcp.f32 %v3049_v10  ;;  %v9199_v24 = vpop.eup %9198  ;;  %v3062_v25 = vadd.f32 1.0, %v9197_v22  ;;  %v11624_v22 = vld [vmem:[#allocation59_spill] sm:$0xff] }
 0x4dd   :  { %9202 = vrcp.f32 %v3055_v21  ;;  %v11623_v21 = vld [vmem:[#allocation58_spill] sm:$0xff] }
 0x4de   :  { %9204 = vrcp.f32 %v3062_v25 }
 0x4e6   :  { %v9201_v26 = vpop.eup %9200 }
 0x4e7   :  { %v9203_v11 = vpop.eup %9202  ;;  %v3066_v23 = vmul.f32 %v9201_v26, %v9199_v24  ;;  %v11625_v26 = vld [vmem:[#allocation60_spill] sm:$0xff] }
 0x4e8   :  { %v3065_v12 = vmul.f32 %v9203_v11, %v10214_v51  ;;  %v3299_v27 = vpop.f32.mrb[40].mxu0  ;;  %v3340_v28 = vpop.f32.mrb[40].mxu1  ;;  %v11626_v11 = vld [vmem:[#allocation61_spill] sm:$0xff] }
 0x4e9   :  { %v3301_v13 = vpop.f32.mrb[41].mxu0  ;;  %v3342_v14 = vpop.f32.mrb[41].mxu1 }
 0x4ea   :  { %v10391_v16 = vadd.f32 %v3066_v23, %v3065_v12  ;;  %v3351_v49 = vcombine.low %v3299_v27, %v3301_v13  ;;  %v3352_v45 = vcombine.low %v3340_v28, %v3342_v14  ;;  %v3303_v34 = vpop.f32.mrb[42].mxu0  ;;  %v3344_v36 = vpop.f32.mrb[42].mxu1  ;;  %v11627_v27 = vld [vmem:[#allocation62_spill] sm:$0xff]  ;;  %v11628_v28 = vld [vmem:[#allocation63_spill] sm:$0xff] }
 0x4eb   :  { %v3304_v40 = vpop.f32.mrb[43].mxu0  ;;  %v3345_v42 = vpop.f32.mrb[43].mxu1  ;;  %v10445_v34 = vld [vmem:[#allocation8 + $0x24] ss:$16 sps:$4 sm:$0xff]   ;;  %v10447_v36 = vld [vmem:[#allocation8 + $0x2c] ss:$16 sps:$4 sm:$0xff]  }
 0x4ec   :  { %v3359_v48 = vrot.slane %v3351_v49, %v9884_v47  ;;  %v3366_v38 = vrot.slane %v3352_v45, %v9884_v47  ;;  %9206 = vtanh.f32 %v10391_v16  ;;  %v9205_v57 = vpop.eup %9204  ;;  %v10431_v45 = vld [vmem:[#allocation8 + $0x4] ss:$16 sps:$4 sm:$0xff]   ;;  %v10461_v42 = vld [vmem:[#allocation8 + $0x4c] ss:$16 sps:$4 sm:$0xff]  }
 0x4ed   :  { %v10459_v40 = vld [vmem:[#allocation8 + $0x44] ss:$16 sps:$4 sm:$0xff]  }
 0x4ee   :  { %v3367_v51 = vcombine.low %v3359_v48, %v3366_v38  ;;  %v10467_v48 = vld [vmem:[#allocation8 + $0x40] ss:$16 sps:$4 sm:$0xff]   ;;  %v10469_v38 = vld [vmem:[#allocation8 + $0x48] ss:$16 sps:$4 sm:$0xff]  }
 0x4f0   :  { %v3374_v41 = vrot.slane %v3367_v51, %v9884_v47  ;;  %v10473_v51 = vld [vmem:[#allocation8 + $0x64] ss:$16 sps:$4 sm:$0xff]  }
 0x4f2   :  { %v3376_v53 = vadd.f32 %v3374_v41, %v3072_v52  ;;  %v10475_v41 = vld [vmem:[#allocation8 + $0x6c] ss:$16 sps:$4 sm:$0xff]   ;;  %v10479_v52 = vld [vmem:[#allocation8 + $0x60] ss:$16 sps:$4 sm:$0xff]  }
 0x4f4   :  { %v8024_v55 = vmul.f32 -1.442695, %v3376_v53  ;;  %v3384_v56 = vrot.slane %v3376_v53, 1  ;;  %v3395_v1 = vrot.slane %v3376_v53, 3  ;;  %v3392_v4 = vrot.slane %v3376_v53, 2 }
 0x4f5   :  { %v10481_v53 = vld [vmem:[#allocation8 + $0x68] ss:$16 sps:$4 sm:$0xff]  }
 0x4f6   :  { %v9207_v58 = vpop.eup %9206  ;;  %9208 = vpow2.f32 %v8024_v55  ;;  %v8025_v59 = vmul.f32 -1.442695, %v3384_v56  ;;  %v8026_v2 = vmul.f32 -1.442695, %v3395_v1  ;;  %v10485_v55 = vld [vmem:[#allocation8 + $0x84] ss:$16 sps:$4 sm:$0xff]  }
 0x4f7   :  { %v3069_v61 = vmul.f32 %v9207_v58, %v9205_v57  ;;  %v10487_v56 = vld [vmem:[#allocation8 + $0x8c] ss:$16 sps:$4 sm:$0xff]   ;;  %v10491_v57 = vld [vmem:[#allocation8 + $0x80] ss:$16 sps:$4 sm:$0xff]   ;;  %v10493_v58 = vld [vmem:[#allocation8 + $0x88] ss:$16 sps:$4 sm:$0xff]  }
 0x4f8   :  { %9210 = vpow2.f32 %v8025_v59  ;;  %v10497_v59 = vld [vmem:[#allocation8 + $0xa4] ss:$16 sps:$4 sm:$0xff]   ;;  %v10505_v1 = vld [vmem:[#allocation8 + $0xa8] ss:$16 sps:$4 sm:$0xff]  }
 0x4f9   :  { %3070 = vst [vmem:[#allocation12 + $0x2] sm:$0x1] %v3069_v61  ;;  %v3441_v63 = vpack.c.bf16 %v3069_v61, %v3069_v61  ;;  %9212 = vpow2.f32 %v8026_v2  ;;  %v10499_v61 = vld [vmem:[#allocation8 + $0xac] ss:$16 sps:$4 sm:$0xff]   ;;  %v10509_v2 = vld [vmem:[#allocation8 + $0xc4] ss:$16 sps:$4 sm:$0xff]  }
 0x4fb   :  { %3667 = vmatmul.mubr.bf16.vlgmr.msra.gmra.mrb[44].mxu0 %v3441_v63  ;;  %3708 = vmatmul.mubr.bf16.vlgmr.msra.gmra.mrb[44].mxu1 %v3441_v63  ;;  %v10503_v63 = vld [vmem:[#allocation8 + $0xa0] ss:$16 sps:$4 sm:$0xff]  }
 0x4fc   :  { %3877 = vmatpush1.bf16.msra.mxu0 %v10220_v46  ;;  %3918 = vmatpush1.bf16.msra.mxu1 %v10222_v33  ;;  %v11614_v46 = vld [vmem:[#allocation49_spill] sm:$0xff] }
 0x4fd   :  { %3878 = vmatprep.subr.bf16.mxu0 %v10224_v29  ;;  %3919 = vmatprep.subr.bf16.mxu1 %v10226_v54  ;;  %v11615_v54 = vld [vmem:[#allocation50_spill] sm:$0xff] }
 0x4fe   :  { %3908 = vmatprep.mubr.bf16.mxu0 %v11509_v32  ;;  %3949 = vmatprep.mubr.bf16.mxu1 %v11509_v32 }
 0x500   :  { %v9209_v3 = vpop.eup %9208  ;;  %3879 = vmatpush1.bf16.msra.mxu0 %v10230_v50  ;;  %3920 = vmatpush1.bf16.msra.mxu1 %v10232_v44  ;;  %v11618_v50 = vld [vmem:[#allocation53_spill] sm:$0xff]  ;;  %v11619_v44 = vld [vmem:[#allocation54_spill] sm:$0xff] }
 0x501   :  { %v3380_v5 = vadd.f32 1.0, %v9209_v3  ;;  %3880 = vmatprep.subr.bf16.mxu0 %v10236_v43  ;;  %3921 = vmatprep.subr.bf16.mxu1 %v11614_v46  ;;  %v11621_v43 = vld [vmem:[#allocation56_spill] sm:$0xff]  ;;  %v10511_v3 = vld [vmem:[#allocation8 + $0xcc] ss:$16 sps:$4 sm:$0xff]  }
 0x502   :  { %v9211_v33 = vpop.eup %9210  ;;  %v10521_v46 = vld [vmem:[#allocation8 + $0xe4] ss:$16 sps:$4 sm:$0xff]  }
 0x503   :  { %9214 = vrcp.f32 %v3380_v5  ;;  %v3389_v29 = vadd.f32 1.0, %v9211_v33  ;;  %v9213_v10 = vpop.eup %9212  ;;  %v10517_v5 = vld [vmem:[#allocation8 + $0xc8] ss:$16 sps:$4 sm:$0xff]   ;;  %v10523_v33 = vld [vmem:[#allocation8 + $0xec] ss:$16 sps:$4 sm:$0xff]  }
 0x504   :  { %9216 = vtanh.f32 %v3392_v4  ;;  %3881 = vmatpush1.bf16.msra.mxu0 %v11615_v54  ;;  %3922 = vmatpush1.bf16.msra.mxu1 %v11616_v6  ;;  %v3400_v12 = vadd.f32 1.0, %v9213_v10  ;;  %v10515_v4 = vld [vmem:[#allocation8 + $0xc0] ss:$16 sps:$4 sm:$0xff]   ;;  %v10529_v54 = vld [vmem:[#allocation8 + $0xe8] ss:$16 sps:$4 sm:$0xff]  }
 0x505   :  { %9218 = vrcp.f32 %v3389_v29  ;;  %3882 = vmatprep.subr.bf16.mxu0 %v11617_v7  ;;  %3923 = vmatprep.subr.bf16.mxu1 %v11618_v50  ;;  %v10527_v29 = vld [vmem:[#allocation8 + $0xe0] ss:$16 sps:$4 sm:$0xff]   ;;  %v10539_v6 = vld [vmem:[#allocation11 + $0x4] ss:$16 sps:$4 sm:$0xff]   ;;  %v10541_v7 = vld [vmem:[#allocation11 + $0xc] ss:$16 sps:$4 sm:$0xff]  }
 0x506   :  { %9220 = vrcp.f32 %v3400_v12  ;;  %v10543_v50 = vld [vmem:[#allocation11] ss:$16 sps:$4 sm:$0xff]   ;;  %v10557_v10 = vld [vmem:[#allocation11 + $0x28] ss:$16 sps:$4 sm:$0xff]  }
 0x507   :  { %11629 = vst [vmem:[#allocation17_spill] sm:$0xff] %v10543_v50  ;;  %11634 = vst [vmem:[#allocation22_spill] sm:$0xff] %v10557_v10  ;;  %v10581_v12 = vld [vmem:[#allocation11 + $0x68] ss:$16 sps:$4 sm:$0xff]  }
 0x508   :  { %3883 = vmatpush1.bf16.msra.mxu0 %v11619_v44  ;;  %3924 = vmatpush1.bf16.msra.mxu1 %v11620_v8  ;;  %v10545_v44 = vld [vmem:[#allocation11 + $0x8] ss:$16 sps:$4 sm:$0xff]   ;;  %v10551_v8 = vld [vmem:[#allocation11 + $0x24] ss:$16 sps:$4 sm:$0xff]   ;;  %11642 = vst [vmem:[#allocation30_spill] sm:$0xff] %v10581_v12 }
 0x509   :  { %3884 = vmatprep.subr.bf16.mxu0 %v11621_v43  ;;  %3925 = vmatprep.subr.bf16.mxu1 %v11622_v9  ;;  %11630 = vst [vmem:[#allocation18_spill] sm:$0xff] %v10545_v44  ;;  %11631 = vst [vmem:[#allocation19_spill] sm:$0xff] %v10551_v8  ;;  %v10553_v43 = vld [vmem:[#allocation11 + $0x2c] ss:$16 sps:$4 sm:$0xff]   ;;  %v10555_v9 = vld [vmem:[#allocation11 + $0x20] ss:$16 sps:$4 sm:$0xff]  }
 0x50a   :  { %11632 = vst [vmem:[#allocation20_spill] sm:$0xff] %v10553_v43  ;;  %11633 = vst [vmem:[#allocation21_spill] sm:$0xff] %v10555_v9 }
 0x50c   :  { %3885 = vmatpush1.bf16.msra.mxu0 %v11623_v21  ;;  %3926 = vmatpush1.bf16.msra.mxu1 %v11624_v22  ;;  %v10563_v21 = vld [vmem:[#allocation11 + $0x44] ss:$16 sps:$4 sm:$0xff]   ;;  %v10565_v22 = vld [vmem:[#allocation11 + $0x4c] ss:$16 sps:$4 sm:$0xff]  }
 0x50d   :  { %v9215_v24 = vpop.eup %9214  ;;  %3886 = vmatprep.subr.bf16.mxu0 %v11625_v26  ;;  %3927 = vmatprep.subr.bf16.mxu1 %v11626_v11  ;;  %11635 = vst [vmem:[#allocation23_spill] sm:$0xff] %v10563_v21  ;;  %11636 = vst [vmem:[#allocation24_spill] sm:$0xff] %v10565_v22  ;;  %v10569_v26 = vld [vmem:[#allocation11 + $0x48] ss:$16 sps:$4 sm:$0xff]   ;;  %v10575_v11 = vld [vmem:[#allocation11 + $0x64] ss:$16 sps:$4 sm:$0xff]  }
 0x50e   :  { %v9217_v23 = vpop.eup %9216  ;;  %11638 = vst [vmem:[#allocation26_spill] sm:$0xff] %v10569_v26  ;;  %11639 = vst [vmem:[#allocation27_spill] sm:$0xff] %v10575_v11 }
 0x50f   :  { %v9219_v25 = vpop.eup %9218  ;;  %v3404_v14 = vmul.f32 %v9217_v23, %v9215_v24  ;;  %v10567_v24 = vld [vmem:[#allocation11 + $0x40] ss:$16 sps:$4 sm:$0xff]   ;;  %v10577_v23 = vld [vmem:[#allocation11 + $0x6c] ss:$16 sps:$4 sm:$0xff]  }
 0x510   :  { %3887 = vmatpush1.bf16.msra.mxu0 %v11627_v27  ;;  %3928 = vmatpush1.bf16.msra.mxu1 %v11628_v28  ;;  %v3403_v13 = vmul.f32 %v9219_v25, %v10303_v17  ;;  %v10433_v17 = vld [vmem:[#allocation8 + $0xc] ss:$16 sps:$4 sm:$0xff]   ;;  %11637 = vst [vmem:[#allocation25_spill] sm:$0xff] %v10567_v24  ;;  %11640 = vst [vmem:[#allocation28_spill] sm:$0xff] %v10577_v23  ;;  %v10579_v25 = vld [vmem:[#allocation11 + $0x60] ss:$16 sps:$4 sm:$0xff]  }
 0x511   :  { %3888 = vmatprep.subr.bf16.mxu0 %v10286_v30  ;;  %3929 = vmatprep.subr.bf16.mxu1 %v10288_v31  ;;  %v9221_v30 = vpop.eup %9220  ;;  %11641 = vst [vmem:[#allocation29_spill] sm:$0xff] %v10579_v25  ;;  %v10587_v27 = vld [vmem:[#allocation11 + $0x84] ss:$16 sps:$4 sm:$0xff]   ;;  %v10589_v28 = vld [vmem:[#allocation11 + $0x8c] ss:$16 sps:$4 sm:$0xff]  }
 0x512   :  { %v10424_v49 = vadd.f32 %v3404_v14, %v3403_v13  ;;  %11643 = vst [vmem:[#allocation31_spill] sm:$0xff] %v10587_v27  ;;  %11644 = vst [vmem:[#allocation32_spill] sm:$0xff] %v10589_v28  ;;  %v10591_v13 = vld [vmem:[#allocation11 + $0x80] ss:$16 sps:$4 sm:$0xff]   ;;  %v10593_v14 = vld [vmem:[#allocation11 + $0x88] ss:$16 sps:$4 sm:$0xff]  }
 0x513   :  { %11645 = vst [vmem:[#allocation33_spill] sm:$0xff] %v10591_v13  ;;  %11646 = vst [vmem:[#allocation34_spill] sm:$0xff] %v10593_v14 }
 0x514   :  { %3889 = vmatpush1.bf16.msra.mxu0 %v10292_v39  ;;  %3930 = vmatpush1.bf16.msra.mxu1 %v10294_v37  ;;  %9222 = vtanh.f32 %v10424_v49  ;;  %v10439_v39 = vld [vmem:[#allocation8] ss:$16 sps:$4 sm:$0xff]  }
 0x515   :  { %3890 = vmatprep.subr.bf16.mxu0 %v10299_v20  ;;  %3931 = vmatprep.subr.bf16.mxu1 %v10301_v35  ;;  %v10441_v20 = vld [vmem:[#allocation8 + $0x8] ss:$16 sps:$4 sm:$0xff]  }
 0x518   :  { %3891 = vmatpush1.bf16.msra.mxu0 %v10307_v0  ;;  %3932 = vmatpush1.bf16.msra.mxu1 %v10309_v18  ;;  %v10453_v0 = vld [vmem:[#allocation8 + $0x20] ss:$16 sps:$4 sm:$0xff]   ;;  %v10455_v18 = vld [vmem:[#allocation8 + $0x28] ss:$16 sps:$4 sm:$0xff]  }
 0x519   :  { %4181 = vmatprep.subr.bf16.mxu0 %v10431_v45  ;;  %4222 = vmatprep.subr.bf16.mxu1 %v10433_v17 }
 0x51e   :  { %v9223_v31 = vpop.eup %9222 }
 0x51f   :  { %v3407_v37 = vmul.f32 %v9223_v31, %v9221_v30  ;;  %v10599_v30 = vld [vmem:[#allocation11 + $0xa4] ss:$16 sps:$4 sm:$0xff]   ;;  %v10601_v31 = vld [vmem:[#allocation11 + $0xac] ss:$16 sps:$4 sm:$0xff]  }
 0x520   :  { %11647 = vst [vmem:[#allocation35_spill] sm:$0xff] %v10599_v30  ;;  %11648 = vst [vmem:[#allocation36_spill] sm:$0xff] %v10601_v31 }
 0x521   :  { %v10443_v35 = vpack.c.bf16 %v3407_v37, %v3407_v37  ;;  %v10603_v37 = vld [vmem:[#allocation11 + $0xa0] ss:$16 sps:$4 sm:$0xff]  }
 0x522   :  { %11649 = vst [vmem:[#allocation37_spill] sm:$0xff] %v10603_v37 }
 0x523   :  { %3909 = vmatmul.mubr.bf16.vlgmr.msra.gmra.mrb[48].mxu0 %v10443_v35  ;;  %3950 = vmatmul.mubr.bf16.vlgmr.msra.gmra.mrb[48].mxu1 %v10443_v35 }
 0x524   :  { %4182 = vmatpush1.bf16.msra.mxu0 %v10439_v39  ;;  %4223 = vmatpush1.bf16.msra.mxu1 %v10441_v20 }
 0x525   :  { %4183 = vmatprep.subr.bf16.mxu0 %v10445_v34  ;;  %4224 = vmatprep.subr.bf16.mxu1 %v10447_v36 }
 0x526   :  { %4213 = vmatprep.mubr.bf16.mxu0 %v11509_v32  ;;  %4254 = vmatprep.mubr.bf16.mxu1 %v11509_v32 }
 0x528   :  { %4184 = vmatpush1.bf16.msra.mxu0 %v10453_v0  ;;  %4225 = vmatpush1.bf16.msra.mxu1 %v10455_v18 }
 0x529   :  { %4185 = vmatprep.subr.bf16.mxu0 %v10459_v40  ;;  %4226 = vmatprep.subr.bf16.mxu1 %v10461_v42 }
 0x52c   :  { %4186 = vmatpush1.bf16.msra.mxu0 %v10467_v48  ;;  %4227 = vmatpush1.bf16.msra.mxu1 %v10469_v38 }
 0x52d   :  { %4187 = vmatprep.subr.bf16.mxu0 %v10473_v51  ;;  %4228 = vmatprep.subr.bf16.mxu1 %v10475_v41 }
 0x530   :  { %4188 = vmatpush1.bf16.msra.mxu0 %v10479_v52  ;;  %4229 = vmatpush1.bf16.msra.mxu1 %v10481_v53 }
 0x531   :  { %4189 = vmatprep.subr.bf16.mxu0 %v10485_v55  ;;  %4230 = vmatprep.subr.bf16.mxu1 %v10487_v56 }
 0x534   :  { %4190 = vmatpush1.bf16.msra.mxu0 %v10491_v57  ;;  %4231 = vmatpush1.bf16.msra.mxu1 %v10493_v58 }
 0x535   :  { %4191 = vmatprep.subr.bf16.mxu0 %v10497_v59  ;;  %4232 = vmatprep.subr.bf16.mxu1 %v10499_v61 }
 0x538   :  { %4192 = vmatpush1.bf16.msra.mxu0 %v10503_v63  ;;  %4233 = vmatpush1.bf16.msra.mxu1 %v10505_v1 }
 0x539   :  { %4193 = vmatprep.subr.bf16.mxu0 %v10509_v2  ;;  %4234 = vmatprep.subr.bf16.mxu1 %v10511_v3 }
 0x53c   :  { %4194 = vmatpush1.bf16.msra.mxu0 %v10515_v4  ;;  %4235 = vmatpush1.bf16.msra.mxu1 %v10517_v5 }
 0x53d   :  { %4195 = vmatprep.subr.bf16.mxu0 %v10521_v46  ;;  %4236 = vmatprep.subr.bf16.mxu1 %v10523_v33 }
 0x540   :  { %4196 = vmatpush1.bf16.msra.mxu0 %v10527_v29  ;;  %4237 = vmatpush1.bf16.msra.mxu1 %v10529_v54 }
 0x541   :  { %4550 = vmatprep.subr.bf16.mxu0 %v10539_v6  ;;  %4591 = vmatprep.subr.bf16.mxu1 %v10541_v7 }
 0x543   :  { %4214 = vmatmul.mubr.bf16.vlgmr.msra.gmra.mrb[52].mxu0 %v10443_v35  ;;  %4255 = vmatmul.mubr.bf16.vlgmr.msra.gmra.mrb[52].mxu1 %v10443_v35  ;;  %v10605_v35 = vld [vmem:[#allocation11 + $0xa8] ss:$16 sps:$4 sm:$0xff]  }
 0x544   :  { %4582 = vmatprep.mubr.bf16.mxu0 %v11509_v32  ;;  %4623 = vmatprep.mubr.bf16.mxu1 %v11509_v32  ;;  %11650 = vst [vmem:[#allocation38_spill] sm:$0xff] %v10605_v35 }
 0x545   :  { %4551 = vmatpush1.bf16.msra.mxu0 %v10543_v50  ;;  %4592 = vmatpush1.bf16.msra.mxu1 %v10545_v44 }
 0x546   :  { %4552 = vmatprep.subr.bf16.mxu0 %v10551_v8  ;;  %4593 = vmatprep.subr.bf16.mxu1 %v10553_v43 }
 0x549   :  { %4553 = vmatpush1.bf16.msra.mxu0 %v10555_v9  ;;  %4594 = vmatpush1.bf16.msra.mxu1 %v10557_v10 }
 0x54a   :  { %4554 = vmatprep.subr.bf16.mxu0 %v10563_v21  ;;  %4595 = vmatprep.subr.bf16.mxu1 %v10565_v22 }
 0x54d   :  { %4555 = vmatpush1.bf16.msra.mxu0 %v10567_v24  ;;  %4596 = vmatpush1.bf16.msra.mxu1 %v10569_v26 }
 0x54e   :  { %4556 = vmatprep.subr.bf16.mxu0 %v10575_v11  ;;  %4597 = vmatprep.subr.bf16.mxu1 %v10577_v23 }
 0x551   :  { %4557 = vmatpush1.bf16.msra.mxu0 %v10579_v25  ;;  %4598 = vmatpush1.bf16.msra.mxu1 %v10581_v12 }
 0x552   :  { %4558 = vmatprep.subr.bf16.mxu0 %v10587_v27  ;;  %4599 = vmatprep.subr.bf16.mxu1 %v10589_v28  ;;  %v10611_v28 = vld [vmem:[#allocation11 + $0xc4] ss:$16 sps:$4 sm:$0xff]   ;;  %v10617_v27 = vld [vmem:[#allocation11 + $0xc8] ss:$16 sps:$4 sm:$0xff]  }
 0x553   :  { %11651 = vst [vmem:[#allocation39_spill] sm:$0xff] %v10611_v28  ;;  %11654 = vst [vmem:[#allocation42_spill] sm:$0xff] %v10617_v27 }
 0x555   :  { %4559 = vmatpush1.bf16.msra.mxu0 %v10591_v13  ;;  %4600 = vmatpush1.bf16.msra.mxu1 %v10593_v14  ;;  %v10613_v13 = vld [vmem:[#allocation11 + $0xcc] ss:$16 sps:$4 sm:$0xff]   ;;  %v10615_v14 = vld [vmem:[#allocation11 + $0xc0] ss:$16 sps:$4 sm:$0xff]  }
 0x556   :  { %4560 = vmatprep.subr.bf16.mxu0 %v10599_v30  ;;  %4601 = vmatprep.subr.bf16.mxu1 %v10601_v31  ;;  %11652 = vst [vmem:[#allocation40_spill] sm:$0xff] %v10613_v13  ;;  %11653 = vst [vmem:[#allocation41_spill] sm:$0xff] %v10615_v14  ;;  %v10623_v31 = vld [vmem:[#allocation11 + $0xe4] ss:$16 sps:$4 sm:$0xff]   ;;  %v10629_v30 = vld [vmem:[#allocation11 + $0xe8] ss:$16 sps:$4 sm:$0xff]  }
 0x557   :  { %11655 = vst [vmem:[#allocation43_spill] sm:$0xff] %v10623_v31  ;;  %11658 = vst [vmem:[#allocation46_spill] sm:$0xff] %v10629_v30 }
 0x559   :  { %4561 = vmatpush1.bf16.msra.mxu0 %v10603_v37  ;;  %4602 = vmatpush1.bf16.msra.mxu1 %v10605_v35  ;;  %v10625_v37 = vld [vmem:[#allocation11 + $0xec] ss:$16 sps:$4 sm:$0xff]   ;;  %v10627_v35 = vld [vmem:[#allocation11 + $0xe0] ss:$16 sps:$4 sm:$0xff]  }
 0x55a   :  { %4562 = vmatprep.subr.bf16.mxu0 %v10611_v28  ;;  %4603 = vmatprep.subr.bf16.mxu1 %v10613_v13  ;;  %11656 = vst [vmem:[#allocation44_spill] sm:$0xff] %v10625_v37  ;;  %11657 = vst [vmem:[#allocation45_spill] sm:$0xff] %v10627_v35  ;;  %v10635_v13 = vld [vmem:[#allocation9 + $0x4] ss:$16 sps:$4 sm:$0xff]  }
 0x55b   :  { %11659 = vst [vmem:[#allocation47_spill] sm:$0xff] %v10635_v13 }
 0x55d   :  { %4563 = vmatpush1.bf16.msra.mxu0 %v10615_v14  ;;  %4604 = vmatpush1.bf16.msra.mxu1 %v10617_v27  ;;  %v10637_v14 = vld [vmem:[#allocation9 + $0xc] ss:$16 sps:$4 sm:$0xff]  }
 0x55e   :  { %4564 = vmatprep.subr.bf16.mxu0 %v10623_v31  ;;  %4605 = vmatprep.subr.bf16.mxu1 %v10625_v37  ;;  %11660 = vst [vmem:[#allocation48_spill] sm:$0xff] %v10637_v14 }
 0x561   :  { %4565 = vmatpush1.bf16.msra.mxu0 %v10627_v35  ;;  %4606 = vmatpush1.bf16.msra.mxu1 %v10629_v30 }
 0x562   :  { %4792 = vmatprep.subr.bf16.mxu0 %v10635_v13  ;;  %4833 = vmatprep.subr.bf16.mxu1 %v10637_v14 }
 0x5ce   :  { %v3668_v27 = vpop.f32.mrb[44].mxu0  ;;  %v3709_v28 = vpop.f32.mrb[44].mxu1 }
 0x5cf   :  { %v3670_v12 = vpop.f32.mrb[45].mxu0  ;;  %v3711_v25 = vpop.f32.mrb[45].mxu1 }
 0x5d0   :  { %v3672_v23 = vpop.f32.mrb[46].mxu0  ;;  %v3713_v31 = vpop.f32.mrb[46].mxu1 }
 0x5d1   :  { %v3673_v11 = vpop.f32.mrb[47].mxu0  ;;  %v3714_v37 = vpop.f32.mrb[47].mxu1 }
 0x5f6   :  { %v3910_v26 = vpop.f32.mrb[48].mxu0  ;;  %v3951_v35 = vpop.f32.mrb[48].mxu1 }
 0x5f7   :  { %v3911_v24 = vadd.f32 %v3910_v26, %v3668_v27  ;;  %v3952_v30 = vadd.f32 %v3951_v35, %v3709_v28  ;;  %v3912_v22 = vpop.f32.mrb[49].mxu0  ;;  %v3953_v21 = vpop.f32.mrb[49].mxu1 }
 0x5f8   :  { %v3913_v10 = vadd.f32 %v3912_v22, %v3670_v12  ;;  %v3954_v9 = vadd.f32 %v3953_v21, %v3711_v25  ;;  %v3914_v43 = vpop.f32.mrb[50].mxu0  ;;  %v3955_v13 = vpop.f32.mrb[50].mxu1 }
 0x5f9   :  { %v3958_v14 = vadd.f32 %v3911_v24, %v9941_v60  ;;  %v3915_v8 = vpop.f32.mrb[51].mxu0  ;;  %v3956_v44 = vpop.f32.mrb[51].mxu1  ;;  %v3960_v27 = vadd.f32 %v3952_v30, %v9956_v19 }
 0x5fa   :  { %v3959_v50 = vadd.f32 %v3913_v10, %v9945_v62  ;;  %v3961_v11 = vadd.f32 %v3954_v9, %v9951_v15 }
 0x5fb   :  { %v8091_v23 = vmul.f32 -1.442695, %v3958_v14 }
 0x5fc   :  { %v8092_v31 = vmul.f32 -1.442695, %v3959_v50  ;;  %v8093_v26 = vmul.f32 -1.442695, %v3961_v11 }
 0x5fd   :  { %9224 = vpow2.f32 %v8091_v23 }
 0x5fe   :  { %9226 = vpow2.f32 %v8092_v31 }
 0x5ff   :  { %9228 = vpow2.f32 %v8093_v26 }
 0x600   :  { %9230 = vtanh.f32 %v3960_v27 }
 0x607   :  { %v9225_v28 = vpop.eup %9224 }
 0x608   :  { %v9227_v22 = vpop.eup %9226  ;;  %v3965_v21 = vadd.f32 1.0, %v9225_v28 }
 0x609   :  { %v3971_v43 = vadd.f32 1.0, %v9227_v22  ;;  %v9229_v44 = vpop.eup %9228 }
 0x60a   :  { %9232 = vrcp.f32 %v3965_v21  ;;  %v9231_v8 = vpop.eup %9230  ;;  %v3978_v25 = vadd.f32 1.0, %v9229_v44 }
 0x60b   :  { %9234 = vrcp.f32 %v3971_v43  ;;  %v3988_v43 = vld [vmem:[#allocation2 + $0x4] ss:$8 sm:$0xf] }
 0x60c   :  { %9236 = vrcp.f32 %v3978_v25 }
 0x614   :  { %v9233_v10 = vpop.eup %9232 }
 0x615   :  { %v9235_v24 = vpop.eup %9234  ;;  %v3982_v50 = vmul.f32 %v9233_v10, %v9231_v8 }
 0x616   :  { %v3981_v12 = vmul.f32 %v9235_v24, %v10391_v16  ;;  %v4215_v9 = vpop.f32.mrb[52].mxu0  ;;  %v4256_v13 = vpop.f32.mrb[52].mxu1 }
 0x617   :  { %v4217_v14 = vpop.f32.mrb[53].mxu0  ;;  %v4258_v30 = vpop.f32.mrb[53].mxu1 }
 0x618   :  { %v10646_v37 = vadd.f32 %v3982_v50, %v3981_v12  ;;  %v4267_v35 = vcombine.low %v4215_v9, %v4217_v14  ;;  %v4268_v23 = vcombine.low %v4256_v13, %v4258_v30  ;;  %v4219_v31 = vpop.f32.mrb[54].mxu0  ;;  %v4260_v11 = vpop.f32.mrb[54].mxu1  ;;  %v10652_v9 = vld [vmem:[#allocation9] ss:$16 sps:$4 sm:$0xff]   ;;  %v10654_v13 = vld [vmem:[#allocation9 + $0x8] ss:$16 sps:$4 sm:$0xff]  }
 0x619   :  { %v4220_v26 = vpop.f32.mrb[55].mxu0  ;;  %v4261_v27 = vpop.f32.mrb[55].mxu1  ;;  %v10656_v30 = vld [vmem:[#allocation9 + $0x24] ss:$16 sps:$4 sm:$0xff]   ;;  %v10662_v31 = vld [vmem:[#allocation9 + $0x20] ss:$16 sps:$4 sm:$0xff]  }
 0x61a   :  { %v4275_v28 = vrot.slane %v4267_v35, %v9884_v47  ;;  %v4282_v22 = vrot.slane %v4268_v23, %v9884_v47  ;;  %9238 = vtanh.f32 %v10646_v37  ;;  %v9237_v24 = vpop.eup %9236  ;;  %v10658_v35 = vld [vmem:[#allocation9 + $0x2c] ss:$16 sps:$4 sm:$0xff]   ;;  %v10664_v11 = vld [vmem:[#allocation9 + $0x28] ss:$16 sps:$4 sm:$0xff]   ;;  %v10668_v26 = vld [vmem:[#allocation9 + $0x44] ss:$16 sps:$4 sm:$0xff]  }
 0x61b   :  { %v10670_v27 = vld [vmem:[#allocation9 + $0x4c] ss:$16 sps:$4 sm:$0xff]  }
 0x61c   :  { %v4283_v16 = vcombine.low %v4275_v28, %v4282_v22  ;;  %11661 = vst [vmem:[#allocation49_spill] sm:$0xff] %v10670_v27 }
 0x61e   :  { %v4290_v21 = vrot.slane %v4283_v16, %v9884_v47 }
 0x620   :  { %v4292_v44 = vadd.f32 %v4290_v21, %v3988_v43  ;;  %v10676_v21 = vld [vmem:[#allocation9 + $0x40] ss:$16 sps:$4 sm:$0xff]   ;;  %v10678_v43 = vld [vmem:[#allocation9 + $0x48] ss:$16 sps:$4 sm:$0xff]  }
 0x621   :  { %11662 = vst [vmem:[#allocation50_spill] sm:$0xff] %v10676_v21  ;;  %11663 = vst [vmem:[#allocation51_spill] sm:$0xff] %v10678_v43 }
 0x622   :  { %v8126_v8 = vmul.f32 -1.442695, %v4292_v44  ;;  %v4300_v10 = vrot.slane %v4292_v44, 1  ;;  %v4311_v23 = vrot.slane %v4292_v44, 3  ;;  %v4308_v16 = vrot.slane %v4292_v44, 2 }
 0x624   :  { %v9239_v50 = vpop.eup %9238  ;;  %9240 = vpow2.f32 %v8126_v8  ;;  %v8127_v12 = vmul.f32 -1.442695, %v4300_v10  ;;  %v8128_v28 = vmul.f32 -1.442695, %v4311_v23  ;;  %v10682_v10 = vld [vmem:[#allocation9 + $0x64] ss:$16 sps:$4 sm:$0xff]  }
 0x625   :  { %v3985_v25 = vmul.f32 %v9239_v50, %v9237_v24  ;;  %11664 = vst [vmem:[#allocation52_spill] sm:$0xff] %v10682_v10  ;;  %v10684_v24 = vld [vmem:[#allocation9 + $0x6c] ss:$16 sps:$4 sm:$0xff]  }
 0x626   :  { %9242 = vpow2.f32 %v8127_v12  ;;  %11665 = vst [vmem:[#allocation53_spill] sm:$0xff] %v10684_v24  ;;  %v10688_v12 = vld [vmem:[#allocation9 + $0x60] ss:$16 sps:$4 sm:$0xff]   ;;  %v10696_v23 = vld [vmem:[#allocation9 + $0x8c] ss:$16 sps:$4 sm:$0xff]  }
 0x627   :  { %3986 = vst [vmem:[#allocation12 + $0x3] sm:$0x1] %v3985_v25  ;;  %v4357_v14 = vpack.c.bf16 %v3985_v25, %v3985_v25  ;;  %9244 = vpow2.f32 %v8128_v28  ;;  %11666 = vst [vmem:[#allocation54_spill] sm:$0xff] %v10688_v12  ;;  %v10690_v25 = vld [vmem:[#allocation9 + $0x68] ss:$16 sps:$4 sm:$0xff]  }
 0x628   :  { %11667 = vst [vmem:[#allocation55_spill] sm:$0xff] %v10690_v25  ;;  %11669 = vst [vmem:[#allocation57_spill] sm:$0xff] %v10696_v23  ;;  %v10700_v28 = vld [vmem:[#allocation9 + $0x80] ss:$16 sps:$4 sm:$0xff]  }
 0x629   :  { %4583 = vmatmul.mubr.bf16.vlgmr.msra.gmra.mrb[56].mxu0 %v4357_v14  ;;  %4624 = vmatmul.mubr.bf16.vlgmr.msra.gmra.mrb[56].mxu1 %v4357_v14  ;;  %v10694_v14 = vld [vmem:[#allocation9 + $0x84] ss:$16 sps:$4 sm:$0xff]   ;;  %11670 = vst [vmem:[#allocation58_spill] sm:$0xff] %v10700_v28 }
 0x62a   :  { %4793 = vmatpush1.bf16.msra.mxu0 %v10652_v9  ;;  %4834 = vmatpush1.bf16.msra.mxu1 %v10654_v13  ;;  %11668 = vst [vmem:[#allocation56_spill] sm:$0xff] %v10694_v14 }
 0x62b   :  { %4794 = vmatprep.subr.bf16.mxu0 %v10656_v30  ;;  %4835 = vmatprep.subr.bf16.mxu1 %v10658_v35 }
 0x62c   :  { %4824 = vmatprep.mubr.bf16.mxu0 %v11509_v32  ;;  %4865 = vmatprep.mubr.bf16.mxu1 %v11509_v32 }
 0x62e   :  { %v9241_v22 = vpop.eup %9240  ;;  %4795 = vmatpush1.bf16.msra.mxu0 %v10662_v31  ;;  %4836 = vmatpush1.bf16.msra.mxu1 %v10664_v11 }
 0x62f   :  { %v4296_v8 = vadd.f32 1.0, %v9241_v22  ;;  %4796 = vmatprep.subr.bf16.mxu0 %v10668_v26  ;;  %4837 = vmatprep.subr.bf16.mxu1 %v10670_v27  ;;  %v10702_v22 = vld [vmem:[#allocation9 + $0x88] ss:$16 sps:$4 sm:$0xff]   ;;  %v10733_v27 = vld [vmem:[#allocation9 + $0xec] ss:$16 sps:$4 sm:$0xff]  }
 0x630   :  { %v9243_v50 = vpop.eup %9242  ;;  %11671 = vst [vmem:[#allocation59_spill] sm:$0xff] %v10702_v22 }
 0x631   :  { %9246 = vrcp.f32 %v4296_v8  ;;  %v4305_v44 = vadd.f32 1.0, %v9243_v50  ;;  %v10708_v8 = vld [vmem:[#allocation9 + $0xac] ss:$16 sps:$4 sm:$0xff]   ;;  %v9245_v50 = vpop.eup %9244 }
 0x632   :  { %9248 = vtanh.f32 %v4308_v16  ;;  %4797 = vmatpush1.bf16.msra.mxu0 %v10676_v21  ;;  %4838 = vmatpush1.bf16.msra.mxu1 %v10678_v43  ;;  %v10706_v16 = vld [vmem:[#allocation9 + $0xa4] ss:$16 sps:$4 sm:$0xff]   ;;  %11673 = vst [vmem:[#allocation61_spill] sm:$0xff] %v10708_v8  ;;  %v4316_v43 = vadd.f32 1.0, %v9245_v50 }
 0x633   :  { %9250 = vrcp.f32 %v4305_v44  ;;  %4798 = vmatprep.subr.bf16.mxu0 %v10682_v10  ;;  %4839 = vmatprep.subr.bf16.mxu1 %v10684_v24  ;;  %11672 = vst [vmem:[#allocation60_spill] sm:$0xff] %v10706_v16  ;;  %v10712_v44 = vld [vmem:[#allocation9 + $0xa0] ss:$16 sps:$4 sm:$0xff]  }
 0x634   :  { %11674 = vst [vmem:[#allocation62_spill] sm:$0xff] %v10712_v44  ;;  %9252 = vrcp.f32 %v4316_v43 }
 0x636   :  { %4799 = vmatpush1.bf16.msra.mxu0 %v10688_v12  ;;  %4840 = vmatpush1.bf16.msra.mxu1 %v10690_v25  ;;  %v10714_v25 = vld [vmem:[#allocation9 + $0xa8] ss:$16 sps:$4 sm:$0xff]  }
 0x637   :  { %4800 = vmatprep.subr.bf16.mxu0 %v10694_v14  ;;  %4841 = vmatprep.subr.bf16.mxu1 %v10696_v23  ;;  %11675 = vst [vmem:[#allocation63_spill] sm:$0xff] %v10714_v25  ;;  %v10718_v14 = vld [vmem:[#allocation9 + $0xc4] ss:$16 sps:$4 sm:$0xff]   ;;  %v10720_v23 = vld [vmem:[#allocation9 + $0xcc] ss:$16 sps:$4 sm:$0xff]  }
 0x63a   :  { %4801 = vmatpush1.bf16.msra.mxu0 %v10700_v28  ;;  %4842 = vmatpush1.bf16.msra.mxu1 %v10702_v22  ;;  %v10724_v22 = vld [vmem:[#allocation9 + $0xc0] ss:$16 sps:$4 sm:$0xff]   ;;  %v10726_v28 = vld [vmem:[#allocation9 + $0xc8] ss:$16 sps:$4 sm:$0xff]  }
 0x63b   :  { %v9247_v12 = vpop.eup %9246  ;;  %4802 = vmatprep.subr.bf16.mxu0 %v10706_v16  ;;  %4843 = vmatprep.subr.bf16.mxu1 %v10708_v8  ;;  %v10731_v8 = vld [vmem:[#allocation9 + $0xe4] ss:$16 sps:$4 sm:$0xff]  }
 0x63c   :  { %v9249_v24 = vpop.eup %9248 }
 0x63d   :  { %v9251_v10 = vpop.eup %9250  ;;  %v4320_v16 = vmul.f32 %v9249_v24, %v9247_v12 }
 0x63e   :  { %4803 = vmatpush1.bf16.msra.mxu0 %v10712_v44  ;;  %4844 = vmatpush1.bf16.msra.mxu1 %v10714_v25  ;;  %v4319_v21 = vmul.f32 %v9251_v10, %v10424_v49  ;;  %v10739_v25 = vld [vmem:[#allocation9 + $0xe0] ss:$16 sps:$4 sm:$0xff]   ;;  %v10741_v44 = vld [vmem:[#allocation9 + $0xe8] ss:$16 sps:$4 sm:$0xff]   ;;  %v9253_v49 = vpop.eup %9252 }
 0x63f   :  { %4804 = vmatprep.subr.bf16.mxu0 %v10718_v14  ;;  %4845 = vmatprep.subr.bf16.mxu1 %v10720_v23 }
 0x640   :  { %v10735_v50 = vadd.f32 %v4320_v16, %v4319_v21 }
 0x642   :  { %4805 = vmatpush1.bf16.msra.mxu0 %v10724_v22  ;;  %4846 = vmatpush1.bf16.msra.mxu1 %v10726_v28  ;;  %9254 = vtanh.f32 %v10735_v50 }
 0x643   :  { %4806 = vmatprep.subr.bf16.mxu0 %v10731_v8  ;;  %4847 = vmatprep.subr.bf16.mxu1 %v10733_v27 }
 0x646   :  { %4807 = vmatpush1.bf16.msra.mxu0 %v10739_v25  ;;  %4848 = vmatpush1.bf16.msra.mxu1 %v10741_v44 }
 0x647   :  { %5097 = vmatprep.subr.bf16.mxu0 %v10431_v45  ;;  %5138 = vmatprep.subr.bf16.mxu1 %v10433_v17  ;;  %v11676_v45 = vld [vmem:[#allocation17_spill] sm:$0xff]  ;;  %v11677_v17 = vld [vmem:[#allocation18_spill] sm:$0xff] }
 0x64c   :  { %v9255_v21 = vpop.eup %9254 }
 0x64d   :  { %v4323_v43 = vmul.f32 %v9255_v21, %v9253_v49 }
 0x64f   :  { %v4324_v10 = vpack.c.bf16 %v4323_v43, %v4323_v43 }
 0x651   :  { %4825 = vmatmul.mubr.bf16.vlgmr.msra.gmra.mrb[60].mxu0 %v4324_v10  ;;  %4866 = vmatmul.mubr.bf16.vlgmr.msra.gmra.mrb[60].mxu1 %v4324_v10 }
 0x652   :  { %5098 = vmatpush1.bf16.msra.mxu0 %v10439_v39  ;;  %5139 = vmatpush1.bf16.msra.mxu1 %v10441_v20  ;;  %v11678_v39 = vld [vmem:[#allocation19_spill] sm:$0xff]  ;;  %v11679_v20 = vld [vmem:[#allocation20_spill] sm:$0xff] }
 0x653   :  { %5099 = vmatprep.subr.bf16.mxu0 %v10445_v34  ;;  %5140 = vmatprep.subr.bf16.mxu1 %v10447_v36  ;;  %v11680_v34 = vld [vmem:[#allocation21_spill] sm:$0xff]  ;;  %v11681_v36 = vld [vmem:[#allocation22_spill] sm:$0xff] }
 0x654   :  { %5129 = vmatprep.mubr.bf16.mxu0 %v11509_v32  ;;  %5170 = vmatprep.mubr.bf16.mxu1 %v11509_v32 }
 0x656   :  { %5100 = vmatpush1.bf16.msra.mxu0 %v10453_v0  ;;  %5141 = vmatpush1.bf16.msra.mxu1 %v10455_v18  ;;  %v11682_v0 = vld [vmem:[#allocation23_spill] sm:$0xff]  ;;  %v11683_v18 = vld [vmem:[#allocation24_spill] sm:$0xff] }
 0x657   :  { %5101 = vmatprep.subr.bf16.mxu0 %v10459_v40  ;;  %5142 = vmatprep.subr.bf16.mxu1 %v10461_v42  ;;  %v11684_v40 = vld [vmem:[#allocation25_spill] sm:$0xff]  ;;  %v11685_v42 = vld [vmem:[#allocation26_spill] sm:$0xff] }
 0x65a   :  { %5102 = vmatpush1.bf16.msra.mxu0 %v10467_v48  ;;  %5143 = vmatpush1.bf16.msra.mxu1 %v10469_v38  ;;  %v11686_v48 = vld [vmem:[#allocation27_spill] sm:$0xff]  ;;  %v11687_v38 = vld [vmem:[#allocation28_spill] sm:$0xff] }
 0x65b   :  { %5103 = vmatprep.subr.bf16.mxu0 %v10473_v51  ;;  %5144 = vmatprep.subr.bf16.mxu1 %v10475_v41  ;;  %v11688_v51 = vld [vmem:[#allocation29_spill] sm:$0xff]  ;;  %v11689_v41 = vld [vmem:[#allocation30_spill] sm:$0xff] }
 0x65e   :  { %5104 = vmatpush1.bf16.msra.mxu0 %v10479_v52  ;;  %5145 = vmatpush1.bf16.msra.mxu1 %v10481_v53  ;;  %v11690_v52 = vld [vmem:[#allocation31_spill] sm:$0xff]  ;;  %v11691_v53 = vld [vmem:[#allocation32_spill] sm:$0xff] }
 0x65f   :  { %5105 = vmatprep.subr.bf16.mxu0 %v10485_v55  ;;  %5146 = vmatprep.subr.bf16.mxu1 %v10487_v56  ;;  %v11692_v55 = vld [vmem:[#allocation33_spill] sm:$0xff]  ;;  %v11693_v56 = vld [vmem:[#allocation34_spill] sm:$0xff] }
 0x662   :  { %5106 = vmatpush1.bf16.msra.mxu0 %v10491_v57  ;;  %5147 = vmatpush1.bf16.msra.mxu1 %v10493_v58  ;;  %v11694_v57 = vld [vmem:[#allocation35_spill] sm:$0xff]  ;;  %v11695_v58 = vld [vmem:[#allocation36_spill] sm:$0xff] }
 0x663   :  { %5107 = vmatprep.subr.bf16.mxu0 %v10497_v59  ;;  %5148 = vmatprep.subr.bf16.mxu1 %v10499_v61  ;;  %v11696_v59 = vld [vmem:[#allocation37_spill] sm:$0xff]  ;;  %v11697_v61 = vld [vmem:[#allocation38_spill] sm:$0xff] }
 0x666   :  { %5108 = vmatpush1.bf16.msra.mxu0 %v10503_v63  ;;  %5149 = vmatpush1.bf16.msra.mxu1 %v10505_v1  ;;  %v11698_v63 = vld [vmem:[#allocation39_spill] sm:$0xff]  ;;  %v11699_v1 = vld [vmem:[#allocation40_spill] sm:$0xff] }
 0x667   :  { %5109 = vmatprep.subr.bf16.mxu0 %v10509_v2  ;;  %5150 = vmatprep.subr.bf16.mxu1 %v10511_v3  ;;  %v11700_v2 = vld [vmem:[#allocation41_spill] sm:$0xff]  ;;  %v11701_v3 = vld [vmem:[#allocation42_spill] sm:$0xff] }
 0x66a   :  { %5110 = vmatpush1.bf16.msra.mxu0 %v10515_v4  ;;  %5151 = vmatpush1.bf16.msra.mxu1 %v10517_v5  ;;  %v11702_v4 = vld [vmem:[#allocation43_spill] sm:$0xff]  ;;  %v11703_v5 = vld [vmem:[#allocation44_spill] sm:$0xff] }
 0x66b   :  { %5111 = vmatprep.subr.bf16.mxu0 %v10521_v46  ;;  %5152 = vmatprep.subr.bf16.mxu1 %v10523_v33  ;;  %v11704_v46 = vld [vmem:[#allocation45_spill] sm:$0xff]  ;;  %v11705_v33 = vld [vmem:[#allocation46_spill] sm:$0xff] }
 0x66e   :  { %5112 = vmatpush1.bf16.msra.mxu0 %v10527_v29  ;;  %5153 = vmatpush1.bf16.msra.mxu1 %v10529_v54  ;;  %v11706_v29 = vld [vmem:[#allocation47_spill] sm:$0xff]  ;;  %v11707_v54 = vld [vmem:[#allocation48_spill] sm:$0xff] }
 0x66f   :  { %5466 = vmatprep.subr.bf16.mxu0 %v10539_v6  ;;  %5507 = vmatprep.subr.bf16.mxu1 %v10541_v7 }
 0x671   :  { %5130 = vmatmul.mubr.bf16.vlgmr.msra.gmra.mrb[64].mxu0 %v4324_v10  ;;  %5171 = vmatmul.mubr.bf16.vlgmr.msra.gmra.mrb[64].mxu1 %v4324_v10 }
 0x672   :  { %5467 = vmatpush1.bf16.msra.mxu0 %v11676_v45  ;;  %5508 = vmatpush1.bf16.msra.mxu1 %v11677_v17 }
 0x673   :  { %5468 = vmatprep.subr.bf16.mxu0 %v11678_v39  ;;  %5509 = vmatprep.subr.bf16.mxu1 %v11679_v20 }
 0x674   :  { %5498 = vmatprep.mubr.bf16.mxu0 %v11509_v32  ;;  %5539 = vmatprep.mubr.bf16.mxu1 %v11509_v32 }
 0x676   :  { %5469 = vmatpush1.bf16.msra.mxu0 %v11680_v34  ;;  %5510 = vmatpush1.bf16.msra.mxu1 %v11681_v36 }
 0x677   :  { %5470 = vmatprep.subr.bf16.mxu0 %v11682_v0  ;;  %5511 = vmatprep.subr.bf16.mxu1 %v11683_v18 }
 0x67a   :  { %5471 = vmatpush1.bf16.msra.mxu0 %v11684_v40  ;;  %5512 = vmatpush1.bf16.msra.mxu1 %v11685_v42 }
 0x67b   :  { %5472 = vmatprep.subr.bf16.mxu0 %v11686_v48  ;;  %5513 = vmatprep.subr.bf16.mxu1 %v11687_v38 }
 0x67e   :  { %5473 = vmatpush1.bf16.msra.mxu0 %v11688_v51  ;;  %5514 = vmatpush1.bf16.msra.mxu1 %v11689_v41 }
 0x67f   :  { %5474 = vmatprep.subr.bf16.mxu0 %v11690_v52  ;;  %5515 = vmatprep.subr.bf16.mxu1 %v11691_v53 }
 0x682   :  { %5475 = vmatpush1.bf16.msra.mxu0 %v11692_v55  ;;  %5516 = vmatpush1.bf16.msra.mxu1 %v11693_v56 }
 0x683   :  { %5476 = vmatprep.subr.bf16.mxu0 %v11694_v57  ;;  %5517 = vmatprep.subr.bf16.mxu1 %v11695_v58 }
 0x686   :  { %5477 = vmatpush1.bf16.msra.mxu0 %v11696_v59  ;;  %5518 = vmatpush1.bf16.msra.mxu1 %v11697_v61 }
 0x687   :  { %5478 = vmatprep.subr.bf16.mxu0 %v11698_v63  ;;  %5519 = vmatprep.subr.bf16.mxu1 %v11699_v1 }
 0x68a   :  { %5479 = vmatpush1.bf16.msra.mxu0 %v11700_v2  ;;  %5520 = vmatpush1.bf16.msra.mxu1 %v11701_v3 }
 0x68b   :  { %5480 = vmatprep.subr.bf16.mxu0 %v11702_v4  ;;  %5521 = vmatprep.subr.bf16.mxu1 %v11703_v5 }
 0x68e   :  { %5481 = vmatpush1.bf16.msra.mxu0 %v11704_v46  ;;  %5522 = vmatpush1.bf16.msra.mxu1 %v11705_v33 }
 0x68f   :  { %5708 = vmatprep.subr.bf16.mxu0 %v11706_v29  ;;  %5749 = vmatprep.subr.bf16.mxu1 %v11707_v54 }
 0x6fc   :  { %v4584_v6 = vpop.f32.mrb[56].mxu0  ;;  %v4625_v7 = vpop.f32.mrb[56].mxu1 }
 0x6fd   :  { %v4586_v24 = vpop.f32.mrb[57].mxu0  ;;  %v4627_v12 = vpop.f32.mrb[57].mxu1 }
 0x6fe   :  { %v4588_v16 = vpop.f32.mrb[58].mxu0  ;;  %v4629_v49 = vpop.f32.mrb[58].mxu1 }
 0x6ff   :  { %v4589_v21 = vpop.f32.mrb[59].mxu0  ;;  %v4630_v43 = vpop.f32.mrb[59].mxu1 }
 0x724   :  { %v4826_v10 = vpop.f32.mrb[60].mxu0  ;;  %v4867_v45 = vpop.f32.mrb[60].mxu1 }
 0x725   :  { %v4827_v17 = vadd.f32 %v4826_v10, %v4584_v6  ;;  %v4868_v39 = vadd.f32 %v4867_v45, %v4625_v7  ;;  %v4828_v20 = vpop.f32.mrb[61].mxu0  ;;  %v4869_v34 = vpop.f32.mrb[61].mxu1 }
 0x726   :  { %v4829_v36 = vadd.f32 %v4828_v20, %v4586_v24  ;;  %v4870_v0 = vadd.f32 %v4869_v34, %v4627_v12  ;;  %v4830_v18 = vpop.f32.mrb[62].mxu0  ;;  %v4871_v40 = vpop.f32.mrb[62].mxu1 }
 0x727   :  { %v4874_v42 = vadd.f32 %v4827_v17, %v9941_v60  ;;  %v4831_v48 = vpop.f32.mrb[63].mxu0  ;;  %v4872_v38 = vpop.f32.mrb[63].mxu1  ;;  %v4876_v56 = vadd.f32 %v4868_v39, %v9956_v19  ;;  %v4904_v39 = vld [vmem:[#allocation2 + $0x5] ss:$8 sm:$0xf] }
 0x728   :  { %v4875_v51 = vadd.f32 %v4829_v36, %v9945_v62  ;;  %v4877_v53 = vadd.f32 %v4870_v0, %v9951_v15 }
 0x729   :  { %v8193_v41 = vmul.f32 -1.442695, %v4874_v42 }
 0x72a   :  { %v8194_v52 = vmul.f32 -1.442695, %v4875_v51  ;;  %v8195_v55 = vmul.f32 -1.442695, %v4877_v53 }
 0x72b   :  { %9256 = vpow2.f32 %v8193_v41 }
 0x72c   :  { %9258 = vpow2.f32 %v8194_v52 }
 0x72d   :  { %9260 = vpow2.f32 %v8195_v55  ;;  %v11710_v55 = vld [vmem:[#allocation51_spill] sm:$0xff] }
 0x72e   :  { %9262 = vtanh.f32 %v4876_v56  ;;  %v11711_v56 = vld [vmem:[#allocation52_spill] sm:$0xff] }
 0x735   :  { %v9257_v57 = vpop.eup %9256 }
 0x736   :  { %v9259_v58 = vpop.eup %9258  ;;  %v4881_v59 = vadd.f32 1.0, %v9257_v57  ;;  %v11714_v57 = vld [vmem:[#allocation55_spill] sm:$0xff] }
 0x737   :  { %v4887_v61 = vadd.f32 1.0, %v9259_v58  ;;  %v9261_v63 = vpop.eup %9260  ;;  %v11716_v58 = vld [vmem:[#allocation57_spill] sm:$0xff] }
 0x738   :  { %9264 = vrcp.f32 %v4881_v59  ;;  %v9263_v1 = vpop.eup %9262  ;;  %v4894_v5 = vadd.f32 1.0, %v9261_v63  ;;  %v11718_v63 = vld [vmem:[#allocation59_spill] sm:$0xff] }
 0x739   :  { %9266 = vrcp.f32 %v4887_v61  ;;  %v11717_v61 = vld [vmem:[#allocation58_spill] sm:$0xff] }
 0x73a   :  { %9268 = vrcp.f32 %v4894_v5 }
 0x742   :  { %v9265_v2 = vpop.eup %9264 }
 0x743   :  { %v9267_v3 = vpop.eup %9266  ;;  %v4898_v4 = vmul.f32 %v9265_v2, %v9263_v1  ;;  %v11719_v2 = vld [vmem:[#allocation60_spill] sm:$0xff] }
 0x744   :  { %v4897_v46 = vmul.f32 %v9267_v3, %v10646_v37  ;;  %v5131_v33 = vpop.f32.mrb[64].mxu0  ;;  %v5172_v29 = vpop.f32.mrb[64].mxu1  ;;  %v11720_v3 = vld [vmem:[#allocation61_spill] sm:$0xff] }
 0x745   :  { %v5133_v54 = vpop.f32.mrb[65].mxu0  ;;  %v5174_v6 = vpop.f32.mrb[65].mxu1 }
 0x746   :  { %v10823_v7 = vadd.f32 %v4898_v4, %v4897_v46  ;;  %v5183_v24 = vcombine.low %v5131_v33, %v5133_v54  ;;  %v5184_v12 = vcombine.low %v5172_v29, %v5174_v6  ;;  %v5135_v16 = vpop.f32.mrb[66].mxu0  ;;  %v5176_v49 = vpop.f32.mrb[66].mxu1  ;;  %v11721_v33 = vld [vmem:[#allocation62_spill] sm:$0xff]  ;;  %v11722_v29 = vld [vmem:[#allocation63_spill] sm:$0xff] }
 0x747   :  { %v5136_v21 = vpop.f32.mrb[67].mxu0  ;;  %v5177_v43 = vpop.f32.mrb[67].mxu1  ;;  %v10877_v16 = vld [vmem:[#allocation8 + $0x24] ss:$16 sps:$4 sm:$0xff]   ;;  %v10879_v49 = vld [vmem:[#allocation8 + $0x2c] ss:$16 sps:$4 sm:$0xff]  }
 0x748   :  { %v5191_v10 = vrot.slane %v5183_v24, %v9884_v47  ;;  %v5198_v45 = vrot.slane %v5184_v12, %v9884_v47  ;;  %9270 = vtanh.f32 %v10823_v7  ;;  %v9269_v0 = vpop.eup %9268  ;;  %v10863_v12 = vld [vmem:[#allocation8 + $0x4] ss:$16 sps:$4 sm:$0xff]   ;;  %v10893_v43 = vld [vmem:[#allocation8 + $0x4c] ss:$16 sps:$4 sm:$0xff]  }
 0x749   :  { %v10891_v21 = vld [vmem:[#allocation8 + $0x44] ss:$16 sps:$4 sm:$0xff]  }
 0x74a   :  { %v5199_v37 = vcombine.low %v5191_v10, %v5198_v45  ;;  %v10899_v10 = vld [vmem:[#allocation8 + $0x40] ss:$16 sps:$4 sm:$0xff]   ;;  %v10901_v45 = vld [vmem:[#allocation8 + $0x48] ss:$16 sps:$4 sm:$0xff]  }
 0x74c   :  { %v5206_v17 = vrot.slane %v5199_v37, %v9884_v47  ;;  %v10905_v37 = vld [vmem:[#allocation8 + $0x64] ss:$16 sps:$4 sm:$0xff]  }
 0x74e   :  { %v5208_v20 = vadd.f32 %v5206_v17, %v4904_v39  ;;  %v10907_v17 = vld [vmem:[#allocation8 + $0x6c] ss:$16 sps:$4 sm:$0xff]   ;;  %v10911_v39 = vld [vmem:[#allocation8 + $0x60] ss:$16 sps:$4 sm:$0xff]  }
 0x750   :  { %v8228_v34 = vmul.f32 -1.442695, %v5208_v20  ;;  %v5216_v36 = vrot.slane %v5208_v20, 1  ;;  %v5227_v38 = vrot.slane %v5208_v20, 3  ;;  %v5224_v52 = vrot.slane %v5208_v20, 2 }
 0x751   :  { %v10913_v20 = vld [vmem:[#allocation8 + $0x68] ss:$16 sps:$4 sm:$0xff]  }
 0x752   :  { %v9271_v18 = vpop.eup %9270  ;;  %9272 = vpow2.f32 %v8228_v34  ;;  %v8229_v40 = vmul.f32 -1.442695, %v5216_v36  ;;  %v8230_v51 = vmul.f32 -1.442695, %v5227_v38  ;;  %v10917_v34 = vld [vmem:[#allocation8 + $0x84] ss:$16 sps:$4 sm:$0xff]  }
 0x753   :  { %v4901_v42 = vmul.f32 %v9271_v18, %v9269_v0  ;;  %v10919_v36 = vld [vmem:[#allocation8 + $0x8c] ss:$16 sps:$4 sm:$0xff]   ;;  %v10923_v0 = vld [vmem:[#allocation8 + $0x80] ss:$16 sps:$4 sm:$0xff]   ;;  %v10925_v18 = vld [vmem:[#allocation8 + $0x88] ss:$16 sps:$4 sm:$0xff]  }
 0x754   :  { %9274 = vpow2.f32 %v8229_v40  ;;  %v10929_v40 = vld [vmem:[#allocation8 + $0xa4] ss:$16 sps:$4 sm:$0xff]   ;;  %v10937_v38 = vld [vmem:[#allocation8 + $0xa8] ss:$16 sps:$4 sm:$0xff]  }
 0x755   :  { %4902 = vst [vmem:[#allocation12 + $0x4] sm:$0x1] %v4901_v42  ;;  %v5273_v48 = vpack.c.bf16 %v4901_v42, %v4901_v42  ;;  %9276 = vpow2.f32 %v8230_v51  ;;  %v10931_v42 = vld [vmem:[#allocation8 + $0xac] ss:$16 sps:$4 sm:$0xff]   ;;  %v10941_v51 = vld [vmem:[#allocation8 + $0xc4] ss:$16 sps:$4 sm:$0xff]  }
 0x757   :  { %5499 = vmatmul.mubr.bf16.vlgmr.msra.gmra.mrb[68].mxu0 %v5273_v48  ;;  %5540 = vmatmul.mubr.bf16.vlgmr.msra.gmra.mrb[68].mxu1 %v5273_v48  ;;  %v10935_v48 = vld [vmem:[#allocation8 + $0xa0] ss:$16 sps:$4 sm:$0xff]  }
 0x758   :  { %5709 = vmatpush1.bf16.msra.mxu0 %v10652_v9  ;;  %5750 = vmatpush1.bf16.msra.mxu1 %v10654_v13  ;;  %v11708_v9 = vld [vmem:[#allocation49_spill] sm:$0xff] }
 0x759   :  { %5710 = vmatprep.subr.bf16.mxu0 %v10656_v30  ;;  %5751 = vmatprep.subr.bf16.mxu1 %v10658_v35  ;;  %v11709_v35 = vld [vmem:[#allocation50_spill] sm:$0xff] }
 0x75a   :  { %5740 = vmatprep.mubr.bf16.mxu0 %v11509_v32  ;;  %5781 = vmatprep.mubr.bf16.mxu1 %v11509_v32 }
 0x75c   :  { %v9273_v41 = vpop.eup %9272  ;;  %5711 = vmatpush1.bf16.msra.mxu0 %v10662_v31  ;;  %5752 = vmatpush1.bf16.msra.mxu1 %v10664_v11  ;;  %v11712_v31 = vld [vmem:[#allocation53_spill] sm:$0xff]  ;;  %v11713_v11 = vld [vmem:[#allocation54_spill] sm:$0xff] }
 0x75d   :  { %v5212_v53 = vadd.f32 1.0, %v9273_v41  ;;  %5712 = vmatprep.subr.bf16.mxu0 %v10668_v26  ;;  %5753 = vmatprep.subr.bf16.mxu1 %v11708_v9  ;;  %v11715_v26 = vld [vmem:[#allocation56_spill] sm:$0xff]  ;;  %v10943_v41 = vld [vmem:[#allocation8 + $0xcc] ss:$16 sps:$4 sm:$0xff]  }
 0x75e   :  { %v9275_v13 = vpop.eup %9274  ;;  %v10953_v9 = vld [vmem:[#allocation8 + $0xe4] ss:$16 sps:$4 sm:$0xff]  }
 0x75f   :  { %9278 = vrcp.f32 %v5212_v53  ;;  %v5221_v30 = vadd.f32 1.0, %v9275_v13  ;;  %v9277_v59 = vpop.eup %9276  ;;  %v10949_v53 = vld [vmem:[#allocation8 + $0xc8] ss:$16 sps:$4 sm:$0xff]   ;;  %v10955_v13 = vld [vmem:[#allocation8 + $0xec] ss:$16 sps:$4 sm:$0xff]  }
 0x760   :  { %9280 = vtanh.f32 %v5224_v52  ;;  %5713 = vmatpush1.bf16.msra.mxu0 %v11709_v35  ;;  %5754 = vmatpush1.bf16.msra.mxu1 %v11710_v55  ;;  %v5232_v46 = vadd.f32 1.0, %v9277_v59  ;;  %v10947_v52 = vld [vmem:[#allocation8 + $0xc0] ss:$16 sps:$4 sm:$0xff]   ;;  %v10961_v35 = vld [vmem:[#allocation8 + $0xe8] ss:$16 sps:$4 sm:$0xff]  }
 0x761   :  { %9282 = vrcp.f32 %v5221_v30  ;;  %5714 = vmatprep.subr.bf16.mxu0 %v11711_v56  ;;  %5755 = vmatprep.subr.bf16.mxu1 %v11712_v31  ;;  %v10959_v30 = vld [vmem:[#allocation8 + $0xe0] ss:$16 sps:$4 sm:$0xff]   ;;  %v10971_v55 = vld [vmem:[#allocation11 + $0x4] ss:$16 sps:$4 sm:$0xff]   ;;  %v10973_v56 = vld [vmem:[#allocation11 + $0xc] ss:$16 sps:$4 sm:$0xff]  }
 0x762   :  { %9284 = vrcp.f32 %v5232_v46  ;;  %v10975_v31 = vld [vmem:[#allocation11] ss:$16 sps:$4 sm:$0xff]   ;;  %v10989_v59 = vld [vmem:[#allocation11 + $0x28] ss:$16 sps:$4 sm:$0xff]  }
 0x763   :  { %11723 = vst [vmem:[#allocation17_spill] sm:$0xff] %v10975_v31  ;;  %11728 = vst [vmem:[#allocation22_spill] sm:$0xff] %v10989_v59  ;;  %v11013_v46 = vld [vmem:[#allocation11 + $0x68] ss:$16 sps:$4 sm:$0xff]  }
 0x764   :  { %5715 = vmatpush1.bf16.msra.mxu0 %v11713_v11  ;;  %5756 = vmatpush1.bf16.msra.mxu1 %v11714_v57  ;;  %v10977_v11 = vld [vmem:[#allocation11 + $0x8] ss:$16 sps:$4 sm:$0xff]   ;;  %v10983_v57 = vld [vmem:[#allocation11 + $0x24] ss:$16 sps:$4 sm:$0xff]   ;;  %11736 = vst [vmem:[#allocation30_spill] sm:$0xff] %v11013_v46 }
 0x765   :  { %5716 = vmatprep.subr.bf16.mxu0 %v11715_v26  ;;  %5757 = vmatprep.subr.bf16.mxu1 %v11716_v58  ;;  %11724 = vst [vmem:[#allocation18_spill] sm:$0xff] %v10977_v11  ;;  %11725 = vst [vmem:[#allocation19_spill] sm:$0xff] %v10983_v57  ;;  %v10985_v26 = vld [vmem:[#allocation11 + $0x2c] ss:$16 sps:$4 sm:$0xff]   ;;  %v10987_v58 = vld [vmem:[#allocation11 + $0x20] ss:$16 sps:$4 sm:$0xff]  }
 0x766   :  { %11726 = vst [vmem:[#allocation20_spill] sm:$0xff] %v10985_v26  ;;  %11727 = vst [vmem:[#allocation21_spill] sm:$0xff] %v10987_v58 }
 0x768   :  { %5717 = vmatpush1.bf16.msra.mxu0 %v11717_v61  ;;  %5758 = vmatpush1.bf16.msra.mxu1 %v11718_v63  ;;  %v10995_v61 = vld [vmem:[#allocation11 + $0x44] ss:$16 sps:$4 sm:$0xff]   ;;  %v10997_v63 = vld [vmem:[#allocation11 + $0x4c] ss:$16 sps:$4 sm:$0xff]  }
 0x769   :  { %v9279_v1 = vpop.eup %9278  ;;  %5718 = vmatprep.subr.bf16.mxu0 %v11719_v2  ;;  %5759 = vmatprep.subr.bf16.mxu1 %v11720_v3  ;;  %11729 = vst [vmem:[#allocation23_spill] sm:$0xff] %v10995_v61  ;;  %11730 = vst [vmem:[#allocation24_spill] sm:$0xff] %v10997_v63  ;;  %v11001_v2 = vld [vmem:[#allocation11 + $0x48] ss:$16 sps:$4 sm:$0xff]   ;;  %v11007_v3 = vld [vmem:[#allocation11 + $0x64] ss:$16 sps:$4 sm:$0xff]  }
 0x76a   :  { %v9281_v4 = vpop.eup %9280  ;;  %11732 = vst [vmem:[#allocation26_spill] sm:$0xff] %v11001_v2  ;;  %11733 = vst [vmem:[#allocation27_spill] sm:$0xff] %v11007_v3 }
 0x76b   :  { %v9283_v5 = vpop.eup %9282  ;;  %v5236_v6 = vmul.f32 %v9281_v4, %v9279_v1  ;;  %v10999_v1 = vld [vmem:[#allocation11 + $0x40] ss:$16 sps:$4 sm:$0xff]   ;;  %v11009_v4 = vld [vmem:[#allocation11 + $0x6c] ss:$16 sps:$4 sm:$0xff]  }
 0x76c   :  { %5719 = vmatpush1.bf16.msra.mxu0 %v11721_v33  ;;  %5760 = vmatpush1.bf16.msra.mxu1 %v11722_v29  ;;  %v5235_v54 = vmul.f32 %v9283_v5, %v10735_v50  ;;  %v10865_v50 = vld [vmem:[#allocation8 + $0xc] ss:$16 sps:$4 sm:$0xff]   ;;  %11731 = vst [vmem:[#allocation25_spill] sm:$0xff] %v10999_v1  ;;  %11734 = vst [vmem:[#allocation28_spill] sm:$0xff] %v11009_v4  ;;  %v11011_v5 = vld [vmem:[#allocation11 + $0x60] ss:$16 sps:$4 sm:$0xff]  }
 0x76d   :  { %5720 = vmatprep.subr.bf16.mxu0 %v10718_v14  ;;  %5761 = vmatprep.subr.bf16.mxu1 %v10720_v23  ;;  %v9285_v14 = vpop.eup %9284  ;;  %11735 = vst [vmem:[#allocation29_spill] sm:$0xff] %v11011_v5  ;;  %v11019_v33 = vld [vmem:[#allocation11 + $0x84] ss:$16 sps:$4 sm:$0xff]   ;;  %v11021_v29 = vld [vmem:[#allocation11 + $0x8c] ss:$16 sps:$4 sm:$0xff]  }
 0x76e   :  { %v10856_v24 = vadd.f32 %v5236_v6, %v5235_v54  ;;  %11737 = vst [vmem:[#allocation31_spill] sm:$0xff] %v11019_v33  ;;  %11738 = vst [vmem:[#allocation32_spill] sm:$0xff] %v11021_v29  ;;  %v11023_v54 = vld [vmem:[#allocation11 + $0x80] ss:$16 sps:$4 sm:$0xff]   ;;  %v11025_v6 = vld [vmem:[#allocation11 + $0x88] ss:$16 sps:$4 sm:$0xff]  }
 0x76f   :  { %11739 = vst [vmem:[#allocation33_spill] sm:$0xff] %v11023_v54  ;;  %11740 = vst [vmem:[#allocation34_spill] sm:$0xff] %v11025_v6 }
 0x770   :  { %5721 = vmatpush1.bf16.msra.mxu0 %v10724_v22  ;;  %5762 = vmatpush1.bf16.msra.mxu1 %v10726_v28  ;;  %9286 = vtanh.f32 %v10856_v24  ;;  %v10871_v22 = vld [vmem:[#allocation8] ss:$16 sps:$4 sm:$0xff]  }
 0x771   :  { %5722 = vmatprep.subr.bf16.mxu0 %v10731_v8  ;;  %5763 = vmatprep.subr.bf16.mxu1 %v10733_v27  ;;  %v10873_v8 = vld [vmem:[#allocation8 + $0x8] ss:$16 sps:$4 sm:$0xff]  }
 0x774   :  { %5723 = vmatpush1.bf16.msra.mxu0 %v10739_v25  ;;  %5764 = vmatpush1.bf16.msra.mxu1 %v10741_v44  ;;  %v10885_v25 = vld [vmem:[#allocation8 + $0x20] ss:$16 sps:$4 sm:$0xff]   ;;  %v10887_v44 = vld [vmem:[#allocation8 + $0x28] ss:$16 sps:$4 sm:$0xff]  }
 0x775   :  { %6013 = vmatprep.subr.bf16.mxu0 %v10863_v12  ;;  %6054 = vmatprep.subr.bf16.mxu1 %v10865_v50 }
 0x77a   :  { %v9287_v23 = vpop.eup %9286 }
 0x77b   :  { %v5239_v28 = vmul.f32 %v9287_v23, %v9285_v14  ;;  %v11031_v14 = vld [vmem:[#allocation11 + $0xa4] ss:$16 sps:$4 sm:$0xff]   ;;  %v11033_v23 = vld [vmem:[#allocation11 + $0xac] ss:$16 sps:$4 sm:$0xff]  }
 0x77c   :  { %11741 = vst [vmem:[#allocation35_spill] sm:$0xff] %v11031_v14  ;;  %11742 = vst [vmem:[#allocation36_spill] sm:$0xff] %v11033_v23 }
 0x77d   :  { %v10875_v27 = vpack.c.bf16 %v5239_v28, %v5239_v28  ;;  %v11035_v28 = vld [vmem:[#allocation11 + $0xa0] ss:$16 sps:$4 sm:$0xff]  }
 0x77e   :  { %11743 = vst [vmem:[#allocation37_spill] sm:$0xff] %v11035_v28 }
 0x77f   :  { %5741 = vmatmul.mubr.bf16.vlgmr.msra.gmra.mrb[72].mxu0 %v10875_v27  ;;  %5782 = vmatmul.mubr.bf16.vlgmr.msra.gmra.mrb[72].mxu1 %v10875_v27 }
 0x780   :  { %6014 = vmatpush1.bf16.msra.mxu0 %v10871_v22  ;;  %6055 = vmatpush1.bf16.msra.mxu1 %v10873_v8 }
 0x781   :  { %6015 = vmatprep.subr.bf16.mxu0 %v10877_v16  ;;  %6056 = vmatprep.subr.bf16.mxu1 %v10879_v49 }
 0x782   :  { %6045 = vmatprep.mubr.bf16.mxu0 %v11509_v32  ;;  %6086 = vmatprep.mubr.bf16.mxu1 %v11509_v32 }
 0x784   :  { %6016 = vmatpush1.bf16.msra.mxu0 %v10885_v25  ;;  %6057 = vmatpush1.bf16.msra.mxu1 %v10887_v44 }
 0x785   :  { %6017 = vmatprep.subr.bf16.mxu0 %v10891_v21  ;;  %6058 = vmatprep.subr.bf16.mxu1 %v10893_v43 }
 0x788   :  { %6018 = vmatpush1.bf16.msra.mxu0 %v10899_v10  ;;  %6059 = vmatpush1.bf16.msra.mxu1 %v10901_v45 }
 0x789   :  { %6019 = vmatprep.subr.bf16.mxu0 %v10905_v37  ;;  %6060 = vmatprep.subr.bf16.mxu1 %v10907_v17 }
 0x78c   :  { %6020 = vmatpush1.bf16.msra.mxu0 %v10911_v39  ;;  %6061 = vmatpush1.bf16.msra.mxu1 %v10913_v20 }
 0x78d   :  { %6021 = vmatprep.subr.bf16.mxu0 %v10917_v34  ;;  %6062 = vmatprep.subr.bf16.mxu1 %v10919_v36 }
 0x790   :  { %6022 = vmatpush1.bf16.msra.mxu0 %v10923_v0  ;;  %6063 = vmatpush1.bf16.msra.mxu1 %v10925_v18 }
 0x791   :  { %6023 = vmatprep.subr.bf16.mxu0 %v10929_v40  ;;  %6064 = vmatprep.subr.bf16.mxu1 %v10931_v42 }
 0x794   :  { %6024 = vmatpush1.bf16.msra.mxu0 %v10935_v48  ;;  %6065 = vmatpush1.bf16.msra.mxu1 %v10937_v38 }
 0x795   :  { %6025 = vmatprep.subr.bf16.mxu0 %v10941_v51  ;;  %6066 = vmatprep.subr.bf16.mxu1 %v10943_v41 }
 0x798   :  { %6026 = vmatpush1.bf16.msra.mxu0 %v10947_v52  ;;  %6067 = vmatpush1.bf16.msra.mxu1 %v10949_v53 }
 0x799   :  { %6027 = vmatprep.subr.bf16.mxu0 %v10953_v9  ;;  %6068 = vmatprep.subr.bf16.mxu1 %v10955_v13 }
 0x79c   :  { %6028 = vmatpush1.bf16.msra.mxu0 %v10959_v30  ;;  %6069 = vmatpush1.bf16.msra.mxu1 %v10961_v35 }
 0x79d   :  { %6382 = vmatprep.subr.bf16.mxu0 %v10971_v55  ;;  %6423 = vmatprep.subr.bf16.mxu1 %v10973_v56 }
 0x79f   :  { %6046 = vmatmul.mubr.bf16.vlgmr.msra.gmra.mrb[76].mxu0 %v10875_v27  ;;  %6087 = vmatmul.mubr.bf16.vlgmr.msra.gmra.mrb[76].mxu1 %v10875_v27  ;;  %v11037_v27 = vld [vmem:[#allocation11 + $0xa8] ss:$16 sps:$4 sm:$0xff]  }
 0x7a0   :  { %6414 = vmatprep.mubr.bf16.mxu0 %v11509_v32  ;;  %6455 = vmatprep.mubr.bf16.mxu1 %v11509_v32  ;;  %11744 = vst [vmem:[#allocation38_spill] sm:$0xff] %v11037_v27 }
 0x7a1   :  { %6383 = vmatpush1.bf16.msra.mxu0 %v10975_v31  ;;  %6424 = vmatpush1.bf16.msra.mxu1 %v10977_v11 }
 0x7a2   :  { %6384 = vmatprep.subr.bf16.mxu0 %v10983_v57  ;;  %6425 = vmatprep.subr.bf16.mxu1 %v10985_v26 }
 0x7a5   :  { %6385 = vmatpush1.bf16.msra.mxu0 %v10987_v58  ;;  %6426 = vmatpush1.bf16.msra.mxu1 %v10989_v59 }
 0x7a6   :  { %6386 = vmatprep.subr.bf16.mxu0 %v10995_v61  ;;  %6427 = vmatprep.subr.bf16.mxu1 %v10997_v63 }
 0x7a9   :  { %6387 = vmatpush1.bf16.msra.mxu0 %v10999_v1  ;;  %6428 = vmatpush1.bf16.msra.mxu1 %v11001_v2 }
 0x7aa   :  { %6388 = vmatprep.subr.bf16.mxu0 %v11007_v3  ;;  %6429 = vmatprep.subr.bf16.mxu1 %v11009_v4 }
 0x7ad   :  { %6389 = vmatpush1.bf16.msra.mxu0 %v11011_v5  ;;  %6430 = vmatpush1.bf16.msra.mxu1 %v11013_v46 }
 0x7ae   :  { %6390 = vmatprep.subr.bf16.mxu0 %v11019_v33  ;;  %6431 = vmatprep.subr.bf16.mxu1 %v11021_v29  ;;  %v11043_v29 = vld [vmem:[#allocation11 + $0xc4] ss:$16 sps:$4 sm:$0xff]   ;;  %v11049_v33 = vld [vmem:[#allocation11 + $0xc8] ss:$16 sps:$4 sm:$0xff]  }
 0x7af   :  { %11745 = vst [vmem:[#allocation39_spill] sm:$0xff] %v11043_v29  ;;  %11748 = vst [vmem:[#allocation42_spill] sm:$0xff] %v11049_v33 }
 0x7b1   :  { %6391 = vmatpush1.bf16.msra.mxu0 %v11023_v54  ;;  %6432 = vmatpush1.bf16.msra.mxu1 %v11025_v6  ;;  %v11045_v54 = vld [vmem:[#allocation11 + $0xcc] ss:$16 sps:$4 sm:$0xff]   ;;  %v11047_v6 = vld [vmem:[#allocation11 + $0xc0] ss:$16 sps:$4 sm:$0xff]  }
 0x7b2   :  { %6392 = vmatprep.subr.bf16.mxu0 %v11031_v14  ;;  %6433 = vmatprep.subr.bf16.mxu1 %v11033_v23  ;;  %11746 = vst [vmem:[#allocation40_spill] sm:$0xff] %v11045_v54  ;;  %11747 = vst [vmem:[#allocation41_spill] sm:$0xff] %v11047_v6  ;;  %v11055_v23 = vld [vmem:[#allocation11 + $0xe4] ss:$16 sps:$4 sm:$0xff]   ;;  %v11061_v14 = vld [vmem:[#allocation11 + $0xe8] ss:$16 sps:$4 sm:$0xff]  }
 0x7b3   :  { %11749 = vst [vmem:[#allocation43_spill] sm:$0xff] %v11055_v23  ;;  %11752 = vst [vmem:[#allocation46_spill] sm:$0xff] %v11061_v14 }
 0x7b5   :  { %6393 = vmatpush1.bf16.msra.mxu0 %v11035_v28  ;;  %6434 = vmatpush1.bf16.msra.mxu1 %v11037_v27  ;;  %v11057_v28 = vld [vmem:[#allocation11 + $0xec] ss:$16 sps:$4 sm:$0xff]   ;;  %v11059_v27 = vld [vmem:[#allocation11 + $0xe0] ss:$16 sps:$4 sm:$0xff]  }
 0x7b6   :  { %6394 = vmatprep.subr.bf16.mxu0 %v11043_v29  ;;  %6435 = vmatprep.subr.bf16.mxu1 %v11045_v54  ;;  %11750 = vst [vmem:[#allocation44_spill] sm:$0xff] %v11057_v28  ;;  %11751 = vst [vmem:[#allocation45_spill] sm:$0xff] %v11059_v27  ;;  %v11067_v54 = vld [vmem:[#allocation9 + $0x4] ss:$16 sps:$4 sm:$0xff]  }
 0x7b7   :  { %11753 = vst [vmem:[#allocation47_spill] sm:$0xff] %v11067_v54 }
 0x7b9   :  { %6395 = vmatpush1.bf16.msra.mxu0 %v11047_v6  ;;  %6436 = vmatpush1.bf16.msra.mxu1 %v11049_v33  ;;  %v11069_v6 = vld [vmem:[#allocation9 + $0xc] ss:$16 sps:$4 sm:$0xff]  }
 0x7ba   :  { %6396 = vmatprep.subr.bf16.mxu0 %v11055_v23  ;;  %6437 = vmatprep.subr.bf16.mxu1 %v11057_v28  ;;  %11754 = vst [vmem:[#allocation48_spill] sm:$0xff] %v11069_v6 }
 0x7bd   :  { %6397 = vmatpush1.bf16.msra.mxu0 %v11059_v27  ;;  %6438 = vmatpush1.bf16.msra.mxu1 %v11061_v14 }
 0x7be   :  { %6624 = vmatprep.subr.bf16.mxu0 %v11067_v54  ;;  %6665 = vmatprep.subr.bf16.mxu1 %v11069_v6 }
 0x82a   :  { %v5500_v33 = vpop.f32.mrb[68].mxu0  ;;  %v5541_v29 = vpop.f32.mrb[68].mxu1 }
 0x82b   :  { %v5502_v46 = vpop.f32.mrb[69].mxu0  ;;  %v5543_v5 = vpop.f32.mrb[69].mxu1 }
 0x82c   :  { %v5504_v4 = vpop.f32.mrb[70].mxu0  ;;  %v5545_v23 = vpop.f32.mrb[70].mxu1 }
 0x82d   :  { %v5505_v3 = vpop.f32.mrb[71].mxu0  ;;  %v5546_v28 = vpop.f32.mrb[71].mxu1 }
 0x852   :  { %v5742_v2 = vpop.f32.mrb[72].mxu0  ;;  %v5783_v27 = vpop.f32.mrb[72].mxu1 }
 0x853   :  { %v5743_v1 = vadd.f32 %v5742_v2, %v5500_v33  ;;  %v5784_v14 = vadd.f32 %v5783_v27, %v5541_v29  ;;  %v5744_v63 = vpop.f32.mrb[73].mxu0  ;;  %v5785_v61 = vpop.f32.mrb[73].mxu1 }
 0x854   :  { %v5745_v59 = vadd.f32 %v5744_v63, %v5502_v46  ;;  %v5786_v58 = vadd.f32 %v5785_v61, %v5543_v5  ;;  %v5746_v26 = vpop.f32.mrb[74].mxu0  ;;  %v5787_v54 = vpop.f32.mrb[74].mxu1 }
 0x855   :  { %v5790_v6 = vadd.f32 %v5743_v1, %v9941_v60  ;;  %v5747_v57 = vpop.f32.mrb[75].mxu0  ;;  %v5788_v11 = vpop.f32.mrb[75].mxu1  ;;  %v5792_v33 = vadd.f32 %v5784_v14, %v9956_v19 }
 0x856   :  { %v5791_v31 = vadd.f32 %v5745_v59, %v9945_v62  ;;  %v5793_v3 = vadd.f32 %v5786_v58, %v9951_v15 }
 0x857   :  { %v8295_v4 = vmul.f32 -1.442695, %v5790_v6 }
 0x858   :  { %v8296_v23 = vmul.f32 -1.442695, %v5791_v31  ;;  %v8297_v2 = vmul.f32 -1.442695, %v5793_v3 }
 0x859   :  { %9288 = vpow2.f32 %v8295_v4 }
 0x85a   :  { %9290 = vpow2.f32 %v8296_v23 }
 0x85b   :  { %9292 = vpow2.f32 %v8297_v2 }
 0x85c   :  { %9294 = vtanh.f32 %v5792_v33 }
 0x863   :  { %v9289_v29 = vpop.eup %9288 }
 0x864   :  { %v9291_v63 = vpop.eup %9290  ;;  %v5797_v61 = vadd.f32 1.0, %v9289_v29 }
 0x865   :  { %v5803_v26 = vadd.f32 1.0, %v9291_v63  ;;  %v9293_v11 = vpop.eup %9292 }
 0x866   :  { %9296 = vrcp.f32 %v5797_v61  ;;  %v9295_v57 = vpop.eup %9294  ;;  %v5810_v5 = vadd.f32 1.0, %v9293_v11 }
 0x867   :  { %9298 = vrcp.f32 %v5803_v26  ;;  %v5820_v26 = vld [vmem:[#allocation2 + $0x6] ss:$8 sm:$0xf] }
 0x868   :  { %9300 = vrcp.f32 %v5810_v5 }
 0x870   :  { %v9297_v59 = vpop.eup %9296 }
 0x871   :  { %v9299_v1 = vpop.eup %9298  ;;  %v5814_v31 = vmul.f32 %v9297_v59, %v9295_v57 }
 0x872   :  { %v5813_v46 = vmul.f32 %v9299_v1, %v10823_v7  ;;  %v6047_v58 = vpop.f32.mrb[76].mxu0  ;;  %v6088_v54 = vpop.f32.mrb[76].mxu1 }
 0x873   :  { %v6049_v6 = vpop.f32.mrb[77].mxu0  ;;  %v6090_v14 = vpop.f32.mrb[77].mxu1 }
 0x874   :  { %v11078_v28 = vadd.f32 %v5814_v31, %v5813_v46  ;;  %v6099_v27 = vcombine.low %v6047_v58, %v6049_v6  ;;  %v6100_v4 = vcombine.low %v6088_v54, %v6090_v14  ;;  %v6051_v23 = vpop.f32.mrb[78].mxu0  ;;  %v6092_v3 = vpop.f32.mrb[78].mxu1  ;;  %v11084_v58 = vld [vmem:[#allocation9] ss:$16 sps:$4 sm:$0xff]   ;;  %v11086_v54 = vld [vmem:[#allocation9 + $0x8] ss:$16 sps:$4 sm:$0xff]  }
 0x875   :  { %v6052_v2 = vpop.f32.mrb[79].mxu0  ;;  %v6093_v33 = vpop.f32.mrb[79].mxu1  ;;  %v11088_v14 = vld [vmem:[#allocation9 + $0x24] ss:$16 sps:$4 sm:$0xff]   ;;  %v11094_v23 = vld [vmem:[#allocation9 + $0x20] ss:$16 sps:$4 sm:$0xff]  }
 0x876   :  { %v6107_v29 = vrot.slane %v6099_v27, %v9884_v47  ;;  %v6114_v63 = vrot.slane %v6100_v4, %v9884_v47  ;;  %9302 = vtanh.f32 %v11078_v28  ;;  %v9301_v1 = vpop.eup %9300  ;;  %v11090_v27 = vld [vmem:[#allocation9 + $0x2c] ss:$16 sps:$4 sm:$0xff]   ;;  %v11096_v3 = vld [vmem:[#allocation9 + $0x28] ss:$16 sps:$4 sm:$0xff]   ;;  %v11100_v2 = vld [vmem:[#allocation9 + $0x44] ss:$16 sps:$4 sm:$0xff]  }
 0x877   :  { %v11102_v33 = vld [vmem:[#allocation9 + $0x4c] ss:$16 sps:$4 sm:$0xff]  }
 0x878   :  { %v6115_v7 = vcombine.low %v6107_v29, %v6114_v63  ;;  %11755 = vst [vmem:[#allocation49_spill] sm:$0xff] %v11102_v33 }
 0x87a   :  { %v6122_v61 = vrot.slane %v6115_v7, %v9884_v47 }
 0x87c   :  { %v6124_v11 = vadd.f32 %v6122_v61, %v5820_v26  ;;  %v11108_v61 = vld [vmem:[#allocation9 + $0x40] ss:$16 sps:$4 sm:$0xff]   ;;  %v11110_v26 = vld [vmem:[#allocation9 + $0x48] ss:$16 sps:$4 sm:$0xff]  }
 0x87d   :  { %11756 = vst [vmem:[#allocation50_spill] sm:$0xff] %v11108_v61  ;;  %11757 = vst [vmem:[#allocation51_spill] sm:$0xff] %v11110_v26 }
 0x87e   :  { %v8330_v57 = vmul.f32 -1.442695, %v6124_v11  ;;  %v6132_v59 = vrot.slane %v6124_v11, 1  ;;  %v6143_v4 = vrot.slane %v6124_v11, 3  ;;  %v6140_v7 = vrot.slane %v6124_v11, 2 }
 0x880   :  { %v9303_v31 = vpop.eup %9302  ;;  %9304 = vpow2.f32 %v8330_v57  ;;  %v8331_v46 = vmul.f32 -1.442695, %v6132_v59  ;;  %v8332_v29 = vmul.f32 -1.442695, %v6143_v4  ;;  %v11114_v59 = vld [vmem:[#allocation9 + $0x64] ss:$16 sps:$4 sm:$0xff]  }
 0x881   :  { %v5817_v5 = vmul.f32 %v9303_v31, %v9301_v1  ;;  %11758 = vst [vmem:[#allocation52_spill] sm:$0xff] %v11114_v59  ;;  %v11116_v1 = vld [vmem:[#allocation9 + $0x6c] ss:$16 sps:$4 sm:$0xff]  }
 0x882   :  { %9306 = vpow2.f32 %v8331_v46  ;;  %11759 = vst [vmem:[#allocation53_spill] sm:$0xff] %v11116_v1  ;;  %v11120_v46 = vld [vmem:[#allocation9 + $0x60] ss:$16 sps:$4 sm:$0xff]   ;;  %v11128_v4 = vld [vmem:[#allocation9 + $0x8c] ss:$16 sps:$4 sm:$0xff]  }
 0x883   :  { %5818 = vst [vmem:[#allocation12 + $0x5] sm:$0x1] %v5817_v5  ;;  %v6189_v6 = vpack.c.bf16 %v5817_v5, %v5817_v5  ;;  %9308 = vpow2.f32 %v8332_v29  ;;  %11760 = vst [vmem:[#allocation54_spill] sm:$0xff] %v11120_v46  ;;  %v11122_v5 = vld [vmem:[#allocation9 + $0x68] ss:$16 sps:$4 sm:$0xff]  }
 0x884   :  { %11761 = vst [vmem:[#allocation55_spill] sm:$0xff] %v11122_v5  ;;  %11763 = vst [vmem:[#allocation57_spill] sm:$0xff] %v11128_v4  ;;  %v11132_v29 = vld [vmem:[#allocation9 + $0x80] ss:$16 sps:$4 sm:$0xff]  }
 0x885   :  { %6415 = vmatmul.mubr.bf16.vlgmr.msra.gmra.mrb[80].mxu0 %v6189_v6  ;;  %6456 = vmatmul.mubr.bf16.vlgmr.msra.gmra.mrb[80].mxu1 %v6189_v6  ;;  %v11126_v6 = vld [vmem:[#allocation9 + $0x84] ss:$16 sps:$4 sm:$0xff]   ;;  %11764 = vst [vmem:[#allocation58_spill] sm:$0xff] %v11132_v29 }
 0x886   :  { %6625 = vmatpush1.bf16.msra.mxu0 %v11084_v58  ;;  %6666 = vmatpush1.bf16.msra.mxu1 %v11086_v54  ;;  %11762 = vst [vmem:[#allocation56_spill] sm:$0xff] %v11126_v6 }
 0x887   :  { %6626 = vmatprep.subr.bf16.mxu0 %v11088_v14  ;;  %6667 = vmatprep.subr.bf16.mxu1 %v11090_v27 }
 0x888   :  { %6656 = vmatprep.mubr.bf16.mxu0 %v11509_v32  ;;  %6697 = vmatprep.mubr.bf16.mxu1 %v11509_v32 }
 0x88a   :  { %v9305_v63 = vpop.eup %9304  ;;  %6627 = vmatpush1.bf16.msra.mxu0 %v11094_v23  ;;  %6668 = vmatpush1.bf16.msra.mxu1 %v11096_v3 }
 0x88b   :  { %v6128_v57 = vadd.f32 1.0, %v9305_v63  ;;  %6628 = vmatprep.subr.bf16.mxu0 %v11100_v2  ;;  %6669 = vmatprep.subr.bf16.mxu1 %v11102_v33  ;;  %v11134_v63 = vld [vmem:[#allocation9 + $0x88] ss:$16 sps:$4 sm:$0xff]   ;;  %v11165_v33 = vld [vmem:[#allocation9 + $0xec] ss:$16 sps:$4 sm:$0xff]  }
 0x88c   :  { %v9307_v31 = vpop.eup %9306  ;;  %11765 = vst [vmem:[#allocation59_spill] sm:$0xff] %v11134_v63 }
 0x88d   :  { %9310 = vrcp.f32 %v6128_v57  ;;  %v6137_v11 = vadd.f32 1.0, %v9307_v31  ;;  %v11140_v57 = vld [vmem:[#allocation9 + $0xac] ss:$16 sps:$4 sm:$0xff]   ;;  %v9309_v31 = vpop.eup %9308 }
 0x88e   :  { %9312 = vtanh.f32 %v6140_v7  ;;  %6629 = vmatpush1.bf16.msra.mxu0 %v11108_v61  ;;  %6670 = vmatpush1.bf16.msra.mxu1 %v11110_v26  ;;  %v11138_v7 = vld [vmem:[#allocation9 + $0xa4] ss:$16 sps:$4 sm:$0xff]   ;;  %11767 = vst [vmem:[#allocation61_spill] sm:$0xff] %v11140_v57  ;;  %v6148_v26 = vadd.f32 1.0, %v9309_v31 }
 0x88f   :  { %9314 = vrcp.f32 %v6137_v11  ;;  %6630 = vmatprep.subr.bf16.mxu0 %v11114_v59  ;;  %6671 = vmatprep.subr.bf16.mxu1 %v11116_v1  ;;  %11766 = vst [vmem:[#allocation60_spill] sm:$0xff] %v11138_v7  ;;  %v11144_v11 = vld [vmem:[#allocation9 + $0xa0] ss:$16 sps:$4 sm:$0xff]  }
 0x890   :  { %11768 = vst [vmem:[#allocation62_spill] sm:$0xff] %v11144_v11  ;;  %9316 = vrcp.f32 %v6148_v26 }
 0x892   :  { %6631 = vmatpush1.bf16.msra.mxu0 %v11120_v46  ;;  %6672 = vmatpush1.bf16.msra.mxu1 %v11122_v5  ;;  %v11146_v5 = vld [vmem:[#allocation9 + $0xa8] ss:$16 sps:$4 sm:$0xff]  }
 0x893   :  { %6632 = vmatprep.subr.bf16.mxu0 %v11126_v6  ;;  %6673 = vmatprep.subr.bf16.mxu1 %v11128_v4  ;;  %11769 = vst [vmem:[#allocation63_spill] sm:$0xff] %v11146_v5  ;;  %v11150_v6 = vld [vmem:[#allocation9 + $0xc4] ss:$16 sps:$4 sm:$0xff]   ;;  %v11152_v4 = vld [vmem:[#allocation9 + $0xcc] ss:$16 sps:$4 sm:$0xff]  }
 0x896   :  { %6633 = vmatpush1.bf16.msra.mxu0 %v11132_v29  ;;  %6674 = vmatpush1.bf16.msra.mxu1 %v11134_v63  ;;  %v11156_v63 = vld [vmem:[#allocation9 + $0xc0] ss:$16 sps:$4 sm:$0xff]   ;;  %v11158_v29 = vld [vmem:[#allocation9 + $0xc8] ss:$16 sps:$4 sm:$0xff]  }
 0x897   :  { %v9311_v46 = vpop.eup %9310  ;;  %6634 = vmatprep.subr.bf16.mxu0 %v11138_v7  ;;  %6675 = vmatprep.subr.bf16.mxu1 %v11140_v57  ;;  %v11163_v57 = vld [vmem:[#allocation9 + $0xe4] ss:$16 sps:$4 sm:$0xff]  }
 0x898   :  { %v9313_v1 = vpop.eup %9312 }
 0x899   :  { %v9315_v59 = vpop.eup %9314  ;;  %v6152_v7 = vmul.f32 %v9313_v1, %v9311_v46 }
 0x89a   :  { %6635 = vmatpush1.bf16.msra.mxu0 %v11144_v11  ;;  %6676 = vmatpush1.bf16.msra.mxu1 %v11146_v5  ;;  %v6151_v61 = vmul.f32 %v9315_v59, %v10856_v24  ;;  %v11171_v5 = vld [vmem:[#allocation9 + $0xe0] ss:$16 sps:$4 sm:$0xff]   ;;  %v11173_v11 = vld [vmem:[#allocation9 + $0xe8] ss:$16 sps:$4 sm:$0xff]   ;;  %v9317_v24 = vpop.eup %9316 }
 0x89b   :  { %6636 = vmatprep.subr.bf16.mxu0 %v11150_v6  ;;  %6677 = vmatprep.subr.bf16.mxu1 %v11152_v4 }
 0x89c   :  { %v11167_v31 = vadd.f32 %v6152_v7, %v6151_v61 }
 0x89e   :  { %6637 = vmatpush1.bf16.msra.mxu0 %v11156_v63  ;;  %6678 = vmatpush1.bf16.msra.mxu1 %v11158_v29  ;;  %9318 = vtanh.f32 %v11167_v31 }
 0x89f   :  { %6638 = vmatprep.subr.bf16.mxu0 %v11163_v57  ;;  %6679 = vmatprep.subr.bf16.mxu1 %v11165_v33 }
 0x8a2   :  { %6639 = vmatpush1.bf16.msra.mxu0 %v11171_v5  ;;  %6680 = vmatpush1.bf16.msra.mxu1 %v11173_v11 }
 0x8a3   :  { %6929 = vmatprep.subr.bf16.mxu0 %v10863_v12  ;;  %6970 = vmatprep.subr.bf16.mxu1 %v10865_v50  ;;  %v11770_v12 = vld [vmem:[#allocation17_spill] sm:$0xff]  ;;  %v11771_v50 = vld [vmem:[#allocation18_spill] sm:$0xff] }
 0x8a8   :  { %v9319_v61 = vpop.eup %9318 }
 0x8a9   :  { %v6155_v26 = vmul.f32 %v9319_v61, %v9317_v24 }
 0x8ab   :  { %v6156_v59 = vpack.c.bf16 %v6155_v26, %v6155_v26 }
 0x8ad   :  { %6657 = vmatmul.mubr.bf16.vlgmr.msra.gmra.mrb[84].mxu0 %v6156_v59  ;;  %6698 = vmatmul.mubr.bf16.vlgmr.msra.gmra.mrb[84].mxu1 %v6156_v59 }
 0x8ae   :  { %6930 = vmatpush1.bf16.msra.mxu0 %v10871_v22  ;;  %6971 = vmatpush1.bf16.msra.mxu1 %v10873_v8  ;;  %v11772_v22 = vld [vmem:[#allocation19_spill] sm:$0xff]  ;;  %v11773_v8 = vld [vmem:[#allocation20_spill] sm:$0xff] }
 0x8af   :  { %6931 = vmatprep.subr.bf16.mxu0 %v10877_v16  ;;  %6972 = vmatprep.subr.bf16.mxu1 %v10879_v49  ;;  %v11774_v16 = vld [vmem:[#allocation21_spill] sm:$0xff]  ;;  %v11775_v49 = vld [vmem:[#allocation22_spill] sm:$0xff] }
 0x8b0   :  { %6961 = vmatprep.mubr.bf16.mxu0 %v11509_v32  ;;  %7002 = vmatprep.mubr.bf16.mxu1 %v11509_v32 }
 0x8b2   :  { %6932 = vmatpush1.bf16.msra.mxu0 %v10885_v25  ;;  %6973 = vmatpush1.bf16.msra.mxu1 %v10887_v44  ;;  %v11776_v25 = vld [vmem:[#allocation23_spill] sm:$0xff]  ;;  %v11777_v44 = vld [vmem:[#allocation24_spill] sm:$0xff] }
 0x8b3   :  { %6933 = vmatprep.subr.bf16.mxu0 %v10891_v21  ;;  %6974 = vmatprep.subr.bf16.mxu1 %v10893_v43  ;;  %v11778_v21 = vld [vmem:[#allocation25_spill] sm:$0xff]  ;;  %v11779_v43 = vld [vmem:[#allocation26_spill] sm:$0xff] }
 0x8b6   :  { %6934 = vmatpush1.bf16.msra.mxu0 %v10899_v10  ;;  %6975 = vmatpush1.bf16.msra.mxu1 %v10901_v45  ;;  %v11780_v10 = vld [vmem:[#allocation27_spill] sm:$0xff]  ;;  %v11781_v45 = vld [vmem:[#allocation28_spill] sm:$0xff] }
 0x8b7   :  { %6935 = vmatprep.subr.bf16.mxu0 %v10905_v37  ;;  %6976 = vmatprep.subr.bf16.mxu1 %v10907_v17  ;;  %v11782_v37 = vld [vmem:[#allocation29_spill] sm:$0xff]  ;;  %v11783_v17 = vld [vmem:[#allocation30_spill] sm:$0xff] }
 0x8ba   :  { %6936 = vmatpush1.bf16.msra.mxu0 %v10911_v39  ;;  %6977 = vmatpush1.bf16.msra.mxu1 %v10913_v20  ;;  %v11784_v39 = vld [vmem:[#allocation31_spill] sm:$0xff]  ;;  %v11785_v20 = vld [vmem:[#allocation32_spill] sm:$0xff] }
 0x8bb   :  { %6937 = vmatprep.subr.bf16.mxu0 %v10917_v34  ;;  %6978 = vmatprep.subr.bf16.mxu1 %v10919_v36  ;;  %v11786_v34 = vld [vmem:[#allocation33_spill] sm:$0xff]  ;;  %v11787_v36 = vld [vmem:[#allocation34_spill] sm:$0xff] }
 0x8be   :  { %6938 = vmatpush1.bf16.msra.mxu0 %v10923_v0  ;;  %6979 = vmatpush1.bf16.msra.mxu1 %v10925_v18  ;;  %v11788_v0 = vld [vmem:[#allocation35_spill] sm:$0xff]  ;;  %v11789_v18 = vld [vmem:[#allocation36_spill] sm:$0xff] }
 0x8bf   :  { %6939 = vmatprep.subr.bf16.mxu0 %v10929_v40  ;;  %6980 = vmatprep.subr.bf16.mxu1 %v10931_v42  ;;  %v11790_v40 = vld [vmem:[#allocation37_spill] sm:$0xff]  ;;  %v11791_v42 = vld [vmem:[#allocation38_spill] sm:$0xff] }
 0x8c2   :  { %6940 = vmatpush1.bf16.msra.mxu0 %v10935_v48  ;;  %6981 = vmatpush1.bf16.msra.mxu1 %v10937_v38  ;;  %v11792_v48 = vld [vmem:[#allocation39_spill] sm:$0xff]  ;;  %v11793_v38 = vld [vmem:[#allocation40_spill] sm:$0xff] }
 0x8c3   :  { %6941 = vmatprep.subr.bf16.mxu0 %v10941_v51  ;;  %6982 = vmatprep.subr.bf16.mxu1 %v10943_v41  ;;  %v11794_v51 = vld [vmem:[#allocation41_spill] sm:$0xff]  ;;  %v11795_v41 = vld [vmem:[#allocation42_spill] sm:$0xff] }
 0x8c6   :  { %6942 = vmatpush1.bf16.msra.mxu0 %v10947_v52  ;;  %6983 = vmatpush1.bf16.msra.mxu1 %v10949_v53  ;;  %v11796_v52 = vld [vmem:[#allocation43_spill] sm:$0xff]  ;;  %v11797_v53 = vld [vmem:[#allocation44_spill] sm:$0xff] }
 0x8c7   :  { %6943 = vmatprep.subr.bf16.mxu0 %v10953_v9  ;;  %6984 = vmatprep.subr.bf16.mxu1 %v10955_v13  ;;  %v11798_v9 = vld [vmem:[#allocation45_spill] sm:$0xff]  ;;  %v11799_v13 = vld [vmem:[#allocation46_spill] sm:$0xff] }
 0x8ca   :  { %6944 = vmatpush1.bf16.msra.mxu0 %v10959_v30  ;;  %6985 = vmatpush1.bf16.msra.mxu1 %v10961_v35  ;;  %v11800_v30 = vld [vmem:[#allocation47_spill] sm:$0xff]  ;;  %v11801_v35 = vld [vmem:[#allocation48_spill] sm:$0xff] }
 0x8cb   :  { %7298 = vmatprep.subr.bf16.mxu0 %v10971_v55  ;;  %7339 = vmatprep.subr.bf16.mxu1 %v10973_v56 }
 0x8cd   :  { %6962 = vmatmul.mubr.bf16.vlgmr.msra.gmra.mrb[88].mxu0 %v6156_v59  ;;  %7003 = vmatmul.mubr.bf16.vlgmr.msra.gmra.mrb[88].mxu1 %v6156_v59 }
 0x8ce   :  { %7299 = vmatpush1.bf16.msra.mxu0 %v11770_v12  ;;  %7340 = vmatpush1.bf16.msra.mxu1 %v11771_v50 }
 0x8cf   :  { %7300 = vmatprep.subr.bf16.mxu0 %v11772_v22  ;;  %7341 = vmatprep.subr.bf16.mxu1 %v11773_v8 }
 0x8d0   :  { %7330 = vmatprep.mubr.bf16.mxu0 %v11509_v32  ;;  %7371 = vmatprep.mubr.bf16.mxu1 %v11509_v32 }
 0x8d2   :  { %7301 = vmatpush1.bf16.msra.mxu0 %v11774_v16  ;;  %7342 = vmatpush1.bf16.msra.mxu1 %v11775_v49 }
 0x8d3   :  { %7302 = vmatprep.subr.bf16.mxu0 %v11776_v25  ;;  %7343 = vmatprep.subr.bf16.mxu1 %v11777_v44 }
 0x8d6   :  { %7303 = vmatpush1.bf16.msra.mxu0 %v11778_v21  ;;  %7344 = vmatpush1.bf16.msra.mxu1 %v11779_v43 }
 0x8d7   :  { %7304 = vmatprep.subr.bf16.mxu0 %v11780_v10  ;;  %7345 = vmatprep.subr.bf16.mxu1 %v11781_v45 }
 0x8da   :  { %7305 = vmatpush1.bf16.msra.mxu0 %v11782_v37  ;;  %7346 = vmatpush1.bf16.msra.mxu1 %v11783_v17 }
 0x8db   :  { %7306 = vmatprep.subr.bf16.mxu0 %v11784_v39  ;;  %7347 = vmatprep.subr.bf16.mxu1 %v11785_v20 }
 0x8de   :  { %7307 = vmatpush1.bf16.msra.mxu0 %v11786_v34  ;;  %7348 = vmatpush1.bf16.msra.mxu1 %v11787_v36 }
 0x8df   :  { %7308 = vmatprep.subr.bf16.mxu0 %v11788_v0  ;;  %7349 = vmatprep.subr.bf16.mxu1 %v11789_v18 }
 0x8e2   :  { %7309 = vmatpush1.bf16.msra.mxu0 %v11790_v40  ;;  %7350 = vmatpush1.bf16.msra.mxu1 %v11791_v42 }
 0x8e3   :  { %7310 = vmatprep.subr.bf16.mxu0 %v11792_v48  ;;  %7351 = vmatprep.subr.bf16.mxu1 %v11793_v38 }
 0x8e6   :  { %7311 = vmatpush1.bf16.msra.mxu0 %v11794_v51  ;;  %7352 = vmatpush1.bf16.msra.mxu1 %v11795_v41 }
 0x8e7   :  { %7312 = vmatprep.subr.bf16.mxu0 %v11796_v52  ;;  %7353 = vmatprep.subr.bf16.mxu1 %v11797_v53 }
 0x8ea   :  { %7313 = vmatpush1.bf16.msra.mxu0 %v11798_v9  ;;  %7354 = vmatpush1.bf16.msra.mxu1 %v11799_v13 }
 0x8eb   :  { %7540 = vmatprep.subr.bf16.mxu0 %v11800_v30  ;;  %7581 = vmatprep.subr.bf16.mxu1 %v11801_v35 }
 0x958   :  { %v6416_v55 = vpop.f32.mrb[80].mxu0  ;;  %v6457_v56 = vpop.f32.mrb[80].mxu1 }
 0x959   :  { %v6418_v1 = vpop.f32.mrb[81].mxu0  ;;  %v6459_v46 = vpop.f32.mrb[81].mxu1 }
 0x95a   :  { %v6420_v7 = vpop.f32.mrb[82].mxu0  ;;  %v6461_v24 = vpop.f32.mrb[82].mxu1 }
 0x95b   :  { %v6421_v61 = vpop.f32.mrb[83].mxu0  ;;  %v6462_v26 = vpop.f32.mrb[83].mxu1 }
 0x980   :  { %v6658_v59 = vpop.f32.mrb[84].mxu0  ;;  %v6699_v12 = vpop.f32.mrb[84].mxu1 }
 0x981   :  { %v6659_v50 = vadd.f32 %v6658_v59, %v6416_v55  ;;  %v6700_v22 = vadd.f32 %v6699_v12, %v6457_v56  ;;  %v6660_v8 = vpop.f32.mrb[85].mxu0  ;;  %v6701_v16 = vpop.f32.mrb[85].mxu1 }
 0x982   :  { %v6661_v49 = vadd.f32 %v6660_v8, %v6418_v1  ;;  %v6702_v25 = vadd.f32 %v6701_v16, %v6459_v46  ;;  %v6662_v44 = vpop.f32.mrb[86].mxu0  ;;  %v6703_v21 = vpop.f32.mrb[86].mxu1 }
 0x983   :  { %v6706_v43 = vadd.f32 %v6659_v50, %v9941_v60  ;;  %v6663_v10 = vpop.f32.mrb[87].mxu0  ;;  %v6704_v45 = vpop.f32.mrb[87].mxu1  ;;  %v6708_v36 = vadd.f32 %v6700_v22, %v9956_v19  ;;  %v6736_v22 = vld [vmem:[#allocation2 + $0x7] ss:$8 sm:$0xf] }
 0x984   :  { %v6707_v37 = vadd.f32 %v6661_v49, %v9945_v62  ;;  %v6709_v20 = vadd.f32 %v6702_v25, %v9951_v15 }
 0x985   :  { %v8397_v17 = vmul.f32 -1.442695, %v6706_v43 }
 0x986   :  { %v8398_v39 = vmul.f32 -1.442695, %v6707_v37  ;;  %v8399_v34 = vmul.f32 -1.442695, %v6709_v20  ;;  %v11804_v20 = vld [vmem:[#allocation51_spill] sm:$0xff] }
 0x987   :  { %9320 = vpow2.f32 %v8397_v17 }
 0x988   :  { %9322 = vpow2.f32 %v8398_v39 }
 0x989   :  { %9324 = vpow2.f32 %v8399_v34  ;;  %v11808_v34 = vld [vmem:[#allocation55_spill] sm:$0xff] }
 0x98a   :  { %9326 = vtanh.f32 %v6708_v36  ;;  %v11810_v36 = vld [vmem:[#allocation57_spill] sm:$0xff] }
 0x991   :  { %v9321_v0 = vpop.eup %9320 }
 0x992   :  { %v9323_v18 = vpop.eup %9322  ;;  %v6713_v40 = vadd.f32 1.0, %v9321_v0 }
 0x993   :  { %v6719_v42 = vadd.f32 1.0, %v9323_v18  ;;  %v9325_v48 = vpop.eup %9324  ;;  %v11811_v18 = vld [vmem:[#allocation58_spill] sm:$0xff] }
 0x994   :  { %9328 = vrcp.f32 %v6713_v40  ;;  %v9327_v38 = vpop.eup %9326  ;;  %v6726_v53 = vadd.f32 1.0, %v9325_v48  ;;  %v11812_v40 = vld [vmem:[#allocation59_spill] sm:$0xff]  ;;  %v11813_v48 = vld [vmem:[#allocation60_spill] sm:$0xff] }
 0x995   :  { %9330 = vrcp.f32 %v6719_v42 }
 0x996   :  { %9332 = vrcp.f32 %v6726_v53  ;;  %v11815_v53 = vld [vmem:[#allocation62_spill] sm:$0xff] }
 0x99e   :  { %v9329_v51 = vpop.eup %9328 }
 0x99f   :  { %v9331_v41 = vpop.eup %9330  ;;  %v6730_v52 = vmul.f32 %v9329_v51, %v9327_v38  ;;  %v11814_v38 = vld [vmem:[#allocation61_spill] sm:$0xff] }
 0x9a0   :  { %v6729_v9 = vmul.f32 %v9331_v41, %v11078_v28  ;;  %v6963_v13 = vpop.f32.mrb[88].mxu0  ;;  %v7004_v30 = vpop.f32.mrb[88].mxu1 }
 0x9a1   :  { %v6965_v35 = vpop.f32.mrb[89].mxu0  ;;  %v7006_v55 = vpop.f32.mrb[89].mxu1 }
 0x9a2   :  { %v11255_v56 = vadd.f32 %v6730_v52, %v6729_v9  ;;  %v7015_v1 = vcombine.low %v6963_v13, %v6965_v35  ;;  %v7016_v46 = vcombine.low %v7004_v30, %v7006_v55  ;;  %v6967_v7 = vpop.f32.mrb[90].mxu0  ;;  %v7008_v24 = vpop.f32.mrb[90].mxu1  ;;  %v11816_v9 = vld [vmem:[#allocation63_spill] sm:$0xff] }
 0x9a3   :  { %v6968_v61 = vpop.f32.mrb[91].mxu0  ;;  %v7009_v26 = vpop.f32.mrb[91].mxu1 }
 0x9a4   :  { %v7023_v59 = vrot.slane %v7015_v1, %v9884_v47  ;;  %v7030_v12 = vrot.slane %v7016_v46, %v9884_v47  ;;  %9334 = vtanh.f32 %v11255_v56  ;;  %v9333_v25 = vpop.eup %9332 }
 0x9a6   :  { %v7031_v28 = vcombine.low %v7023_v59, %v7030_v12 }
 0x9a8   :  { %v7038_v50 = vrot.slane %v7031_v28, %v9884_v47 }
 0x9aa   :  { %v7040_v8 = vadd.f32 %v7038_v50, %v6736_v22 }
 0x9ac   :  { %v8432_v16 = vmul.f32 -1.442695, %v7040_v8  ;;  %v7048_v49 = vrot.slane %v7040_v8, 1  ;;  %v7059_v45 = vrot.slane %v7040_v8, 3  ;;  %v7056_v17 = vrot.slane %v7040_v8, 2 }
 0x9ae   :  { %v9335_v44 = vpop.eup %9334  ;;  %9336 = vpow2.f32 %v8432_v16  ;;  %v8433_v21 = vmul.f32 -1.442695, %v7048_v49  ;;  %v8434_v47 = vmul.f32 -1.442695, %v7059_v45 }
 0x9af   :  { %v6733_v43 = vmul.f32 %v9335_v44, %v9333_v25 }
 0x9b0   :  { %9338 = vpow2.f32 %v8433_v21 }
 0x9b1   :  { %6734 = vst [vmem:[#allocation12 + $0x6] sm:$0x1] %v6733_v43  ;;  %v7105_v10 = vpack.c.bf16 %v6733_v43, %v6733_v43  ;;  %9340 = vpow2.f32 %v8434_v47 }
 0x9b3   :  { %7331 = vmatmul.mubr.bf16.vlgmr.msra.gmra.mrb[92].mxu0 %v7105_v10  ;;  %7372 = vmatmul.mubr.bf16.vlgmr.msra.gmra.mrb[92].mxu1 %v7105_v10 }
 0x9b4   :  { %7541 = vmatpush1.bf16.msra.mxu0 %v11084_v58  ;;  %7582 = vmatpush1.bf16.msra.mxu1 %v11086_v54  ;;  %v11802_v58 = vld [vmem:[#allocation49_spill] sm:$0xff] }
 0x9b5   :  { %7542 = vmatprep.subr.bf16.mxu0 %v11088_v14  ;;  %7583 = vmatprep.subr.bf16.mxu1 %v11090_v27  ;;  %v11803_v27 = vld [vmem:[#allocation50_spill] sm:$0xff] }
 0x9b6   :  { %7572 = vmatprep.mubr.bf16.mxu0 %v11509_v32  ;;  %7613 = vmatprep.mubr.bf16.mxu1 %v11509_v32  ;;  %v11805_v32 = vld [vmem:[#allocation52_spill] sm:$0xff] }
 0x9b8   :  { %v9337_v37 = vpop.eup %9336  ;;  %7543 = vmatpush1.bf16.msra.mxu0 %v11094_v23  ;;  %7584 = vmatpush1.bf16.msra.mxu1 %v11096_v3  ;;  %v11806_v23 = vld [vmem:[#allocation53_spill] sm:$0xff]  ;;  %v11807_v3 = vld [vmem:[#allocation54_spill] sm:$0xff] }
 0x9b9   :  { %v7044_v39 = vadd.f32 1.0, %v9337_v37  ;;  %7544 = vmatprep.subr.bf16.mxu0 %v11100_v2  ;;  %7585 = vmatprep.subr.bf16.mxu1 %v11802_v58  ;;  %v11809_v2 = vld [vmem:[#allocation56_spill] sm:$0xff] }
 0x9ba   :  { %v9339_v54 = vpop.eup %9338 }
 0x9bb   :  { %9342 = vrcp.f32 %v7044_v39  ;;  %v7053_v14 = vadd.f32 1.0, %v9339_v54  ;;  %v9341_v0 = vpop.eup %9340 }
 0x9bc   :  { %9344 = vtanh.f32 %v7056_v17  ;;  %7545 = vmatpush1.bf16.msra.mxu0 %v11803_v27  ;;  %7586 = vmatpush1.bf16.msra.mxu1 %v11804_v20  ;;  %v7064_v52 = vadd.f32 1.0, %v9341_v0 }
 0x9bd   :  { %9346 = vrcp.f32 %v7053_v14  ;;  %7546 = vmatprep.subr.bf16.mxu0 %v11805_v32  ;;  %7587 = vmatprep.subr.bf16.mxu1 %v11806_v23 }
 0x9be   :  { %9348 = vrcp.f32 %v7064_v52 }
 0x9c0   :  { %7547 = vmatpush1.bf16.msra.mxu0 %v11807_v3  ;;  %7588 = vmatpush1.bf16.msra.mxu1 %v11808_v34 }
 0x9c1   :  { %7548 = vmatprep.subr.bf16.mxu0 %v11809_v2  ;;  %7589 = vmatprep.subr.bf16.mxu1 %v11810_v36 }
 0x9c4   :  { %7549 = vmatpush1.bf16.msra.mxu0 %v11811_v18  ;;  %7590 = vmatpush1.bf16.msra.mxu1 %v11812_v40 }
 0x9c5   :  { %v9343_v42 = vpop.eup %9342  ;;  %7550 = vmatprep.subr.bf16.mxu0 %v11813_v48  ;;  %7591 = vmatprep.subr.bf16.mxu1 %v11814_v38 }
 0x9c6   :  { %v9345_v51 = vpop.eup %9344 }
 0x9c7   :  { %v9347_v41 = vpop.eup %9346  ;;  %v7068_v30 = vmul.f32 %v9345_v51, %v9343_v42 }
 0x9c8   :  { %7551 = vmatpush1.bf16.msra.mxu0 %v11815_v53  ;;  %7592 = vmatpush1.bf16.msra.mxu1 %v11816_v9  ;;  %v7067_v13 = vmul.f32 %v9347_v41, %v11167_v31  ;;  %v9349_v31 = vpop.eup %9348 }
 0x9c9   :  { %7552 = vmatprep.subr.bf16.mxu0 %v11150_v6  ;;  %7593 = vmatprep.subr.bf16.mxu1 %v11152_v4 }
 0x9ca   :  { %v7069_v35 = vadd.f32 %v7068_v30, %v7067_v13 }
 0x9cc   :  { %7553 = vmatpush1.bf16.msra.mxu0 %v11156_v63  ;;  %7594 = vmatpush1.bf16.msra.mxu1 %v11158_v29  ;;  %9350 = vtanh.f32 %v7069_v35 }
 0x9cd   :  { %7554 = vmatprep.subr.bf16.mxu0 %v11163_v57  ;;  %7595 = vmatprep.subr.bf16.mxu1 %v11165_v33 }
 0x9d0   :  { %7555 = vmatpush1.bf16.msra.mxu0 %v11171_v5  ;;  %7596 = vmatpush1.bf16.msra.mxu1 %v11173_v11 }
 0x9d6   :  { %v9351_v55 = vpop.eup %9350 }
 0x9d7   :  { %v7071_v6 = vmul.f32 %v9351_v55, %v9349_v31 }
 0x9d9   :  { %v7072_v1 = vpack.c.bf16 %v7071_v6, %v7071_v6 }
 0x9db   :  { %7573 = vmatmul.mubr.bf16.vlgmr.msra.gmra.mrb[96].mxu0 %v7072_v1  ;;  %7614 = vmatmul.mubr.bf16.vlgmr.msra.gmra.mrb[96].mxu1 %v7072_v1 }
 0xa86   :  { %v7332_v4 = vpop.f32.mrb[92].mxu0  ;;  %v7373_v46 = vpop.f32.mrb[92].mxu1 }
 0xa87   :  { %v7334_v63 = vpop.f32.mrb[93].mxu0  ;;  %v7375_v7 = vpop.f32.mrb[93].mxu1 }
 0xa88   :  { %v7336_v29 = vpop.f32.mrb[94].mxu0  ;;  %v7377_v24 = vpop.f32.mrb[94].mxu1 }
 0xa89   :  { %v7337_v61 = vpop.f32.mrb[95].mxu0  ;;  %v7378_v57 = vpop.f32.mrb[95].mxu1 }
 0xaae   :  { %v7574_v26 = vpop.f32.mrb[96].mxu0  ;;  %v7615_v33 = vpop.f32.mrb[96].mxu1 }
 0xaaf   :  { %v7575_v59 = vadd.f32 %v7574_v26, %v7332_v4  ;;  %v7616_v5 = vadd.f32 %v7615_v33, %v7373_v46  ;;  %v7576_v12 = vpop.f32.mrb[97].mxu0  ;;  %v7617_v11 = vpop.f32.mrb[97].mxu1 }
 0xab0   :  { %v7577_v28 = vadd.f32 %v7576_v12, %v7334_v63  ;;  %v7618_v50 = vadd.f32 %v7617_v11, %v7375_v7  ;;  %v7578_v22 = vpop.f32.mrb[98].mxu0  ;;  %v7619_v8 = vpop.f32.mrb[98].mxu1 }
 0xab1   :  { %v7622_v16 = vadd.f32 %v7575_v59, %v9941_v60  ;;  %v7579_v49 = vpop.f32.mrb[99].mxu0  ;;  %v7620_v25 = vpop.f32.mrb[99].mxu1  ;;  %v7624_v47 = vadd.f32 %v7616_v5, %v9956_v19 }
 0xab2   :  { %v7623_v44 = vadd.f32 %v7577_v28, %v9945_v62  ;;  %v7625_v10 = vadd.f32 %v7618_v50, %v9951_v15 }
 0xab3   :  { %v8499_v21 = vmul.f32 -1.442695, %v7622_v16 }
 0xab4   :  { %v8500_v43 = vmul.f32 -1.442695, %v7623_v44  ;;  %v8501_v45 = vmul.f32 -1.442695, %v7625_v10 }
 0xab5   :  { %9352 = vpow2.f32 %v8499_v21 }
 0xab6   :  { %9354 = vpow2.f32 %v8500_v43 }
 0xab7   :  { %9356 = vpow2.f32 %v8501_v45 }
 0xab8   :  { %9358 = vtanh.f32 %v7624_v47 }
 0xabf   :  { %v9353_v37 = vpop.eup %9352 }
 0xac0   :  { %v9355_v17 = vpop.eup %9354  ;;  %v7629_v39 = vadd.f32 1.0, %v9353_v37 }
 0xac1   :  { %v7635_v58 = vadd.f32 1.0, %v9355_v17  ;;  %v9357_v60 = vpop.eup %9356 }
 0xac2   :  { %9360 = vrcp.f32 %v7629_v39  ;;  %v9359_v54 = vpop.eup %9358  ;;  %v7642_v20 = vadd.f32 1.0, %v9357_v60 }
 0xac3   :  { %9362 = vrcp.f32 %v7635_v58 }
 0xac4   :  { %9364 = vrcp.f32 %v7642_v20 }
 0xacc   :  { %v9361_v62 = vpop.eup %9360 }
 0xacd   :  { %v9363_v14 = vpop.eup %9362  ;;  %v7646_v27 = vmul.f32 %v9361_v62, %v9359_v54 }
 0xace   :  { %v7645_v32 = vmul.f32 %v9363_v14, %v11255_v56  ;;  %v9365_v19 = vpop.eup %9364 }
 0xad0   :  { %v7647_v15 = vadd.f32 %v7646_v27, %v7645_v32 }
 0xad2   :  { %9366 = vtanh.f32 %v7647_v15 }
 0xadc   :  { %v9367_v23 = vpop.eup %9366 }
 0xadd   :  { %v7649_v3 = vmul.f32 %v9367_v23, %v9365_v19 }
 0xadf   :  { %7650 = vst [vmem:[#allocation12 + $0x7] sm:$0x1] %v7649_v3 }
 0xae0   :  { %9521 = shalt.err (!%p9518_p2)
}
 0xae1   :  { %s9522_s20 = scalar_lea.hbm %s11318_s7, 128 }
 0xae2   :  { %p9523_p3 = scmp.ne.s32.totalorder %s11318_s7, %s9522_s20  ;;  %p9526_p4 = scmp.lt.u32.totalorder %s9522_s20, %s11318_s7 }
 0xae4   :  { %p9528_p5 = pnand %p9526_p4, %p9523_p3 }
 0xae6   :  { %9531 = shalt.err (!%p9528_p5)
}
 0xae7   :  { %7660 = dma.vmem_to_hbm [thread:$0]  %s7658_s15, 128, %s11318_s7, [#allocation5]  }
 0xae8   :  { %9538 = dma.done.wait [#allocation5], 128  }
 0xae9   :  { %9539 = vsyncadd [#allocation5], 4294967168 }
 0xaea   :  { %7664 = vsyncpa [#allocation4], 1 }
 0xaeb   :  { %7665 = vsyncpa [#allocation7], 1 }
 0xaec   :  { %7666 = vsyncpa [#allocation10], 1 }
 0xaed   :  { %7667 = vsyncpa [#allocation5], 1 }

</bundles_post_ra>
